<compile_context>
chip_gen: v7x
topology: tpu7x:2x2x1
jax: 0.10.0
libtpu: 0.0.40
codegen_flags: <defaults>
</compile_context>

<pallas_src>
import functools
import math

import jax
import jax.numpy as jnp
from jax.experimental import pallas as pl
from jax.experimental.pallas import tpu as pltpu

# Problem sizes consistent with the module:
#   features_per_token=C, num_heads=NH, base_patch_grid_hw=(H, W), mlp_ratio=4
B, H, W, C = 2, 8, 8, 32
NH = 4
HD = C // NH              # features per head
HW = H * W
HID = 4 * C               # MLP hidden features
NBIG = 2 * C + NH * C     # fused projection width: [Q | scale*K | V@proj per head] = 192
EPS = 1e-6
SCALE = HD ** -0.5
INV_SQRT2 = 1.0 / math.sqrt(2.0)


def _layernorm(x, g, b):
    mu = jnp.mean(x, axis=-1, keepdims=True)
    var = jnp.mean((x - mu) ** 2, axis=-1, keepdims=True)
    return (x - mu) * jax.lax.rsqrt(var + EPS) * g + b


def _gelu_exact(x):
    # torch.nn.GELU default (erf-based, not tanh approximation)
    return 0.5 * x * (1.0 + jax.lax.erf(x * INV_SQRT2))


def block_kernel(bb, x_ref, wbig_ref, small_ref, kmask_ref, repc_ref,
                 mh_ref, mw_ref, bh_ref, bw_ref, w1_ref, w2_ref, out_ref):
    # ---- token-level ops run on all bb*HW tokens at once ----
    if bb == 1:
        x = x_ref[0]                                         # (HW, C)
    else:
        x = jnp.concatenate([x_ref[i] for i in range(bb)], axis=0)   # (bb*HW, C)

    small = small_ref[...]                                   # packed small params (8, NBIG)
    ln1g, ln1b = small[0:1, 0:C], small[1:2, 0:C]
    bbig = small[2:3, 0:NBIG]
    bp = small[3:4, 0:C]
    ln2g, ln2b = small[4:5, 0:C], small[5:6, 0:C]
    b1 = small[6:7, 0:HID]
    b2 = small[7:8, 0:C]

    xn = _layernorm(x, ln1g, ln1b)
    # fused projection: [Q | scale*K | per-head (V @ Wproj_h)] in one MXU call
    big = jnp.dot(xn, wbig_ref[...], preferred_element_type=jnp.float32) + bbig

    kmask = kmask_ref[...]                                   # (NH*HW, C) head selector
    repc = repc_ref[...]                                     # (C, H*C) lane replicator
    mh = mh_ref[...]                                         # (HW, H*C) row(i) mask
    mw = mw_ref[...]                                         # (HW, W*C) col(i) mask
    bh = bh_ref[...]                                         # (H*C, NH*HW) rel-pos H table
    bw = bw_ref[...]                                         # (W*C, NH*HW) rel-pos W table

    x1_parts = []
    for i in range(bb):                                      # per-batch attention (static)
        r0 = i * HW
        q = big[r0:r0 + HW, 0:C]                             # unscaled Q (rel-pos needs it)
        k = big[r0:r0 + HW, C:2 * C]                         # K already scaled by HD**-0.5
        vp = big[r0:r0 + HW, 2 * C:]                         # per-head V folded with proj

        # q_h @ k_h^T for all heads at once, heads stacked along lanes: (HW, NH*HW)
        krep = jnp.concatenate([k] * NH, axis=0) * kmask
        attn = jax.lax.dot_general(q, krep, (((1,), (1,)), ((), ())),
                                   preferred_element_type=jnp.float32)

        # decomposed rel-pos bias for all heads as two dense matmuls
        qrep = jnp.dot(q, repc, preferred_element_type=jnp.float32)      # (HW, H*C)
        attn = attn + jnp.dot(qrep * mh, bh, preferred_element_type=jnp.float32)
        attn = attn + jnp.dot(qrep * mw, bw, preferred_element_type=jnp.float32)

        # per-head softmax; a single row-max over all heads is exact
        # (softmax is invariant to subtracting any per-row constant)
        attn = attn - jnp.max(attn, axis=-1, keepdims=True)
        p = jnp.exp(attn)

        # (softmax @ V) @ Wproj accumulated over heads; the per-head softmax
        # normalization is a row scale, so it commutes with the matmul
        o = None
        for h in range(NH):
            ph = p[:, h * HW:(h + 1) * HW]                   # (HW, HW) lane slice
            inv = pl.reciprocal(jnp.sum(ph, axis=-1, keepdims=True), approx=True)
            oh = jnp.dot(ph, vp[:, h * C:(h + 1) * C],
                         preferred_element_type=jnp.float32) * inv
            o = oh if o is None else o + oh

        x1_parts.append(x[r0:r0 + HW, :] + o + bp)

    x1 = x1_parts[0] if bb == 1 else jnp.concatenate(x1_parts, axis=0)

    # ---- MLP branch on all tokens at once ----
    x1n = _layernorm(x1, ln2g, ln2b)
    hmid = _gelu_exact(jnp.dot(x1n, w1_ref[...],
                               preferred_element_type=jnp.float32) + b1)
    x2 = x1 + jnp.dot(hmid, w2_ref[...], preferred_element_type=jnp.float32) + b2

    for i in range(bb):
        out_ref[i] = x2[i * HW:(i + 1) * HW, :]


def _full_spec(arr):
    nd = arr.ndim
    return pl.BlockSpec(arr.shape, lambda b, _nd=nd: (0,) * _nd)


def make_params(key):
    ks = jax.random.split(key, 16)

    def nrm(k, shape, s=0.02):
        return (s * jax.random.normal(k, shape)).astype(jnp.float32)

    p = dict(
        ln1_g=(1.0 + nrm(ks[0], (1, C), 0.1)).astype(jnp.float32),
        ln1_b=nrm(ks[1], (1, C)),
        w_qkv=nrm(ks[2], (C, 3 * C)),          # x @ W form (torch weight^T)
        b_qkv=nrm(ks[3], (3 * C,)),
        w_proj=nrm(ks[4], (C, C)),
        b_proj=nrm(ks[5], (1, C)),
        # NOTE: matches the module quirk (rel_pos_h sized by width indices);
        # only valid because H == W here.
        rel_pos_h=nrm(ks[6], (2 * W - 1, HD)),
        rel_pos_w=nrm(ks[7], (2 * H - 1, HD)),
        ln2_g=(1.0 + nrm(ks[8], (1, C), 0.1)).astype(jnp.float32),
        ln2_b=nrm(ks[9], (1, C)),
        w1=nrm(ks[10], (C, HID)),
        b1=nrm(ks[11], (1, HID)),
        w2=nrm(ks[12], (HID, C)),
        b2=nrm(ks[13], (1, C)),
    )
    return p, ks[14]


def _rel_table(rel_pos, size):
    # get_rel_pos with q_size == k_size == size (no interpolation needed)
    idx = jnp.arange(size)[:, None] - jnp.arange(size)[None, :] + (size - 1)
    return rel_pos[idx]                                      # (size, size, HD)


def prepare_kernel_args(p):
    w_qkv, b_qkv, wp = p["w_qkv"], p["b_qkv"], p["w_proj"]
    wq = w_qkv[:, 0:C]
    wk = w_qkv[:, C:2 * C] * SCALE          # fold attention scale into K (NOT Q)
    wv = w_qkv[:, 2 * C:3 * C]
    bq, bk, bv = b_qkv[0:C], b_qkv[C:2 * C] * SCALE, b_qkv[2 * C:3 * C]

    # fold the output projection into V per head: vp_h = xn @ (Wv_h @ Wp_h) + bv_h @ Wp_h
    wvp_cols, bvp_cols = [], []
    for h in range(NH):
        wp_h = wp[h * HD:(h + 1) * HD, :]                    # (HD, C)
        wvp_cols.append(wv[:, h * HD:(h + 1) * HD] @ wp_h)   # (C, C)
        bvp_cols.append(bv[h * HD:(h + 1) * HD] @ wp_h)      # (C,)
    w_big = jnp.concatenate([wq, wk] + wvp_cols, axis=1).astype(jnp.float32)  # (C, NBIG)
    b_big = jnp.concatenate([bq, bk] + bvp_cols, axis=0)                      # (NBIG,)

    # rel-pos tables -> dense constants for the all-heads stacked bias matmuls:
    #   biasH[i, h*HW+j] = sum_d Q[i, h*HD+d] * Rh[i//W, j//W, d]
    #   biasW[i, h*HW+j] = sum_d Q[i, h*HD+d] * Rw[i%W,  j%W,  d]
    Rh = _rel_table(p["rel_pos_h"], H)                       # (H, H, HD)
    Rw = _rel_table(p["rel_pos_w"], W)                       # (W, W, HD)
    rh_exp = jnp.repeat(jnp.transpose(Rh, (0, 2, 1)), W, axis=2)   # [r,d,j]=Rh[r, j//W, d]
    rw_exp = jnp.tile(jnp.transpose(Rw, (0, 2, 1)), (1, 1, H))     # [w,d,j]=Rw[w, j%W, d]
    eye_h = jnp.eye(NH, dtype=jnp.float32)
    bh_big = (eye_h[None, :, None, :, None] * rh_exp[:, None, :, None, :]
              ).reshape(H * C, NH * HW).astype(jnp.float32)        # (H*C, NH*HW)
    bw_big = (eye_h[None, :, None, :, None] * rw_exp[:, None, :, None, :]
              ).reshape(W * C, NH * HW).astype(jnp.float32)        # (W*C, NH*HW)

    row_id = jnp.arange(HW) // W
    col_id = jnp.arange(HW) % W
    mh_big = jnp.repeat((row_id[:, None] == jnp.arange(H)[None, :]
                         ).astype(jnp.float32), C, axis=1)          # (HW, H*C)
    mw_big = jnp.repeat((col_id[:, None] == jnp.arange(W)[None, :]
                         ).astype(jnp.float32), C, axis=1)          # (HW, W*C)
    rep_c = jnp.tile(jnp.eye(C, dtype=jnp.float32), (1, H))         # (C, H*C); H == W
    k_mask = (jnp.repeat(jnp.arange(NH), HW)[:, None]
              == (jnp.arange(C) // HD)[None, :]).astype(jnp.float32)  # (NH*HW, C)

    # pack all small vectors into one (8, NBIG) array
    def row(v):
        v = jnp.ravel(v).astype(jnp.float32)
        return jnp.pad(v, (0, NBIG - v.shape[0]))[None, :]

    small = jnp.concatenate([
        row(p["ln1_g"]), row(p["ln1_b"]), row(b_big), row(p["b_proj"]),
        row(p["ln2_g"]), row(p["ln2_b"]), row(p["b1"]), row(p["b2"])], axis=0)

    args = (w_big, small, k_mask, rep_c, mh_big, mw_big, bh_big, bw_big,
            p["w1"], p["w2"])
    return args, (Rh, Rw)


def _batch_per_step():
    # Single-TensorCore chips (v5e / v6e): fold the whole batch into one grid
    # step. Multi-core chips (v4/v5p megacore, v7x dual-TC): keep grid=(B,) so
    # dimension_semantics=("parallel",) shards batch elements across cores.
    try:
        kind = jax.devices()[0].device_kind.lower()
    except Exception:
        return 1
    single_tc = any(t in kind for t in ("v5e", "v5 lite", "v6e", "v6 lite"))
    return B if single_tc else 1


def global_attention_block(x_bhwc, kernel_args, bb):
    x = x_bhwc.reshape(B, HW, C)
    kernel = functools.partial(block_kernel, bb)
    in_specs = [pl.BlockSpec((bb, HW, C), lambda b: (b, 0, 0))]
    in_specs += [_full_spec(a) for a in kernel_args]
    out = pl.pallas_call(
        kernel,
        out_shape=jax.ShapeDtypeStruct((B, HW, C), jnp.float32),
        grid=(B // bb,),
        in_specs=in_specs,
        out_specs=pl.BlockSpec((bb, HW, C), lambda b: (b, 0, 0)),
        compiler_params=pltpu.CompilerParams(dimension_semantics=("parallel",)),
    )(x, *kernel_args)
    return out.reshape(B, H, W, C)


def reference(x_bhwc, p, Rh, Rw):
    x = x_bhwc.reshape(B, HW, C)
    xn = _layernorm(x, p["ln1_g"], p["ln1_b"])
    qkv = xn @ p["w_qkv"] + p["b_qkv"]
    qkv = qkv.reshape(B, HW, 3, NH, HD).transpose(2, 0, 3, 1, 4).reshape(3, B * NH, HW, HD)
    q, k, v = qkv[0], qkv[1], qkv[2]
    attn = (q * SCALE) @ jnp.swapaxes(k, -1, -2)
    r_q = q.reshape(B * NH, H, W, HD)
    rel_h = jnp.einsum("bhwc,hkc->bhwk", r_q, Rh)
    rel_w = jnp.einsum("bhwc,wkc->bhwk", r_q, Rw)
    attn = (attn.reshape(B * NH, H, W, H, W)
            + rel_h[:, :, :, :, None] + rel_w[:, :, :, None, :]).reshape(B * NH, HW, HW)
    attn = jax.nn.softmax(attn, axis=-1)
    o = (attn @ v).reshape(B, NH, H, W, HD).transpose(0, 2, 3, 1, 4).reshape(B, HW, C)
    o = o @ p["w_proj"] + p["b_proj"]
    x1 = x + o
    x1n = _layernorm(x1, p["ln2_g"], p["ln2_b"])
    x2 = x1 + _gelu_exact(x1n @ p["w1"] + p["b1"]) @ p["w2"] + p["b2"]
    return x2.reshape(B, H, W, C)


if __name__ == "__main__":
    params, xkey = make_params(jax.random.PRNGKey(0))
    x_in = jax.random.normal(xkey, (B, H, W, C), dtype=jnp.float32)

    kernel_args, (Rh, Rw) = prepare_kernel_args(params)
    bb = _batch_per_step()

    run = jax.jit(lambda x: global_attention_block(x, kernel_args, bb))
    out = jax.block_until_ready(run(x_in))

    ref = jax.block_until_ready(reference(x_in, params, Rh, Rw))
    max_err = float(jnp.max(jnp.abs(out - ref)))
    assert jnp.all(jnp.isfinite(out)), "non-finite output"
    assert max_err < 2e-3, f"mismatch vs reference: {max_err}"

    print("KERNEL_OK")
</pallas_src>

<mosaic_0001>
module attributes {stable_mosaic.version = 11 : i64} {
  func.func @block_kernel(%arg0: i32, %arg1: memref<1x64x32xf32, #tpu.memory_space<vmem>>, %arg2: memref<32x192xf32, #tpu.memory_space<vmem>>, %arg3: memref<8x192xf32, #tpu.memory_space<vmem>>, %arg4: memref<256x32xf32, #tpu.memory_space<vmem>>, %arg5: memref<32x256xf32, #tpu.memory_space<vmem>>, %arg6: memref<64x256xf32, #tpu.memory_space<vmem>>, %arg7: memref<64x256xf32, #tpu.memory_space<vmem>>, %arg8: memref<256x256xf32, #tpu.memory_space<vmem>>, %arg9: memref<256x256xf32, #tpu.memory_space<vmem>>, %arg10: memref<32x128xf32, #tpu.memory_space<vmem>>, %arg11: memref<128x32xf32, #tpu.memory_space<vmem>>, %arg12: memref<1x64x32xf32, #tpu.memory_space<vmem>>) attributes {dimension_semantics = [#tpu.dimension_semantics<parallel>], iteration_bounds = array<i64: 2>, scalar_prefetch = 0 : i64, scratch_operands = 0 : i64, tpu.core_type = #tpu.core_type<tc>, window_params = [{transform_indices = @transform_0, window_bounds = array<i64: 1, 64, 32>}, {pipeline_mode = #tpu.pipeline_mode<synchronous>, transform_indices = @transform_1, window_bounds = array<i64: 32, 192>}, {pipeline_mode = #tpu.pipeline_mode<synchronous>, transform_indices = @transform_2, window_bounds = array<i64: 8, 192>}, {pipeline_mode = #tpu.pipeline_mode<synchronous>, transform_indices = @transform_3, window_bounds = array<i64: 256, 32>}, {pipeline_mode = #tpu.pipeline_mode<synchronous>, transform_indices = @transform_4, window_bounds = array<i64: 32, 256>}, {pipeline_mode = #tpu.pipeline_mode<synchronous>, transform_indices = @transform_5, window_bounds = array<i64: 64, 256>}, {pipeline_mode = #tpu.pipeline_mode<synchronous>, transform_indices = @transform_6, window_bounds = array<i64: 64, 256>}, {pipeline_mode = #tpu.pipeline_mode<synchronous>, transform_indices = @transform_7, window_bounds = array<i64: 256, 256>}, {pipeline_mode = #tpu.pipeline_mode<synchronous>, transform_indices = @transform_8, window_bounds = array<i64: 256, 256>}, {pipeline_mode = #tpu.pipeline_mode<synchronous>, transform_indices = @transform_9, window_bounds = array<i64: 32, 128>}, {pipeline_mode = #tpu.pipeline_mode<synchronous>, transform_indices = @transform_10, window_bounds = array<i64: 128, 32>}, {transform_indices = @transform_11, window_bounds = array<i64: 1, 64, 32>}]} {
    %c0 = arith.constant 0 : index
    %c0_0 = arith.constant 0 : index
    %c0_1 = arith.constant 0 : index
    %0 = vector.load %arg1[%c0, %c0_0, %c0_1] : memref<1x64x32xf32, #tpu.memory_space<vmem>>, vector<1x64x32xf32>
    %1 = vector.shape_cast %0 : vector<1x64x32xf32> to vector<64x32xf32>
    %c0_2 = arith.constant 0 : index
    %c0_3 = arith.constant 0 : index
    %2 = vector.load %arg3[%c0_2, %c0_3] : memref<8x192xf32, #tpu.memory_space<vmem>>, vector<8x192xf32>
    %3 = vector.extract_strided_slice %2 {offsets = [0, 0], sizes = [1, 32], strides = [1, 1]} : vector<8x192xf32> to vector<1x32xf32>
    %4 = vector.extract_strided_slice %2 {offsets = [1, 0], sizes = [1, 32], strides = [1, 1]} : vector<8x192xf32> to vector<1x32xf32>
    %5 = vector.extract_strided_slice %2 {offsets = [2, 0], sizes = [1, 192], strides = [1, 1]} : vector<8x192xf32> to vector<1x192xf32>
    %6 = vector.extract_strided_slice %2 {offsets = [3, 0], sizes = [1, 32], strides = [1, 1]} : vector<8x192xf32> to vector<1x32xf32>
    %7 = vector.extract_strided_slice %2 {offsets = [4, 0], sizes = [1, 32], strides = [1, 1]} : vector<8x192xf32> to vector<1x32xf32>
    %8 = vector.extract_strided_slice %2 {offsets = [5, 0], sizes = [1, 32], strides = [1, 1]} : vector<8x192xf32> to vector<1x32xf32>
    %9 = vector.extract_strided_slice %2 {offsets = [6, 0], sizes = [1, 128], strides = [1, 1]} : vector<8x192xf32> to vector<1x128xf32>
    %10 = vector.extract_strided_slice %2 {offsets = [7, 0], sizes = [1, 32], strides = [1, 1]} : vector<8x192xf32> to vector<1x32xf32>
    %cst = arith.constant dense<0.000000e+00> : vector<64xf32>
    %11 = vector.multi_reduction <add>, %1, %cst [1] : vector<64x32xf32> to vector<64xf32>
    %12 = vector.shape_cast %11 : vector<64xf32> to vector<64x1xf32>
    %cst_4 = arith.constant 3.200000e+01 : f32
    %13 = vector.broadcast %cst_4 : f32 to vector<64x1xf32>
    %14 = arith.divf %12, %13 : vector<64x1xf32>
    %15 = vector.broadcast %14 : vector<64x1xf32> to vector<64x32xf32>
    %16 = arith.subf %1, %15 : vector<64x32xf32>
    %17 = arith.mulf %16, %16 : vector<64x32xf32>
    %cst_5 = arith.constant dense<0.000000e+00> : vector<64xf32>
    %18 = vector.multi_reduction <add>, %17, %cst_5 [1] : vector<64x32xf32> to vector<64xf32>
    %19 = vector.shape_cast %18 : vector<64xf32> to vector<64x1xf32>
    %cst_6 = arith.constant 3.200000e+01 : f32
    %20 = vector.broadcast %cst_6 : f32 to vector<64x1xf32>
    %21 = arith.divf %19, %20 : vector<64x1xf32>
    %22 = vector.broadcast %14 : vector<64x1xf32> to vector<64x32xf32>
    %23 = arith.subf %1, %22 : vector<64x32xf32>
    %cst_7 = arith.constant 9.99999997E-7 : f32
    %24 = vector.broadcast %cst_7 : f32 to vector<64x1xf32>
    %25 = arith.addf %21, %24 : vector<64x1xf32>
    %26 = math.rsqrt %25 : vector<64x1xf32>
    %27 = vector.broadcast %26 : vector<64x1xf32> to vector<64x32xf32>
    %28 = arith.mulf %23, %27 : vector<64x32xf32>
    %29 = vector.broadcast %3 : vector<1x32xf32> to vector<64x32xf32>
    %30 = arith.mulf %28, %29 : vector<64x32xf32>
    %31 = vector.broadcast %4 : vector<1x32xf32> to vector<64x32xf32>
    %32 = arith.addf %30, %31 : vector<64x32xf32>
    %c0_8 = arith.constant 0 : index
    %c0_9 = arith.constant 0 : index
    %33 = vector.load %arg2[%c0_8, %c0_9] : memref<32x192xf32, #tpu.memory_space<vmem>>, vector<32x192xf32>
    %cst_10 = arith.constant dense<0.000000e+00> : vector<64x192xf32>
    %34 = tpu.matmul %32, %33, %cst_10 {dimension_numbers = #tpu.dot_dimension_numbers<[1], [0], [0], [1], [0, 0, 1, 1], [], []>} : vector<64x32xf32>, vector<32x192xf32>, vector<64x192xf32> -> vector<64x192xf32>
    %35 = vector.broadcast %5 : vector<1x192xf32> to vector<64x192xf32>
    %36 = arith.addf %34, %35 : vector<64x192xf32>
    %c0_11 = arith.constant 0 : index
    %c0_12 = arith.constant 0 : index
    %37 = vector.load %arg4[%c0_11, %c0_12] : memref<256x32xf32, #tpu.memory_space<vmem>>, vector<256x32xf32>
    %c0_13 = arith.constant 0 : index
    %c0_14 = arith.constant 0 : index
    %38 = vector.load %arg5[%c0_13, %c0_14] : memref<32x256xf32, #tpu.memory_space<vmem>>, vector<32x256xf32>
    %c0_15 = arith.constant 0 : index
    %c0_16 = arith.constant 0 : index
    %39 = vector.load %arg6[%c0_15, %c0_16] : memref<64x256xf32, #tpu.memory_space<vmem>>, vector<64x256xf32>
    %c0_17 = arith.constant 0 : index
    %c0_18 = arith.constant 0 : index
    %40 = vector.load %arg7[%c0_17, %c0_18] : memref<64x256xf32, #tpu.memory_space<vmem>>, vector<64x256xf32>
    %c0_19 = arith.constant 0 : index
    %c0_20 = arith.constant 0 : index
    %41 = vector.load %arg8[%c0_19, %c0_20] : memref<256x256xf32, #tpu.memory_space<vmem>>, vector<256x256xf32>
    %c0_21 = arith.constant 0 : index
    %c0_22 = arith.constant 0 : index
    %42 = vector.load %arg9[%c0_21, %c0_22] : memref<256x256xf32, #tpu.memory_space<vmem>>, vector<256x256xf32>
    %43 = vector.extract_strided_slice %36 {offsets = [0, 0], sizes = [64, 32], strides = [1, 1]} : vector<64x192xf32> to vector<64x32xf32>
    %44 = vector.extract_strided_slice %36 {offsets = [0, 32], sizes = [64, 32], strides = [1, 1]} : vector<64x192xf32> to vector<64x32xf32>
    %45 = vector.extract_strided_slice %36 {offsets = [0, 64], sizes = [64, 128], strides = [1, 1]} : vector<64x192xf32> to vector<64x128xf32>
    %46 = tpu.concatenate %44, %44, %44, %44 in 0 : vector<64x32xf32>, vector<64x32xf32>, vector<64x32xf32>, vector<64x32xf32> -> vector<256x32xf32>
    %47 = arith.mulf %46, %37 : vector<256x32xf32>
    %cst_23 = arith.constant dense<0.000000e+00> : vector<64x256xf32>
    %48 = tpu.matmul %43, %47, %cst_23 {dimension_numbers = #tpu.dot_dimension_numbers<[1], [1], [0], [0], [0, 0, 1, 0], [], []>} : vector<64x32xf32>, vector<256x32xf32>, vector<64x256xf32> -> vector<64x256xf32>
    %cst_24 = arith.constant dense<0.000000e+00> : vector<64x256xf32>
    %49 = tpu.matmul %43, %38, %cst_24 {dimension_numbers = #tpu.dot_dimension_numbers<[1], [0], [0], [1], [0, 0, 1, 1], [], []>} : vector<64x32xf32>, vector<32x256xf32>, vector<64x256xf32> -> vector<64x256xf32>
    %50 = arith.mulf %49, %39 : vector<64x256xf32>
    %cst_25 = arith.constant dense<0.000000e+00> : vector<64x256xf32>
    %51 = tpu.matmul %50, %41, %cst_25 {dimension_numbers = #tpu.dot_dimension_numbers<[1], [0], [0], [1], [0, 0, 1, 1], [], []>} : vector<64x256xf32>, vector<256x256xf32>, vector<64x256xf32> -> vector<64x256xf32>
    %52 = arith.addf %48, %51 : vector<64x256xf32>
    %53 = arith.mulf %49, %40 : vector<64x256xf32>
    %cst_26 = arith.constant dense<0.000000e+00> : vector<64x256xf32>
    %54 = tpu.matmul %53, %42, %cst_26 {dimension_numbers = #tpu.dot_dimension_numbers<[1], [0], [0], [1], [0, 0, 1, 1], [], []>} : vector<64x256xf32>, vector<256x256xf32>, vector<64x256xf32> -> vector<64x256xf32>
    %55 = arith.addf %52, %54 : vector<64x256xf32>
    %cst_27 = arith.constant dense<0xFF800000> : vector<64xf32>
    %56 = vector.multi_reduction <maximumf>, %55, %cst_27 [1] : vector<64x256xf32> to vector<64xf32>
    %57 = vector.shape_cast %56 : vector<64xf32> to vector<64x1xf32>
    %58 = vector.broadcast %57 : vector<64x1xf32> to vector<64x256xf32>
    %59 = arith.subf %55, %58 : vector<64x256xf32>
    %60 = math.exp %59 : vector<64x256xf32>
    %61 = vector.extract_strided_slice %60 {offsets = [0, 0], sizes = [64, 64], strides = [1, 1]} : vector<64x256xf32> to vector<64x64xf32>
    %cst_28 = arith.constant dense<0.000000e+00> : vector<64xf32>
    %62 = vector.multi_reduction <add>, %61, %cst_28 [1] : vector<64x64xf32> to vector<64xf32>
    %63 = vector.shape_cast %62 : vector<64xf32> to vector<64x1xf32>
    %64 = tpu.reciprocal %63 {approx = true} : vector<64x1xf32> -> vector<64x1xf32>
    %65 = vector.extract_strided_slice %45 {offsets = [0, 0], sizes = [64, 32], strides = [1, 1]} : vector<64x128xf32> to vector<64x32xf32>
    %cst_29 = arith.constant dense<0.000000e+00> : vector<64x32xf32>
    %66 = tpu.matmul %61, %65, %cst_29 {dimension_numbers = #tpu.dot_dimension_numbers<[1], [0], [0], [1], [0, 0, 1, 1], [], []>} : vector<64x64xf32>, vector<64x32xf32>, vector<64x32xf32> -> vector<64x32xf32>
    %67 = vector.broadcast %64 : vector<64x1xf32> to vector<64x32xf32>
    %68 = arith.mulf %66, %67 : vector<64x32xf32>
    %69 = vector.extract_strided_slice %60 {offsets = [0, 64], sizes = [64, 64], strides = [1, 1]} : vector<64x256xf32> to vector<64x64xf32>
    %cst_30 = arith.constant dense<0.000000e+00> : vector<64xf32>
    %70 = vector.multi_reduction <add>, %69, %cst_30 [1] : vector<64x64xf32> to vector<64xf32>
    %71 = vector.shape_cast %70 : vector<64xf32> to vector<64x1xf32>
    %72 = tpu.reciprocal %71 {approx = true} : vector<64x1xf32> -> vector<64x1xf32>
    %73 = vector.extract_strided_slice %45 {offsets = [0, 32], sizes = [64, 32], strides = [1, 1]} : vector<64x128xf32> to vector<64x32xf32>
    %cst_31 = arith.constant dense<0.000000e+00> : vector<64x32xf32>
    %74 = tpu.matmul %69, %73, %cst_31 {dimension_numbers = #tpu.dot_dimension_numbers<[1], [0], [0], [1], [0, 0, 1, 1], [], []>} : vector<64x64xf32>, vector<64x32xf32>, vector<64x32xf32> -> vector<64x32xf32>
    %75 = vector.broadcast %72 : vector<64x1xf32> to vector<64x32xf32>
    %76 = arith.mulf %74, %75 : vector<64x32xf32>
    %77 = arith.addf %68, %76 : vector<64x32xf32>
    %78 = vector.extract_strided_slice %60 {offsets = [0, 128], sizes = [64, 64], strides = [1, 1]} : vector<64x256xf32> to vector<64x64xf32>
    %cst_32 = arith.constant dense<0.000000e+00> : vector<64xf32>
    %79 = vector.multi_reduction <add>, %78, %cst_32 [1] : vector<64x64xf32> to vector<64xf32>
    %80 = vector.shape_cast %79 : vector<64xf32> to vector<64x1xf32>
    %81 = tpu.reciprocal %80 {approx = true} : vector<64x1xf32> -> vector<64x1xf32>
    %82 = vector.extract_strided_slice %45 {offsets = [0, 64], sizes = [64, 32], strides = [1, 1]} : vector<64x128xf32> to vector<64x32xf32>
    %cst_33 = arith.constant dense<0.000000e+00> : vector<64x32xf32>
    %83 = tpu.matmul %78, %82, %cst_33 {dimension_numbers = #tpu.dot_dimension_numbers<[1], [0], [0], [1], [0, 0, 1, 1], [], []>} : vector<64x64xf32>, vector<64x32xf32>, vector<64x32xf32> -> vector<64x32xf32>
    %84 = vector.broadcast %81 : vector<64x1xf32> to vector<64x32xf32>
    %85 = arith.mulf %83, %84 : vector<64x32xf32>
    %86 = arith.addf %77, %85 : vector<64x32xf32>
    %87 = vector.extract_strided_slice %60 {offsets = [0, 192], sizes = [64, 64], strides = [1, 1]} : vector<64x256xf32> to vector<64x64xf32>
    %cst_34 = arith.constant dense<0.000000e+00> : vector<64xf32>
    %88 = vector.multi_reduction <add>, %87, %cst_34 [1] : vector<64x64xf32> to vector<64xf32>
    %89 = vector.shape_cast %88 : vector<64xf32> to vector<64x1xf32>
    %90 = tpu.reciprocal %89 {approx = true} : vector<64x1xf32> -> vector<64x1xf32>
    %91 = vector.extract_strided_slice %45 {offsets = [0, 96], sizes = [64, 32], strides = [1, 1]} : vector<64x128xf32> to vector<64x32xf32>
    %cst_35 = arith.constant dense<0.000000e+00> : vector<64x32xf32>
    %92 = tpu.matmul %87, %91, %cst_35 {dimension_numbers = #tpu.dot_dimension_numbers<[1], [0], [0], [1], [0, 0, 1, 1], [], []>} : vector<64x64xf32>, vector<64x32xf32>, vector<64x32xf32> -> vector<64x32xf32>
    %93 = vector.broadcast %90 : vector<64x1xf32> to vector<64x32xf32>
    %94 = arith.mulf %92, %93 : vector<64x32xf32>
    %95 = arith.addf %86, %94 : vector<64x32xf32>
    %96 = arith.addf %1, %95 : vector<64x32xf32>
    %97 = vector.broadcast %6 : vector<1x32xf32> to vector<64x32xf32>
    %98 = arith.addf %96, %97 : vector<64x32xf32>
    %cst_36 = arith.constant dense<0.000000e+00> : vector<64xf32>
    %99 = vector.multi_reduction <add>, %98, %cst_36 [1] : vector<64x32xf32> to vector<64xf32>
    %100 = vector.shape_cast %99 : vector<64xf32> to vector<64x1xf32>
    %cst_37 = arith.constant 3.200000e+01 : f32
    %101 = vector.broadcast %cst_37 : f32 to vector<64x1xf32>
    %102 = arith.divf %100, %101 : vector<64x1xf32>
    %103 = vector.broadcast %102 : vector<64x1xf32> to vector<64x32xf32>
    %104 = arith.subf %98, %103 : vector<64x32xf32>
    %105 = arith.mulf %104, %104 : vector<64x32xf32>
    %cst_38 = arith.constant dense<0.000000e+00> : vector<64xf32>
    %106 = vector.multi_reduction <add>, %105, %cst_38 [1] : vector<64x32xf32> to vector<64xf32>
    %107 = vector.shape_cast %106 : vector<64xf32> to vector<64x1xf32>
    %cst_39 = arith.constant 3.200000e+01 : f32
    %108 = vector.broadcast %cst_39 : f32 to vector<64x1xf32>
    %109 = arith.divf %107, %108 : vector<64x1xf32>
    %110 = vector.broadcast %102 : vector<64x1xf32> to vector<64x32xf32>
    %111 = arith.subf %98, %110 : vector<64x32xf32>
    %cst_40 = arith.constant 9.99999997E-7 : f32
    %112 = vector.broadcast %cst_40 : f32 to vector<64x1xf32>
    %113 = arith.addf %109, %112 : vector<64x1xf32>
    %114 = math.rsqrt %113 : vector<64x1xf32>
    %115 = vector.broadcast %114 : vector<64x1xf32> to vector<64x32xf32>
    %116 = arith.mulf %111, %115 : vector<64x32xf32>
    %117 = vector.broadcast %7 : vector<1x32xf32> to vector<64x32xf32>
    %118 = arith.mulf %116, %117 : vector<64x32xf32>
    %119 = vector.broadcast %8 : vector<1x32xf32> to vector<64x32xf32>
    %120 = arith.addf %118, %119 : vector<64x32xf32>
    %c0_41 = arith.constant 0 : index
    %c0_42 = arith.constant 0 : index
    %121 = vector.load %arg10[%c0_41, %c0_42] : memref<32x128xf32, #tpu.memory_space<vmem>>, vector<32x128xf32>
    %cst_43 = arith.constant dense<0.000000e+00> : vector<64x128xf32>
    %122 = tpu.matmul %120, %121, %cst_43 {dimension_numbers = #tpu.dot_dimension_numbers<[1], [0], [0], [1], [0, 0, 1, 1], [], []>} : vector<64x32xf32>, vector<32x128xf32>, vector<64x128xf32> -> vector<64x128xf32>
    %123 = vector.broadcast %9 : vector<1x128xf32> to vector<64x128xf32>
    %124 = arith.addf %122, %123 : vector<64x128xf32>
    %cst_44 = arith.constant 5.000000e-01 : f32
    %125 = vector.broadcast %cst_44 : f32 to vector<64x128xf32>
    %126 = arith.mulf %125, %124 : vector<64x128xf32>
    %cst_45 = arith.constant 0.707106769 : f32
    %127 = vector.broadcast %cst_45 : f32 to vector<64x128xf32>
    %128 = arith.mulf %124, %127 : vector<64x128xf32>
    %129 = math.erf %128 : vector<64x128xf32>
    %cst_46 = arith.constant 1.000000e+00 : f32
    %130 = vector.broadcast %cst_46 : f32 to vector<64x128xf32>
    %131 = arith.addf %130, %129 : vector<64x128xf32>
    %132 = arith.mulf %126, %131 : vector<64x128xf32>
    %c0_47 = arith.constant 0 : index
    %c0_48 = arith.constant 0 : index
    %133 = vector.load %arg11[%c0_47, %c0_48] : memref<128x32xf32, #tpu.memory_space<vmem>>, vector<128x32xf32>
    %cst_49 = arith.constant dense<0.000000e+00> : vector<64x32xf32>
    %134 = tpu.matmul %132, %133, %cst_49 {dimension_numbers = #tpu.dot_dimension_numbers<[1], [0], [0], [1], [0, 0, 1, 1], [], []>} : vector<64x128xf32>, vector<128x32xf32>, vector<64x32xf32> -> vector<64x32xf32>
    %135 = arith.addf %98, %134 : vector<64x32xf32>
    %136 = vector.broadcast %10 : vector<1x32xf32> to vector<64x32xf32>
    %137 = arith.addf %135, %136 : vector<64x32xf32>
    %c0_50 = arith.constant 0 : index
    %c0_51 = arith.constant 0 : index
    %c0_52 = arith.constant 0 : index
    %138 = vector.load %arg12[%c0_50, %c0_51, %c0_52] : memref<1x64x32xf32, #tpu.memory_space<vmem>>, vector<1x64x32xf32>
    %139 = vector.shape_cast %138 : vector<1x64x32xf32> to vector<64x32xf32>
    %140 = vector.shape_cast %137 : vector<64x32xf32> to vector<1x64x32xf32>
    tpu.vector_store %arg12[%c0_50, %c0_51, %c0_52], %140 {strides = array<i32>} : memref<1x64x32xf32, #tpu.memory_space<vmem>>, vector<1x64x32xf32>,
    return
  }
  func.func @transform_0(%arg0: i32) -> (i32, i32, i32) {
    %c0_i32 = arith.constant 0 : i32
    %c0_i32_0 = arith.constant 0 : i32
    %c0_i32_1 = arith.constant 0 : i32
    return %arg0, %c0_i32, %c0_i32_0 : i32, i32, i32
  }
  func.func @transform_1(%arg0: i32) -> (i32, i32) {
    %c0_i32 = arith.constant 0 : i32
    %c0_i32_0 = arith.constant 0 : i32
    %c0_i32_1 = arith.constant 0 : i32
    return %c0_i32, %c0_i32_0 : i32, i32
  }
  func.func @transform_2(%arg0: i32) -> (i32, i32) {
    %c0_i32 = arith.constant 0 : i32
    %c0_i32_0 = arith.constant 0 : i32
    %c0_i32_1 = arith.constant 0 : i32
    return %c0_i32, %c0_i32_0 : i32, i32
  }
  func.func @transform_3(%arg0: i32) -> (i32, i32) {
    %c0_i32 = arith.constant 0 : i32
    %c0_i32_0 = arith.constant 0 : i32
    %c0_i32_1 = arith.constant 0 : i32
    return %c0_i32, %c0_i32_0 : i32, i32
  }
  func.func @transform_4(%arg0: i32) -> (i32, i32) {
    %c0_i32 = arith.constant 0 : i32
    %c0_i32_0 = arith.constant 0 : i32
    %c0_i32_1 = arith.constant 0 : i32
    return %c0_i32, %c0_i32_0 : i32, i32
  }
  func.func @transform_5(%arg0: i32) -> (i32, i32) {
    %c0_i32 = arith.constant 0 : i32
    %c0_i32_0 = arith.constant 0 : i32
    %c0_i32_1 = arith.constant 0 : i32
    return %c0_i32, %c0_i32_0 : i32, i32
  }
  func.func @transform_6(%arg0: i32) -> (i32, i32) {
    %c0_i32 = arith.constant 0 : i32
    %c0_i32_0 = arith.constant 0 : i32
    %c0_i32_1 = arith.constant 0 : i32
    return %c0_i32, %c0_i32_0 : i32, i32
  }
  func.func @transform_7(%arg0: i32) -> (i32, i32) {
    %c0_i32 = arith.constant 0 : i32
    %c0_i32_0 = arith.constant 0 : i32
    %c0_i32_1 = arith.constant 0 : i32
    return %c0_i32, %c0_i32_0 : i32, i32
  }
  func.func @transform_8(%arg0: i32) -> (i32, i32) {
    %c0_i32 = arith.constant 0 : i32
    %c0_i32_0 = arith.constant 0 : i32
    %c0_i32_1 = arith.constant 0 : i32
    return %c0_i32, %c0_i32_0 : i32, i32
  }
  func.func @transform_9(%arg0: i32) -> (i32, i32) {
    %c0_i32 = arith.constant 0 : i32
    %c0_i32_0 = arith.constant 0 : i32
    %c0_i32_1 = arith.constant 0 : i32
    return %c0_i32, %c0_i32_0 : i32, i32
  }
  func.func @transform_10(%arg0: i32) -> (i32, i32) {
    %c0_i32 = arith.constant 0 : i32
    %c0_i32_0 = arith.constant 0 : i32
    %c0_i32_1 = arith.constant 0 : i32
    return %c0_i32, %c0_i32_0 : i32, i32
  }
  func.func @transform_11(%arg0: i32) -> (i32, i32, i32) {
    %c0_i32 = arith.constant 0 : i32
    %c0_i32_0 = arith.constant 0 : i32
    %c0_i32_1 = arith.constant 0 : i32
    return %arg0, %c0_i32, %c0_i32_0 : i32, i32, i32
  }
}

</mosaic_0001>

<bundles_post_ra>
// kernel: _lambda_.1
= control target key start
LH: loop header
LB: loop body
LE: loop exit
PB: predicated region body
PF: predicated region fallthrough
CT: control target
= control target key end

     0   :  { %s6575_s0 = inlined_call_operand.hbm [shape: f32[2,64,32], index: 0, kind: input, shape index: {}]   ;;  %s6576_s1 = inlined_call_operand.hbm [shape: f32[32,192], index: 1, kind: input, shape index: {}]   ;;  %s6577_s2 = inlined_call_operand.hbm [shape: f32[8,192], index: 2, kind: input, shape index: {}]   ;;  %s6578_s3 = inlined_call_operand.hbm [shape: f32[256,32], index: 3, kind: input, shape index: {}]   ;;  %s6579_s4 = inlined_call_operand.hbm [shape: f32[32,256], index: 4, kind: input, shape index: {}]   ;;  %s6580_s5 = inlined_call_operand.hbm [shape: f32[64,256], index: 5, kind: input, shape index: {}]   ;;  %s6581_s6 = inlined_call_operand.hbm [shape: f32[64,256], index: 6, kind: input, shape index: {}]   ;;  %s6582_s7 = inlined_call_operand.hbm [shape: f32[256,256], index: 7, kind: input, shape index: {}]   ;;  %s6583_s8 = inlined_call_operand.hbm [shape: f32[256,256], index: 8, kind: input, shape index: {}]   ;;  %s6584_s9 = inlined_call_operand.vmem [shape: f32[32,128], index: 9, kind: input, shape index: {}]   ;;  %s6585_s10 = inlined_call_operand.hbm [shape: f32[128,32], index: 10, kind: input, shape index: {}]   ;;  %s6586_s11 = inlined_call_operand.hbm [shape: f32[2,64,32], index: 11, kind: output, shape index: {}]  }
   0x1   :  { %6620 = sst [smem:[#allocation48_spill]] %s6576_s1 }
   0x2   :  { %6621 = sst [smem:[#allocation49_spill]] %s6577_s2 }
   0x3   :  { %6622 = sst [smem:[#allocation50_spill]] %s6584_s9 }
   0x4   :  { %6623 = sst [smem:[#allocation51_spill]] %s6586_s11 }
   0x5   :  { %16 = vsyncpa [#allocation3], 0 }
   0x6   :  { %18 = vsyncpa [#allocation3 + $0x1], 0 }
   0x7   :  { %19 = vsyncpa [#allocation6], 0 }
   0x8   :  { %20 = vsyncpa [#allocation9], 0 }
   0x9   :  { %21 = vsyncpa [#allocation12], 0 }
   0xa   :  { %22 = vsyncpa [#allocation15], 0 }
   0xb   :  { %23 = vsyncpa [#allocation18], 0 }
   0xc   :  { %24 = vsyncpa [#allocation4], 0 }
   0xd   :  { %26 = vsyncpa [#allocation4 + $0x1], 0  ;;  %s5108_s17 = smov 0   ;;  %s5110_s18 = smov 0  }
   0xe   :  { %s5112_s19 = smov 0   ;;  %s5114_s20 = smov 0  }
   0xf LB: > { %s5027_s21 = smov [#allocation5]   ;;  %s5129_s23 = sadd.s32 4294967295, %s5025_s20   ;;  %s5025_s20 = sphi %s5114_s20, %s6704_s20   ;;  %s5021_s19 = sphi %s5112_s19, %s6703_s19   ;;  %s5017_s18 = sphi %s5110_s18, %s6702_s18   ;;  %s5013_s17 = sphi %s5108_s17, %s6701_s17  }
  0x10   : > { %s311_s22 = sshll.u32 %s5027_s21, 4  ;;  %p3404_p0 = scmp.ge.s32.totalorder %s5025_s20, 1  ;;  %s5134_s22 = int_to_ptr.vmem [resolvable:$true] %s311_s22 }
  0x11   : > { %p6592_p1 = scmp.eq.s32.totalorder %s5129_s23, 0  ;;  %p299_p2 = scmp.lt.s32.totalorder %s5025_s20, 3 }
  0x12   : > { %s5028_s25 = smov [#allocation8]   ;;  %s5029_s28 = smov [#allocation11]  }
  0x13   : > { %p5136_p3 = pnand %p3404_p0, %p299_p2  ;;  %s335_s26 = sshll.u32 %s5028_s25, 4  ;;  %s5149_s26 = int_to_ptr.vmem [resolvable:$true] %s335_s26 }
  0x14   : > { %s5151_s29 = sshll.u32 %s5029_s28, 4  ;;  %s6627_s1 = sld [smem:[#allocation48_spill]]  ;;  %s362_s29 = int_to_ptr.vmem [resolvable:$true] %s5151_s29 }
  0x15   : > { %s6624_s24 = scalar_select %p5136_p3, 1, 0 }
  0x16   : > { %p4257_p5 = pneg %p5136_p3 }
  0x17   : > { %6625 = sst [smem:[#allocation27_spill]] %s6624_s24 }
  0x18   : > { %p5145_p6 = pnand %p4257_p5, %p6592_p1 }
  0x1a   : > { %s4657_s13 = scalar_lea.hbm %s6627_s1, 1024  ;;  %p5161_p8 = pneg %p5145_p6 }
  0x1b   : > { %p4658_p7 = scmp.ne.s32.totalorder %s6627_s1, %s4657_s13  ;;  %p4664_p11 = scmp.lt.u32.totalorder %s4657_s13, %s6627_s1 }
  0x1d   : > { %p4660_p9 = pnand %p5161_p8, %p4658_p7 }
  0x1f   : > { %p4661_p10 = pneg %p4660_p9 }
  0x21   : > { %p4666_p12 = pnand %p4664_p11, %p4661_p10 }
  0x23   : > { %4669 = shalt.err (!%p4666_p12)
}
  0x24   : > { %s4670_s28 = scalar_lea.vmem %s5134_s22, 1024  ;;  %p4678_p5 = scmp.lt.s32.totalorder %s5134_s22, %s5134_s22 }
  0x25   : > { %p4671_p13 = scmp.ne.s32.totalorder %s5134_s22, %s4670_s28  ;;  %p4679_p4 = scmp.lt.s32.totalorder %s4670_s28, %s4670_s28 }
  0x27   : > { %p4673_p0 = pnand %p4671_p13, %p5161_p8  ;;  %p4680_p7 = por %p4679_p4, %p4678_p5 }
  0x29   : > { %p4674_p2 = pneg %p4673_p0 }
  0x2b   : > { %p4681_p9 = pnand %p4680_p7, %p4674_p2 }
  0x2d   : > { %4684 = shalt.err (!%p4681_p9)
}
  0x2e   : > { %s6590_s30 = smov 256   ;;  %s5031_s12 = smov 16  }
  0x2f   : > { %4260 = dma.hbm_to_vmem [thread:$0]  (!%p5145_p6), %s6627_s1, 1024, %s5134_s22, [#allocation6], %s6590_s30, %s6590_s30, %s5031_s12  }
  0x30   : > { %s4685_s25 = scalar_lea.hbm %s6578_s3, 4096 }
  0x31   : > { %p4686_p4 = scmp.ne.s32.totalorder %s6578_s3, %s4685_s25  ;;  %p4692_p12 = scmp.lt.u32.totalorder %s4685_s25, %s6578_s3 }
  0x33   : > { %p4688_p10 = pnand %p4686_p4, %p5161_p8 }
  0x35   : > { %p4689_p11 = pneg %p4688_p10 }
  0x37   : > { %p4694_p13 = pnand %p4692_p12, %p4689_p11 }
  0x39   : > { %4697 = shalt.err (!%p4694_p13)
}
  0x3a   : > { %s4698_s22 = scalar_lea.vmem %s5149_s26, 4096  ;;  %p4706_p7 = scmp.lt.s32.totalorder %s5149_s26, %s5149_s26 }
  0x3b   : > { %p4699_p0 = scmp.ne.s32.totalorder %s5149_s26, %s4698_s22  ;;  %p4707_p9 = scmp.lt.s32.totalorder %s4698_s22, %s4698_s22 }
  0x3d   : > { %p4701_p2 = pnand %p4699_p0, %p5161_p8  ;;  %p4708_p4 = por %p4707_p9, %p4706_p7 }
  0x3f   : > { %p4702_p5 = pneg %p4701_p2 }
  0x41   : > { %p4709_p10 = pnand %p4708_p4, %p4702_p5 }
  0x43   : > { %4712 = shalt.err (!%p4709_p10)
}
  0x44   : > { %s6594_s11 = smov 128   ;;  %s6596_s9 = smov 8  }
  0x45   : > { %4266 = dma.hbm_to_vmem [thread:$0]  (!%p5145_p6), %s6578_s3, 4096, %s5149_s26, [#allocation9], %s6594_s11, %s6594_s11, %s6596_s9  }
  0x46   : > { %s4713_s21 = scalar_lea.hbm %s6580_s5, 2048 }
  0x47   : > { %p4714_p11 = scmp.ne.s32.totalorder %s6580_s5, %s4713_s21  ;;  %p4720_p0 = scmp.lt.u32.totalorder %s4713_s21, %s6580_s5 }
  0x49   : > { %p4716_p12 = pnand %p4714_p11, %p5161_p8 }
  0x4b   : > { %p4717_p13 = pneg %p4716_p12 }
  0x4d   : > { %p4722_p2 = pnand %p4720_p0, %p4717_p13 }
  0x4f   : > { %4725 = shalt.err (!%p4722_p2)
}
  0x50   : > { %s4726_s24 = scalar_lea.vmem %s362_s29, 2048  ;;  %p4734_p4 = scmp.lt.s32.totalorder %s362_s29, %s362_s29 }
  0x51   : > { %p4727_p5 = scmp.ne.s32.totalorder %s362_s29, %s4726_s24  ;;  %p4735_p10 = scmp.lt.s32.totalorder %s4726_s24, %s4726_s24 }
  0x53   : > { %p4729_p7 = pnand %p4727_p5, %p5161_p8  ;;  %p4736_p1 = por %p4735_p10, %p4734_p4 }
  0x55   : > { %p4730_p9 = pneg %p4729_p7 }
  0x57   : > { %p4737_p3 = pnand %p4736_p1, %p4730_p9 }
  0x59   : > { %4740 = shalt.err (!%p4737_p3)
}
  0x5a   : > { %s6629_s26 = smov 256   ;;  %s5034_s14 = smov [#allocation14]  }
  0x5b   : > { %4272 = dma.hbm_to_vmem [thread:$0]  (!%p5145_p6), %s6580_s5, 2048, %s362_s29, [#allocation12], %s6629_s26, %s6629_s26, %s5031_s12  }
  0x5c   : > { %s387_s15 = sshll.u32 %s5034_s14, 4  ;;  %s5035_s21 = smov [#allocation7]   ;;  %s388_s15 = int_to_ptr.vmem [resolvable:$true] %s387_s15 }
  0x5d   : > { %s325_s25 = sshll.u32 %s5035_s21, 4  ;;  %s4741_s24 = scalar_lea.hbm %s6582_s7, 8192  ;;  %s326_s25 = int_to_ptr.vmem [resolvable:$true] %s325_s25 }
  0x5e   : > { %p4742_p1 = scmp.ne.s32.totalorder %s6582_s7, %s4741_s24  ;;  %p4748_p12 = scmp.lt.u32.totalorder %s4741_s24, %s6582_s7 }
  0x60   : > { %p4744_p3 = pnand %p4742_p1, %p5161_p8 }
  0x62   : > { %p4745_p11 = pneg %p4744_p3 }
  0x64   : > { %p4750_p13 = pnand %p4748_p12, %p4745_p11 }
  0x66   : > { %4753 = shalt.err (!%p4750_p13)
}
  0x67   : > { %s4754_s29 = scalar_lea.vmem %s388_s15, 8192  ;;  %p4762_p7 = scmp.lt.s32.totalorder %s388_s15, %s388_s15 }
  0x68   : > { %p4755_p0 = scmp.ne.s32.totalorder %s388_s15, %s4754_s29  ;;  %p4763_p9 = scmp.lt.s32.totalorder %s4754_s29, %s4754_s29 }
  0x6a   : > { %p4757_p2 = pnand %p4755_p0, %p5161_p8  ;;  %p4764_p4 = por %p4763_p9, %p4762_p7 }
  0x6c   : > { %p4758_p5 = pneg %p4757_p2 }
  0x6e   : > { %p4765_p10 = pnand %p4764_p4, %p4758_p5 }
  0x70   : > { %4768 = shalt.err (!%p4765_p10)
}
  0x71   : > { %4278 = dma.hbm_to_vmem [thread:$0]  (!%p5145_p6), %s6582_s7, 8192, %s388_s15, [#allocation15], %s6629_s26, %s6629_s26, %s5031_s12  }
  0x72   : > { %s6630_s2 = sld [smem:[#allocation49_spill]] }
  0x78   : > { %s4769_s14 = scalar_lea.hbm %s6630_s2, 256 }
  0x79   : > { %p4770_p1 = scmp.ne.s32.totalorder %s6630_s2, %s4769_s14  ;;  %p4776_p12 = scmp.lt.u32.totalorder %s4769_s14, %s6630_s2 }
  0x7b   : > { %p4772_p3 = pnand %p4770_p1, %p5161_p8 }
  0x7d   : > { %p4773_p11 = pneg %p4772_p3 }
  0x7f   : > { %p4778_p13 = pnand %p4776_p12, %p4773_p11 }
  0x81   : > { %4781 = shalt.err (!%p4778_p13)
}
  0x82   : > { %s4782_s30 = scalar_lea.vmem %s326_s25, 256  ;;  %p4790_p7 = scmp.lt.s32.totalorder %s326_s25, %s326_s25 }
  0x83   : > { %p4783_p0 = scmp.ne.s32.totalorder %s326_s25, %s4782_s30  ;;  %p4791_p9 = scmp.lt.s32.totalorder %s4782_s30, %s4782_s30 }
  0x85   : > { %p4785_p2 = pnand %p4783_p0, %p5161_p8  ;;  %p4792_p4 = por %p4791_p9, %p4790_p7 }
  0x87   : > { %p4786_p5 = pneg %p4785_p2 }
  0x89   : > { %p4793_p10 = pnand %p4792_p4, %p4786_p5 }
  0x8b   : > { %4796 = shalt.err (!%p4793_p10)
}
  0x8c   : > { %4263 = dma.hbm_to_vmem [thread:$0]  (!%p5145_p6), %s6630_s2, 256, %s326_s25, [#allocation6]  }
  0x8d   : > { %s5036_s1 = smov [#allocation10]   ;;  %s5037_s9 = smov [#allocation13]  }
  0x8e   : > { %s348_s11 = sshll.u32 %s5036_s1, 4  ;;  %s374_s13 = sshll.u32 %s5037_s9, 4  ;;  %s349_s11 = int_to_ptr.vmem [resolvable:$true] %s348_s11  ;;  %s375_s13 = int_to_ptr.vmem [resolvable:$true] %s374_s13 }
  0x8f   : > { %s4797_s28 = scalar_lea.hbm %s6579_s4, 1024 }
  0x90   : > { %p4798_p1 = scmp.ne.s32.totalorder %s6579_s4, %s4797_s28  ;;  %p4804_p12 = scmp.lt.u32.totalorder %s4797_s28, %s6579_s4 }
  0x92   : > { %p4800_p3 = pnand %p4798_p1, %p5161_p8 }
  0x94   : > { %p4801_p11 = pneg %p4800_p3 }
  0x96   : > { %p4806_p13 = pnand %p4804_p12, %p4801_p11 }
  0x98   : > { %4809 = shalt.err (!%p4806_p13)
}
  0x99   : > { %s4810_s25 = scalar_lea.vmem %s349_s11, 1024  ;;  %p4818_p7 = scmp.lt.s32.totalorder %s349_s11, %s349_s11 }
  0x9a   : > { %p4811_p0 = scmp.ne.s32.totalorder %s349_s11, %s4810_s25  ;;  %p4819_p9 = scmp.lt.s32.totalorder %s4810_s25, %s4810_s25 }
  0x9c   : > { %p4813_p2 = pnand %p4811_p0, %p5161_p8  ;;  %p4820_p4 = por %p4819_p9, %p4818_p7 }
  0x9e   : > { %p4814_p5 = pneg %p4813_p2 }
  0xa0   : > { %p4821_p10 = pnand %p4820_p4, %p4814_p5 }
  0xa2   : > { %4824 = shalt.err (!%p4821_p10)
}
  0xa3   : > { %4269 = dma.hbm_to_vmem [thread:$0]  (!%p5145_p6), %s6579_s4, 1024, %s349_s11, [#allocation9], %s6629_s26, %s6629_s26, %s5031_s12  }
  0xa4   : > { %s4825_s21 = scalar_lea.hbm %s6581_s6, 2048 }
  0xa5   : > { %p4826_p1 = scmp.ne.s32.totalorder %s6581_s6, %s4825_s21  ;;  %p4832_p12 = scmp.lt.u32.totalorder %s4825_s21, %s6581_s6 }
  0xa7   : > { %p4828_p3 = pnand %p4826_p1, %p5161_p8 }
  0xa9   : > { %p4829_p11 = pneg %p4828_p3 }
  0xab   : > { %p4834_p13 = pnand %p4832_p12, %p4829_p11 }
  0xad   : > { %4837 = shalt.err (!%p4834_p13)
}
  0xae   : > { %s4838_s15 = scalar_lea.vmem %s375_s13, 2048  ;;  %p4846_p7 = scmp.lt.s32.totalorder %s375_s13, %s375_s13 }
  0xaf   : > { %p4839_p0 = scmp.ne.s32.totalorder %s375_s13, %s4838_s15  ;;  %p4847_p9 = scmp.lt.s32.totalorder %s4838_s15, %s4838_s15 }
  0xb1   : > { %p4841_p2 = pnand %p4839_p0, %p5161_p8  ;;  %p4848_p4 = por %p4847_p9, %p4846_p7 }
  0xb3   : > { %p4842_p5 = pneg %p4841_p2 }
  0xb5   : > { %p4849_p10 = pnand %p4848_p4, %p4842_p5 }
  0xb7   : > { %4852 = shalt.err (!%p4849_p10)
}
  0xb8   : > { %4275 = dma.hbm_to_vmem [thread:$0]  (!%p5145_p6), %s6581_s6, 2048, %s375_s13, [#allocation12], %s6629_s26, %s6629_s26, %s5031_s12  }
  0xb9   : > { %s5038_s29 = smov [#allocation16]   ;;  %s5039_s9 = smov [#allocation17]  }
  0xba   : > { %s400_s1 = sshll.u32 %s5038_s29, 4  ;;  %s416_s14 = sshll.u32 %s5039_s9, 4  ;;  %s401_s1 = int_to_ptr.vmem [resolvable:$true] %s400_s1  ;;  %s417_s14 = int_to_ptr.vmem [resolvable:$true] %s416_s14 }
  0xbb   : > { %s4853_s22 = scalar_lea.hbm %s6583_s8, 8192 }
  0xbc   : > { %p4854_p1 = scmp.ne.s32.totalorder %s6583_s8, %s4853_s22  ;;  %p4860_p12 = scmp.lt.u32.totalorder %s4853_s22, %s6583_s8 }
  0xbe   : > { %p4856_p3 = pnand %p4854_p1, %p5161_p8 }
  0xc0   : > { %p4857_p11 = pneg %p4856_p3 }
  0xc2   : > { %p4862_p13 = pnand %p4860_p12, %p4857_p11 }
  0xc4   : > { %4865 = shalt.err (!%p4862_p13)
}
  0xc5   : > { %s4866_s13 = scalar_lea.vmem %s401_s1, 8192  ;;  %p4874_p7 = scmp.lt.s32.totalorder %s401_s1, %s401_s1 }
  0xc6   : > { %p4867_p0 = scmp.ne.s32.totalorder %s401_s1, %s4866_s13  ;;  %p4875_p9 = scmp.lt.s32.totalorder %s4866_s13, %s4866_s13 }
  0xc8   : > { %p4869_p2 = pnand %p4867_p0, %p5161_p8  ;;  %p4876_p4 = por %p4875_p9, %p4874_p7 }
  0xca   : > { %p4870_p5 = pneg %p4869_p2 }
  0xcc   : > { %p4877_p10 = pnand %p4876_p4, %p4870_p5 }
  0xce   : > { %4880 = shalt.err (!%p4877_p10)
}
  0xcf   : > { %4281 = dma.hbm_to_vmem [thread:$0]  (!%p5145_p6), %s6583_s8, 8192, %s401_s1, [#allocation15], %s6629_s26, %s6629_s26, %s5031_s12  }
  0xd0   : > { %s4881_s28 = scalar_lea.hbm %s6585_s10, 2048 }
  0xd1   : > { %p4882_p1 = scmp.ne.s32.totalorder %s6585_s10, %s4881_s28  ;;  %p4888_p12 = scmp.lt.u32.totalorder %s4881_s28, %s6585_s10 }
  0xd3   : > { %p4884_p3 = pnand %p4882_p1, %p5161_p8 }
  0xd5   : > { %p4885_p11 = pneg %p4884_p3 }
  0xd7   : > { %p4890_p13 = pnand %p4888_p12, %p4885_p11 }
  0xd9   : > { %4893 = shalt.err (!%p4890_p13)
}
  0xda   : > { %s4894_s11 = scalar_lea.vmem %s417_s14, 2048  ;;  %p4902_p7 = scmp.lt.s32.totalorder %s417_s14, %s417_s14 }
  0xdb   : > { %p4895_p0 = scmp.ne.s32.totalorder %s417_s14, %s4894_s11  ;;  %p4903_p9 = scmp.lt.s32.totalorder %s4894_s11, %s4894_s11 }
  0xdd   : > { %p4897_p2 = pnand %p4895_p0, %p5161_p8  ;;  %p4904_p4 = por %p4903_p9, %p4902_p7 }
  0xdf   : > { %p4898_p5 = pneg %p4897_p2 }
  0xe1   : > { %p4905_p10 = pnand %p4904_p4, %p4898_p5 }
  0xe3   : > { %4908 = shalt.err (!%p4905_p10)
}
  0xe4   : > { %s6631_s12 = smov 8   ;;  %s6632_s26 = smov 128  }
  0xe5   : > { %4284 = dma.hbm_to_vmem [thread:$0]  (!%p5145_p6), %s6585_s10, 2048, %s417_s14, [#allocation18], %s6632_s26, %s6632_s26, %s6631_s12  }
  0xe6   : > { %s3403_s27 = sadd.s32 4294967294, %s5025_s20   ;;  %s5358_s16 = sadd.s32 1, %s5025_s20  }
  0xe7   : > { %s39_s25 = sadd.s32 1, %s5021_s19  ;;  %s36_s29 = ssub.s32 %s5025_s20, %s5358_s16 }
  0xe8   : > { %p46_p8 = scmp.ne.s32.totalorder %s5021_s19, %s5017_s18  ;;  %p37_p1 = scmp.eq.s32.totalorder %s36_s29, 0 }
  0xe9   : > { %p47_p3 = scmp.eq.s32.totalorder %s5025_s20, 0  ;;  %p52_p11 = scmp.ne.s32.totalorder %s5017_s18, %s5013_s17 }
  0xea   : > { %p286_p12 = scmp.eq.s32.totalorder %s5129_s23, 1  ;;  %p6633_p0 = scmp.eq.s32.totalorder %s5129_s23, 0 }
  0xeb   : > { %s5370_s9 = scalar_select %p37_p1, %s5021_s19, %s39_s25  }
  0xec   : > { %p48_p13 = por %p47_p3, %p46_p8  ;;  %p5374_p2 = por %p6633_p0, %p52_p11 }
  0xed   : > { %p5378_p6 = por %p286_p12, %p46_p8  ;;  %p292_p5 = scmp.eq.s32.totalorder %s3403_s27, 1 }
  0xee   : > { %p4302_p7 = scmp.lt.s32.totalorder %s5025_s20, 2  ;;  %s430_s28 = sand.u32 1, %s5021_s19  }
  0xef   : > { %s6635_s14 = scalar_select %p5378_p6, 1, 0 }
  0xf0   : > { %p5384_p9 = por %p292_p5, %p52_p11  ;;  %s3415_s24 = sshll.u32 %s430_s28, 6 }
  0xf1   : > { %s3531_s30 = sshll.u32 %s5025_s20, 10  ;;  %s434_s13 = scalar_lea.vmem [#allocation2], %s3415_s24 }
  0xf2   : > { %s6636_s22 = scalar_select %p5384_p9, 1, 0 }
  0xf3   : > { %s5392_s1 = scalar_lea.hbm %s6575_s0, %s3531_s30  ;;  %s441_s25 = sshll.u32 %s434_s13, 4  ;;  %s5398_s25 = int_to_ptr.vmem [resolvable:$true] %s441_s25 }
  0xf4   : > { %p5394_p4 = pnand %p4302_p7, %p48_p13  ;;  %s5400_s29 = scalar_lea.sflag [#allocation3], %s430_s28 }
  0xf5   : > { %s4909_s2 = scalar_lea.hbm %s5392_s1, 1024  ;;  %s4914_s15 = scalar_lea.hbm %s6575_s0, 2048 }
  0xf6   : > { %p4910_p10 = scmp.ne.s32.totalorder %s5392_s1, %s4909_s2  ;;  %p4911_p8 = pneg %p5394_p4 }
  0xf7   : > { %p4915_p11 = scmp.lt.u32.totalorder %s5392_s1, %s6575_s0  ;;  %p4916_p12 = scmp.lt.u32.totalorder %s4914_s15, %s4909_s2 }
  0xf8   : > { %p4912_p1 = pnand %p4911_p8, %p4910_p10  ;;  %p4918_p0 = scmp.lt.u32.totalorder %s4909_s2, %s5392_s1 }
  0xf9   : > { %p4917_p13 = por %p4916_p12, %p4915_p11 }
  0xfa   : > { %p4913_p3 = pneg %p4912_p1 }
  0xfb   : > { %p4919_p5 = por %p4918_p0, %p4917_p13 }
  0xfd   : > { %p4920_p7 = pnand %p4919_p5, %p4913_p3 }
  0xff   : > { %4923 = shalt.err (!%p4920_p7)
}
 0x100   : > { %s4924_s28 = scalar_lea.vmem %s5398_s25, 1024  ;;  %s5040_s24 = smov [#allocation2]  }
 0x101   : > { %p4925_p10 = scmp.ne.s32.totalorder %s5398_s25, %s4924_s28  ;;  %s4929_s30 = sshll.u32 %s5040_s24, 4  ;;  %s4930_s30 = int_to_ptr.vmem [resolvable:$false] %s4929_s30 }
 0x102   : > { %s4931_s11 = scalar_lea.vmem %s4930_s30, 2048  ;;  %p4932_p6 = scmp.lt.s32.totalorder %s5398_s25, %s4930_s30 }
 0x103   : > { %p4927_p1 = pnand %p4925_p10, %p4911_p8  ;;  %p4933_p11 = scmp.lt.s32.totalorder %s4931_s11, %s4924_s28 }
 0x105   : > { %p4928_p9 = pneg %p4927_p1  ;;  %p4934_p12 = por %p4933_p11, %p4932_p6 }
 0x107   : > { %p4935_p13 = pnand %p4934_p12, %p4928_p9 }
 0x109   : > { %4938 = shalt.err (!%p4935_p13)
}
 0x10a   : > { %4288 = dma.hbm_to_vmem [thread:$0]  (!%p5394_p4), %s5392_s1, 1024, %s5398_s25, %s5400_s29, %s6632_s26, %s6632_s26, %s6631_s12  }
 0x10b   : > { %s6638_s2 = sld [smem:[#allocation27_spill]] }
 0x111   : > { %p6639_p8 = scmp.ne.s32.totalorder %s6638_s2, 0 }
 0x113   : > { %453 = sbr.rel (%p6639_p8) target bundleno = 2713 (0xa99), region = 64 }
 0x11a   : > { %s5434_s15 = sand.u32 1, %s5017_s18  }
 0x11b   : > { %s3419_s13 = sshll.u32 %s5434_s15, 6  ;;  %s456_s28 = scalar_lea.sflag [#allocation3], %s5434_s15 }
 0x11c   : > { %s5440_s27 = scalar_lea.vmem [#allocation2], %s3419_s13 }
 0x11d   : > { %4984 = dma.done.wait (%p5374_p2), %s456_s28, 1024  }
 0x11e   : > { %4986 = vsyncadd (%p5374_p2), %s456_s28, 4294966272  ;;  %p6640_p6 = scmp.eq.s32.totalorder %s5129_s23, 0 }
 0x120   : > { %4988 = dma.done.wait (%p6640_p6), [#allocation6], 1280   ;;  %p6641_p9 = pmov %p6640_p6 }
 0x121   : > { %p6642_p4 = pmov %p6640_p6 }
 0x122   : > { %4990 = vsyncadd (%p6641_p9), [#allocation6], 4294966016 }
 0x123   : > { %4992 = dma.done.wait (%p6642_p4), [#allocation9], 5120   ;;  %p6643_p3 = pmov %p6642_p4 }
 0x125   : > { %4994 = vsyncadd (%p6643_p3), [#allocation9], 4294962176  ;;  %p6644_p0 = pmov %p6643_p3 }
 0x127   : > { %4996 = dma.done.wait (%p6644_p0), [#allocation12], 4096   ;;  %p6645_p5 = pmov %p6644_p0 }
 0x128   : > { %p6646_p2 = pmov %p6644_p0 }
 0x129   : > { %4998 = vsyncadd (%p6645_p5), [#allocation12], 4294963200 }
 0x12a   : > { %5000 = dma.done.wait (%p6646_p2), [#allocation15], 16384   ;;  %p6647_p7 = pmov %p6644_p0 }
 0x12b   : > { %p6648_p10 = pmov %p6644_p0 }
 0x12c   : > { %5002 = vsyncadd (%p6647_p7), [#allocation15], 4294950912 }
 0x12d   : > { %5004 = dma.done.wait (%p6648_p10), [#allocation18], 2048   ;;  %p6649_p1 = pmov %p6644_p0 }
 0x12e   : > { %vm544_vm0 = vcmask 261120   ;;  %v534_v0 = vld [vmem:[%s5440_s27] sm:$0xff]  ;;  %v536_v1 = vld [vmem:[%s5440_s27 + $0x10] sm:$0xff]  ;;  %v535_v2 = vld [vmem:[%s5440_s27 + $0x8] sm:$0xff]  ;;  %s5042_s12 = smov 32   ;;  %s5043_s26 = smov 96  }
 0x12f   : > { %5006 = vsyncadd (%p6649_p1), [#allocation18], 4294965248  ;;  %v545_v3 = vsel %vm544_vm0, %v534_v0, 0.0  ;;  %v551_v4 = vsel %vm544_vm0, %v536_v1, 0.0  ;;  %v537_v5 = vld [vmem:[%s5440_s27 + $0x18] sm:$0xff]  ;;  %v548_v6 = vsel %vm544_vm0, %v535_v2, 0.0 }
 0x130   : > { %546 = vadd.xlane.f32.xlu0 %v545_v3  ;;  %552 = vadd.xlane.f32.xlu1 %v551_v4  ;;  %v554_v7 = vsel %vm544_vm0, %v537_v5, 0.0  ;;  %v538_v8 = vld [vmem:[%s5440_s27 + $0x20] sm:$0xff]  ;;  %v539_v9 = vld [vmem:[%s5440_s27 + $0x28] sm:$0xff]  ;;  %v540_v12 = vld [vmem:[%s5440_s27 + $0x30] sm:$0xff]  ;;  %v5041_v4 = vmov 0.0   ;;  %s5044_s21 = smov 64  }
 0x131   : > { %v557_v10 = vsel %vm544_vm0, %v538_v8, 0.0  ;;  %v560_v11 = vsel %vm544_vm0, %v539_v9, 0.0  ;;  %v541_v13 = vld [vmem:[%s5440_s27 + $0x38] sm:$0xff]  ;;  %v563_v14 = vsel %vm544_vm0, %v540_v12, 0.0  ;;  %v675_v56 = vld [vmem:[#allocation5 + $0x8] sm:$0xff]  ;;  %v674_v59 = vld [vmem:[#allocation5] sm:$0xff]  ;;  %778 = vmatprep.mubr.f32.mxu0 %v5041_v4  ;;  %1275 = vmatprep.mubr.f32.mxu1 %v5041_v4 }
 0x132   : > { %v566_v15 = vsel %vm544_vm0, %v541_v13, 0.0  ;;  %v677_v57 = vld [vmem:[#allocation5 + $0x18] sm:$0xff]  ;;  %v676_v60 = vld [vmem:[#allocation5 + $0x10] sm:$0xff]  ;;  %v679_v62 = vld [vmem:[#allocation5 + $0x28] sm:$0xff]  ;;  %vm1943_vm2 = vcmask 523264   ;;  %s6696_s29 = sld [smem:[#allocation50_spill]] }
 0x133   : > { %v3857_v58 = vpack.c.bf16 %v677_v57, %v675_v56  ;;  %v3859_v61 = vpack.c.bf16 %v676_v60, %v674_v59  ;;  %v681_v63 = vld [vmem:[#allocation5 + $0x38] sm:$0xff]  ;;  %v650_v56 = vlaneseq  ;;  %vm5909_vm1 = vmpackc.low %vm544_vm0, %vm544_vm0  ;;  %s6697_s25 = sld [smem:[#allocation51_spill]]  ;;  %p6698_p12 = scmp.ne.s32.totalorder %s6635_s14, 0 }
 0x134   : > { %549 = vadd.xlane.f32.xlu0 %v548_v6  ;;  %555 = vadd.xlane.f32.xlu1 %v554_v7  ;;  %v843_v6 = vld [vmem:[#allocation8 + $0x80] sm:$0xff]  ;;  %s5045_s11 = smov [#allocation19]  }
 0x135   : > { %3858 = vmatprep.subr.bf16.mxu0 %v3857_v58  ;;  %v827_v7 = vld [vmem:[#allocation8] sm:$0xff]  ;;  %s4943_s2 = sshll.u32 %s5045_s11, 4  ;;  %s4944_s2 = int_to_ptr.vmem [resolvable:$false] %s4943_s2 }
 0x136   : > { %3860 = vmatpush1.bf16.msra.mxu0 %v3859_v61  ;;  %s4945_s28 = scalar_lea.vmem %s4944_s2, 2048 }
 0x138   : > { %558 = vadd.xlane.f32.xlu0 %v557_v10  ;;  %561 = vadd.xlane.f32.xlu1 %v560_v11  ;;  %v829_v10 = vld [vmem:[#allocation8 + $0x10] sm:$0xff]  ;;  %v846_v11 = vld [vmem:[#allocation8 + $0x98] sm:$0xff] }
 0x13c   : > { %564 = vadd.xlane.f32.xlu0 %v563_v14  ;;  %567 = vadd.xlane.f32.xlu1 %v566_v15  ;;  %v831_v14 = vld [vmem:[#allocation8 + $0x20] sm:$0xff]  ;;  %v860_v15 = vld [vmem:[#allocation10 + $0x8] sm:$0xff] }
 0x1bd   : > { %v547_v16 = vpop.xlane.xlu0 %546  ;;  %v553_v17 = vpop.xlane.xlu1 %552 }
 0x1be   : > { %v570_v18 = vmul.f32 0.03125, %v547_v16  ;;  %v572_v19 = vmul.f32 0.03125, %v553_v17  ;;  %v862_v16 = vld [vmem:[#allocation10 + $0x18] sm:$0xff]  ;;  %v859_v17 = vld [vmem:[#allocation10] sm:$0xff] }
 0x1c0   : > { %v5482_v20 = vsub.f32 %v534_v0, %v570_v18  ;;  %v5484_v21 = vsub.f32 %v536_v1, %v572_v19  ;;  %v3861_v0 = vpack.c.bf16 %v681_v63, %v679_v62  ;;  %v678_v1 = vld [vmem:[#allocation5 + $0x20] sm:$0xff]  ;;  %v3865_v18 = vpack.c.bf16 %v862_v16, %v860_v15 }
 0x1c1   : > { %v550_v22 = vpop.xlane.xlu0 %549  ;;  %v556_v23 = vpop.xlane.xlu1 %555  ;;  %v861_v19 = vld [vmem:[#allocation10 + $0x10] sm:$0xff]  ;;  %v5556_v62 = vshrl.u32 %v650_v56, 7 }
 0x1c2   : > { %v571_v24 = vmul.f32 0.03125, %v550_v22  ;;  %v573_v25 = vmul.f32 0.03125, %v556_v23  ;;  %v586_v26 = vmul.f32 %v5482_v20, %v5482_v20  ;;  %v588_v27 = vmul.f32 %v5484_v21, %v5484_v21  ;;  %3862 = vmatprep.subr.bf16.mxu0 %v3861_v0  ;;  %v848_v23 = vld [vmem:[#allocation8 + $0xa8] sm:$0xff]  ;;  %3866 = vmatprep.subr.bf16.mxu1 %v3865_v18  ;;  %v865_v56 = vld [vmem:[#allocation10 + $0x30] sm:$0xff] }
 0x1c3   : > { %v3867_v22 = vpack.c.bf16 %v861_v19, %v859_v17  ;;  %6650 = vst [vmem:[#allocation28_spill] sm:$0xff] %v5556_v62 }
 0x1c4   : > { %v5490_v28 = vsub.f32 %v535_v2, %v571_v24  ;;  %v5492_v29 = vsub.f32 %v537_v5, %v573_v25  ;;  %v594_v30 = vsel %vm544_vm0, %v586_v26, 0.0  ;;  %v600_v33 = vsel %vm544_vm0, %v588_v27, 0.0  ;;  %v680_v2 = vld [vmem:[#allocation5 + $0x30] sm:$0xff]  ;;  %v844_v5 = vld [vmem:[#allocation8 + $0x88] sm:$0xff]  ;;  %v849_v24 = vld [vmem:[#allocation8 + $0xb0] sm:$0xff] }
 0x1c5   : > { %595 = vadd.xlane.f32.xlu0 %v594_v30  ;;  %v559_v31 = vpop.xlane.xlu0 %558  ;;  %v562_v32 = vpop.xlane.xlu1 %561  ;;  %v3863_v3 = vpack.c.bf16 %v680_v2, %v678_v1  ;;  %3868 = vmatpush1.bf16.msra.mxu1 %v3867_v22  ;;  %v864_v25 = vld [vmem:[#allocation10 + $0x28] sm:$0xff]  ;;  %v866_v26 = vld [vmem:[#allocation10 + $0x38] sm:$0xff] }
 0x1c6   : > { %v574_v34 = vmul.f32 0.03125, %v559_v31  ;;  %v575_v35 = vmul.f32 0.03125, %v562_v32  ;;  %v587_v36 = vmul.f32 %v5490_v28, %v5490_v28  ;;  %v589_v37 = vmul.f32 %v5492_v29, %v5492_v29  ;;  %v832_v30 = vld [vmem:[#allocation8 + $0x28] sm:$0xff]  ;;  %v833_v31 = vld [vmem:[#allocation8 + $0x30] sm:$0xff]  ;;  %v850_v32 = vld [vmem:[#allocation8 + $0xb8] sm:$0xff] }
 0x1c7   : > { %3864 = vmatpush1.bf16.msra.mxu0 %v3863_v3  ;;  %v3869_v27 = vpack.c.bf16 %v866_v26, %v864_v25 }
 0x1c8   : > { %v5500_v38 = vsub.f32 %v538_v8, %v574_v34  ;;  %v5502_v39 = vsub.f32 %v539_v9, %v575_v35  ;;  %v597_v40 = vsel %vm544_vm0, %v587_v36, 0.0  ;;  %v603_v43 = vsel %vm544_vm0, %v589_v37, 0.0  ;;  %v845_v8 = vld [vmem:[#allocation8 + $0x90] sm:$0xff]  ;;  %v828_v9 = vld [vmem:[#allocation8 + $0x8] sm:$0xff]  ;;  %v834_v34 = vld [vmem:[#allocation8 + $0x38] sm:$0xff] }
 0x1c9   : > { %601 = vadd.xlane.f32.xlu0 %v600_v33  ;;  %598 = vadd.xlane.f32.xlu1 %v597_v40  ;;  %v565_v41 = vpop.xlane.xlu0 %564  ;;  %v568_v42 = vpop.xlane.xlu1 %567  ;;  %v851_v33 = vld [vmem:[#allocation8 + $0xc0] sm:$0xff]  ;;  %v852_v36 = vld [vmem:[#allocation8 + $0xc8] sm:$0xff]  ;;  %v853_v37 = vld [vmem:[#allocation8 + $0xd0] sm:$0xff] }
 0x1ca   : > { %v576_v44 = vmul.f32 0.03125, %v565_v41  ;;  %v577_v45 = vmul.f32 0.03125, %v568_v42  ;;  %v590_v46 = vmul.f32 %v5500_v38, %v5500_v38  ;;  %v591_v47 = vmul.f32 %v5502_v39, %v5502_v39  ;;  %3870 = vmatprep.subr.bf16.mxu1 %v3869_v27  ;;  %v835_v35 = vld [vmem:[#allocation8 + $0x40] sm:$0xff]  ;;  %v836_v40 = vld [vmem:[#allocation8 + $0x48] sm:$0xff]  ;;  %v837_v41 = vld [vmem:[#allocation8 + $0x50] sm:$0xff] }
 0x1cb   : > { %v854_v42 = vld [vmem:[#allocation8 + $0xd8] sm:$0xff] }
 0x1cc   : > { %v5510_v48 = vsub.f32 %v540_v12, %v576_v44  ;;  %v5512_v49 = vsub.f32 %v541_v13, %v577_v45  ;;  %v606_v50 = vsel %vm544_vm0, %v590_v46, 0.0  ;;  %v609_v51 = vsel %vm544_vm0, %v591_v47, 0.0  ;;  %v847_v12 = vld [vmem:[#allocation8 + $0xa0] sm:$0xff]  ;;  %v830_v13 = vld [vmem:[#allocation8 + $0x18] sm:$0xff]  ;;  %v856_v46 = vld [vmem:[#allocation8 + $0xe8] sm:$0xff] }
 0x1cd   : > { %604 = vadd.xlane.f32.xlu1 %v603_v43  ;;  %607 = vadd.xlane.f32.xlu0 %v606_v50  ;;  %v855_v43 = vld [vmem:[#allocation8 + $0xe0] sm:$0xff]  ;;  %v838_v44 = vld [vmem:[#allocation8 + $0x58] sm:$0xff]  ;;  %v857_v47 = vld [vmem:[#allocation8 + $0xf0] sm:$0xff] }
 0x1ce   : > { %v592_v52 = vmul.f32 %v5510_v48, %v5510_v48  ;;  %v593_v53 = vmul.f32 %v5512_v49, %v5512_v49  ;;  %v839_v45 = vld [vmem:[#allocation8 + $0x60] sm:$0xff]  ;;  %v840_v50 = vld [vmem:[#allocation8 + $0x68] sm:$0xff] }
 0x1d0   : > { %v612_v54 = vsel %vm544_vm0, %v592_v52, 0.0  ;;  %v615_v55 = vsel %vm544_vm0, %v593_v53, 0.0  ;;  %v858_v52 = vld [vmem:[#allocation8 + $0xf8] sm:$0xff] }
 0x1d1   : > { %610 = vadd.xlane.f32.xlu1 %v609_v51  ;;  %613 = vadd.xlane.f32.xlu0 %v612_v54  ;;  %v841_v51 = vld [vmem:[#allocation8 + $0x70] sm:$0xff]  ;;  %v842_v53 = vld [vmem:[#allocation8 + $0x78] sm:$0xff] }
 0x1d5   : > { %616 = vadd.xlane.f32.xlu1 %v615_v55 }
 0x1e6   : > { %1093 = vrot.lane.b32.xlu1 %v844_v5, %s5042_s12 }
 0x1e7   : > { %1091 = vrot.lane.b32.xlu0 %v843_v6, %s5042_s12  ;;  %v652_v6 = vsub.s32 0, %v5556_v62 }
 0x1ea   : > { %1059 = vrot.lane.b32.xlu1 %v827_v7, %s5042_s12 }
 0x1eb   : > { %1095 = vrot.lane.b32.xlu0 %v845_v8, %s5042_s12 }
 0x1ee   : > { %1061 = vrot.lane.b32.xlu1 %v828_v9, %s5042_s12  ;;  %v5559_v9 = vld [vmem:[#allocation7] sm:$0xff] }
 0x1ef   : > { %1063 = vrot.lane.b32.xlu0 %v829_v10, %s5042_s12 }
 0x1f2   : > { %1097 = vrot.lane.b32.xlu1 %v846_v11, %s5042_s12 }
 0x1f3   : > { %1099 = vrot.lane.b32.xlu0 %v847_v12, %s5042_s12  ;;  %v664_v12 = vsub.s32 1, %v5556_v62 }
 0x1f5   : > { %v665_v22 = vrot.slane %v5559_v9, %v664_v12  ;;  %v909_v12 = vld [vmem:[#allocation14 + $0x50] sm:$0xff] }
 0x1f6   : > { %1065 = vrot.lane.b32.xlu1 %v830_v13, %s5042_s12 }
 0x1f7   : > { %1067 = vrot.lane.b32.xlu0 %v831_v14, %s5042_s12  ;;  %v653_v14 = vrot.slane %v5559_v9, %v652_v6  ;;  %v908_v6 = vld [vmem:[#allocation14 + $0x48] sm:$0xff] }
 0x1fa   : > { %1101 = vrot.lane.b32.xlu1 %v848_v23, %s5042_s12 }
 0x1fb   : > { %1103 = vrot.lane.b32.xlu0 %v849_v24, %s5042_s12 }
 0x1fe   : > { %1069 = vrot.lane.b32.xlu1 %v832_v30, %s5042_s12 }
 0x1ff   : > { %1071 = vrot.lane.b32.xlu0 %v833_v31, %s5042_s12 }
 0x202   : > { %1105 = vrot.lane.b32.xlu1 %v850_v32, %s5042_s12 }
 0x203   : > { %1107 = vrot.lane.b32.xlu0 %v851_v33, %s5042_s12 }
 0x206   : > { %1073 = vrot.lane.b32.xlu1 %v834_v34, %s5042_s12 }
 0x207   : > { %1075 = vrot.lane.b32.xlu0 %v835_v35, %s5042_s12 }
 0x20a   : > { %1109 = vrot.lane.b32.xlu1 %v852_v36, %s5042_s12 }
 0x20b   : > { %1111 = vrot.lane.b32.xlu0 %v853_v37, %s5042_s12 }
 0x20e   : > { %1077 = vrot.lane.b32.xlu1 %v836_v40, %s5042_s12 }
 0x20f   : > { %1079 = vrot.lane.b32.xlu0 %v837_v41, %s5042_s12 }
 0x212   : > { %1113 = vrot.lane.b32.xlu1 %v854_v42, %s5042_s12 }
 0x213   : > { %1115 = vrot.lane.b32.xlu0 %v855_v43, %s5042_s12 }
 0x216   : > { %1081 = vrot.lane.b32.xlu1 %v838_v44, %s5042_s12 }
 0x217   : > { %1083 = vrot.lane.b32.xlu0 %v839_v45, %s5042_s12 }
 0x21a   : > { %1117 = vrot.lane.b32.xlu1 %v856_v46, %s5042_s12 }
 0x21b   : > { %1119 = vrot.lane.b32.xlu0 %v857_v47, %s5042_s12 }
 0x21e   : > { %1085 = vrot.lane.b32.xlu1 %v840_v50, %s5042_s12 }
 0x21f   : > { %1087 = vrot.lane.b32.xlu0 %v841_v51, %s5042_s12 }
 0x222   : > { %1121 = vrot.lane.b32.xlu1 %v858_v52, %s5042_s12 }
 0x226   : > { %1089 = vrot.lane.b32.xlu1 %v842_v53, %s5042_s12 }
 0x252   : > { %v596_v54 = vpop.xlane.xlu0 %595 }
 0x253   : > { %v618_v55 = vmul.f32 0.03125, %v596_v54 }
 0x255   : > { %v626_v57 = vadd.f32 1e-06, %v618_v55  ;;  %v863_v55 = vld [vmem:[#allocation10 + $0x20] sm:$0xff] }
 0x256   : > { %v599_v58 = vpop.xlane.xlu1 %598  ;;  %v602_v59 = vpop.xlane.xlu0 %601 }
 0x257   : > { %4504 = vrsqrt.f32 %v626_v57  ;;  %v619_v60 = vmul.f32 0.03125, %v599_v58  ;;  %v620_v61 = vmul.f32 0.03125, %v602_v59  ;;  %v3871_v57 = vpack.c.bf16 %v865_v56, %v863_v55  ;;  %v900_v58 = vld [vmem:[#allocation14 + $0x8] sm:$0xff]  ;;  %v902_v59 = vld [vmem:[#allocation14 + $0x18] sm:$0xff]  ;;  %v935_v56 = vld [vmem:[#allocation14 + $0x120] sm:$0xff] }
 0x259   : > { %v627_v63 = vadd.f32 1e-06, %v619_v60  ;;  %v628_v0 = vadd.f32 1e-06, %v620_v61  ;;  %3872 = vmatpush1.bf16.msra.mxu1 %v3871_v57  ;;  %v3873_v60 = vpack.c.bf16 %v902_v59, %v900_v58  ;;  %v901_v61 = vld [vmem:[#allocation14 + $0x10] sm:$0xff]  ;;  %v940_v58 = vld [vmem:[#allocation14 + $0x148] sm:$0xff] }
 0x25a   : > { %v605_v1 = vpop.xlane.xlu1 %604  ;;  %v608_v2 = vpop.xlane.xlu0 %607  ;;  %v937_v57 = vld [vmem:[#allocation14 + $0x130] sm:$0xff]  ;;  %v942_v59 = vld [vmem:[#allocation14 + $0x158] sm:$0xff] }
 0x25b   : > { %4506 = vrsqrt.f32 %v627_v63  ;;  %v621_v3 = vmul.f32 0.03125, %v605_v1  ;;  %v622_v5 = vmul.f32 0.03125, %v608_v2  ;;  %v904_v63 = vld [vmem:[#allocation14 + $0x28] sm:$0xff]  ;;  %3874 = vmatprep.subr.bf16.mxu0 %v3873_v60  ;;  %v3911_v60 = vpack.c.bf16 %v937_v57, %v935_v56 }
 0x25c   : > { %4508 = vrsqrt.f32 %v628_v0  ;;  %v906_v0 = vld [vmem:[#allocation14 + $0x38] sm:$0xff] }
 0x25d   : > { %v629_v7 = vadd.f32 1e-06, %v621_v3  ;;  %v630_v8 = vadd.f32 1e-06, %v622_v5  ;;  %v3877_v2 = vpack.c.bf16 %v906_v0, %v904_v63  ;;  %v903_v3 = vld [vmem:[#allocation14 + $0x20] sm:$0xff]  ;;  %v905_v5 = vld [vmem:[#allocation14 + $0x30] sm:$0xff]  ;;  %v3913_v63 = vpack.c.bf16 %v942_v59, %v940_v58 }
 0x25e   : > { %v611_v10 = vpop.xlane.xlu1 %610  ;;  %v614_v11 = vpop.xlane.xlu0 %613  ;;  %v939_v0 = vld [vmem:[#allocation14 + $0x140] sm:$0xff] }
 0x25f   : > { %4510 = vrsqrt.f32 %v629_v7  ;;  %v623_v13 = vmul.f32 0.03125, %v611_v10  ;;  %v624_v17 = vmul.f32 0.03125, %v614_v11  ;;  %v910_v7 = vld [vmem:[#allocation14 + $0x58] sm:$0xff]  ;;  %v907_v11 = vld [vmem:[#allocation14 + $0x40] sm:$0xff] }
 0x260   : > { %4512 = vrsqrt.f32 %v630_v8  ;;  %v3879_v8 = vpack.c.bf16 %v905_v5, %v903_v3  ;;  %v3881_v10 = vpack.c.bf16 %v910_v7, %v908_v6  ;;  %v946_v3 = vld [vmem:[#allocation14 + $0x178] sm:$0xff] }
 0x261   : > { %v4505_v15 = vpop.eup %4504  ;;  %v631_v16 = vadd.f32 1e-06, %v623_v13  ;;  %v632_v25 = vadd.f32 1e-06, %v624_v17  ;;  %v912_v13 = vld [vmem:[#allocation14 + $0x68] sm:$0xff]  ;;  %v911_v17 = vld [vmem:[#allocation14 + $0x60] sm:$0xff] }
 0x262   : > { %v617_v18 = vpop.xlane.xlu1 %616  ;;  %v642_v19 = vmul.f32 %v4505_v15, %v5482_v20  ;;  %v3883_v15 = vpack.c.bf16 %v909_v12, %v907_v11  ;;  %v948_v11 = vld [vmem:[#allocation14 + $0x188] sm:$0xff]  ;;  %v950_v12 = vld [vmem:[#allocation14 + $0x198] sm:$0xff] }
 0x263   : > { %4514 = vrsqrt.f32 %v631_v16  ;;  %v625_v26 = vmul.f32 0.03125, %v617_v18  ;;  %v913_v18 = vld [vmem:[#allocation14 + $0x70] sm:$0xff] }
 0x264   : > { %v654_v23 = vmul.f32 %v653_v14, %v642_v19  ;;  %4516 = vrsqrt.f32 %v632_v25  ;;  %v916_v19 = vld [vmem:[#allocation14 + $0x88] sm:$0xff]  ;;  %v915_v25 = vld [vmem:[#allocation14 + $0x80] sm:$0xff] }
 0x265   : > { %v4507_v24 = vpop.eup %4506  ;;  %v633_v35 = vadd.f32 1e-06, %v625_v26  ;;  %v917_v26 = vld [vmem:[#allocation14 + $0x90] sm:$0xff] }
 0x266   : > { %v4509_v27 = vpop.eup %4508  ;;  %v666_v30 = vadd.f32 %v665_v22, %v654_v23  ;;  %v643_v31 = vmul.f32 %v4507_v24, %v5490_v28  ;;  %v3887_v23 = vpack.c.bf16 %v913_v18, %v911_v17  ;;  %v949_v17 = vld [vmem:[#allocation14 + $0x190] sm:$0xff]  ;;  %v952_v18 = vld [vmem:[#allocation14 + $0x1a8] sm:$0xff] }
 0x267   : > { %v644_v32 = vmul.f32 %v4509_v27, %v5484_v21  ;;  %4518 = vrsqrt.f32 %v633_v35  ;;  %v920_v27 = vld [vmem:[#allocation14 + $0xa8] sm:$0xff] }
 0x268   : > { %3430 = vmatmul.mubr.msk.f32.vlgmr.msra.gmra.mrb[0].mxu0 %vm544_vm0, %v666_v30  ;;  %v655_v33 = vmul.f32 %v653_v14, %v643_v31  ;;  %v922_v30 = vld [vmem:[#allocation14 + $0xb8] sm:$0xff]  ;;  %v3891_v31 = vpack.c.bf16 %v917_v26, %v915_v25  ;;  %v924_v35 = vld [vmem:[#allocation14 + $0xc8] sm:$0xff]  ;;  %v951_v26 = vld [vmem:[#allocation14 + $0x1a0] sm:$0xff] }
 0x269   : > { %v4511_v34 = vpop.eup %4510  ;;  %784 = vmatprep.mubr.f32.mxu0 %v5041_v4  ;;  %v656_v36 = vmul.f32 %v653_v14, %v644_v32  ;;  %v3893_v32 = vpack.c.bf16 %v922_v30, %v920_v27  ;;  %v953_v27 = vld [vmem:[#allocation14 + $0x1b0] sm:$0xff]  ;;  %v956_v30 = vld [vmem:[#allocation14 + $0x1c8] sm:$0xff] }
 0x26a   : > { %v667_v20 = vadd.f32 %v665_v22, %v655_v33  ;;  %v645_v37 = vmul.f32 %v4511_v34, %v5492_v29  ;;  %v4513_v40 = vpop.eup %4512  ;;  %v919_v33 = vld [vmem:[#allocation14 + $0xa0] sm:$0xff]  ;;  %v921_v34 = vld [vmem:[#allocation14 + $0xb0] sm:$0xff] }
 0x26b   : > { %v668_v28 = vadd.f32 %v665_v22, %v656_v36  ;;  %v646_v41 = vmul.f32 %v4513_v40, %v5500_v38  ;;  %v3895_v36 = vpack.c.bf16 %v921_v34, %v919_v33  ;;  %v923_v40 = vld [vmem:[#allocation14 + $0xc0] sm:$0xff] }
 0x26c   : > { %3431 = vmatmul.mubr.msk.f32.gmra.mrb[2].mxu0 %vm544_vm0, %v667_v20  ;;  %v657_v21 = vmul.f32 %v653_v14, %v645_v37  ;;  %v926_v20 = vld [vmem:[#allocation14 + $0xd8] sm:$0xff] }
 0x26d   : > { %790 = vmatprep.mubr.f32.mxu0 %v5041_v4  ;;  %v4515_v42 = vpop.eup %4514  ;;  %v658_v44 = vmul.f32 %v653_v14, %v646_v41  ;;  %v3897_v37 = vpack.c.bf16 %v926_v20, %v924_v35  ;;  %v930_v41 = vld [vmem:[#allocation14 + $0xf8] sm:$0xff]  ;;  %v955_v35 = vld [vmem:[#allocation14 + $0x1c0] sm:$0xff]  ;;  %v957_v20 = vld [vmem:[#allocation14 + $0x1d0] sm:$0xff] }
 0x26e   : > { %v669_v43 = vadd.f32 %v665_v22, %v657_v21  ;;  %v647_v45 = vmul.f32 %v4515_v42, %v5502_v39  ;;  %v4517_v29 = vpop.eup %4516  ;;  %v928_v21 = vld [vmem:[#allocation14 + $0xe8] sm:$0xff]  ;;  %v5587_v42 = vpop.permute.xlu1 %1093 }
 0x26f   : > { %v670_v46 = vadd.f32 %v665_v22, %v658_v44  ;;  %v648_v50 = vmul.f32 %v4517_v29, %v5510_v48  ;;  %v3901_v44 = vpack.c.bf16 %v930_v41, %v928_v21  ;;  %v929_v29 = vld [vmem:[#allocation14 + $0xf0] sm:$0xff] }
 0x270   : > { %3432 = vmatmul.mubr.msk.f32.gmra.mrb[4].mxu0 %vm544_vm0, %v668_v28  ;;  %v659_v47 = vmul.f32 %v653_v14, %v647_v45  ;;  %v925_v28 = vld [vmem:[#allocation14 + $0xd0] sm:$0xff]  ;;  %v927_v45 = vld [vmem:[#allocation14 + $0xe0] sm:$0xff] }
 0x271   : > { %796 = vmatprep.mubr.f32.mxu0 %v5041_v4  ;;  %v4519_v51 = vpop.eup %4518  ;;  %v660_v52 = vmul.f32 %v653_v14, %v648_v50  ;;  %v3903_v50 = vpack.c.bf16 %v929_v29, %v927_v45 }
 0x272   : > { %v671_v38 = vadd.f32 %v665_v22, %v659_v47  ;;  %v649_v53 = vmul.f32 %v4519_v51, %v5512_v49  ;;  %v899_v49 = vld [vmem:[#allocation14] sm:$0xff]  ;;  %v934_v47 = vld [vmem:[#allocation14 + $0x118] sm:$0xff]  ;;  %v5589_v51 = vpop.permute.xlu1 %1059 }
 0x273   : > { %v672_v39 = vadd.f32 %v665_v22, %v660_v52  ;;  %v3875_v1 = vpack.c.bf16 %v901_v61, %v899_v49  ;;  %v931_v52 = vld [vmem:[#allocation14 + $0x100] sm:$0xff]  ;;  %v5593_v61 = vpop.permute.xlu0 %1091 }
 0x274   : > { %3433 = vmatmul.mubr.msk.f32.gmra.mrb[6].mxu0 %vm544_vm0, %v669_v43  ;;  %v661_v54 = vmul.f32 %v653_v14, %v649_v53  ;;  %v914_v14 = vld [vmem:[#allocation14 + $0x78] sm:$0xff]  ;;  %v3899_v43 = vpack.c.bf16 %v925_v28, %v923_v40  ;;  %v933_v53 = vld [vmem:[#allocation14 + $0x110] sm:$0xff] }
 0x275   : > { %802 = vmatprep.mubr.f32.mxu0 %v5041_v4  ;;  %3876 = vmatpush1.bf16.msra.mxu0 %v3875_v1  ;;  %v3885_v16 = vpack.c.bf16 %v914_v14, %v912_v13  ;;  %v941_v1 = vld [vmem:[#allocation14 + $0x150] sm:$0xff] }
 0x276   : > { %v673_v48 = vadd.f32 %v665_v22, %v661_v54  ;;  %3878 = vmatprep.subr.bf16.mxu0 %v3877_v2  ;;  %v918_v22 = vld [vmem:[#allocation14 + $0x98] sm:$0xff]  ;;  %v5591_v49 = vpop.permute.xlu1 %1061  ;;  %v944_v2 = vld [vmem:[#allocation14 + $0x168] sm:$0xff]  ;;  %v3915_v5 = vpack.c.bf16 %v941_v1, %v939_v0 }
 0x277   : > { %v3889_v24 = vpack.c.bf16 %v918_v22, %v916_v19  ;;  %v938_v54 = vld [vmem:[#allocation14 + $0x138] sm:$0xff]  ;;  %v3917_v7 = vpack.c.bf16 %v946_v3, %v944_v2  ;;  %v5597_v13 = vpop.permute.xlu0 %1095 }
 0x278   : > { %3434 = vmatmul.mubr.msk.f32.gmra.mrb[8].mxu0 %vm544_vm0, %v670_v46  ;;  %v932_v46 = vld [vmem:[#allocation14 + $0x108] sm:$0xff]  ;;  %v954_v19 = vld [vmem:[#allocation14 + $0x1b8] sm:$0xff] }
 0x279   : > { %808 = vmatprep.mubr.f32.mxu0 %v5041_v4  ;;  %3880 = vmatpush1.bf16.msra.mxu0 %v3879_v8  ;;  %v943_v8 = vld [vmem:[#allocation14 + $0x160] sm:$0xff]  ;;  %v3925_v25 = vpack.c.bf16 %v954_v19, %v952_v18 }
 0x27a   : > { %3882 = vmatprep.subr.bf16.mxu0 %v3881_v10  ;;  %v5595_v6 = vpop.permute.xlu1 %1097  ;;  %v945_v10 = vld [vmem:[#allocation14 + $0x170] sm:$0xff] }
 0x27b   : > { %v3919_v14 = vpack.c.bf16 %v945_v10, %v943_v8  ;;  %v867_v10 = vld [vmem:[#allocation11] sm:$0xff] }
 0x27c   : > { %3435 = vmatmul.mubr.msk.f32.gmra.mrb[10].mxu0 %vm544_vm0, %v671_v38  ;;  %v3905_v38 = vpack.c.bf16 %v934_v47, %v932_v46  ;;  %v960_v46 = vld [vmem:[#allocation14 + $0x1e8] sm:$0xff]  ;;  %v962_v47 = vld [vmem:[#allocation14 + $0x1f8] sm:$0xff] }
 0x27d   : > { %814 = vmatprep.mubr.f32.mxu0 %v5041_v4  ;;  %3884 = vmatpush1.bf16.msra.mxu0 %v3883_v15  ;;  %v3921_v15 = vpack.c.bf16 %v950_v12, %v948_v11 }
 0x27e   : > { %3886 = vmatprep.subr.bf16.mxu0 %v3885_v16  ;;  %v947_v16 = vld [vmem:[#allocation14 + $0x180] sm:$0xff]  ;;  %v5599_v22 = vpop.permute.xlu1 %1065 }
 0x280   : > { %3436 = vmatmul.mubr.msk.f32.gmra.mrb[12].mxu0 %vm544_vm0, %v672_v39  ;;  %v936_v39 = vld [vmem:[#allocation14 + $0x128] sm:$0xff] }
 0x281   : > { %820 = vmatprep.mubr.f32.mxu0 %v5041_v4  ;;  %3888 = vmatpush1.bf16.msra.mxu0 %v3887_v23  ;;  %v3909_v55 = vpack.c.bf16 %v938_v54, %v936_v39  ;;  %v3923_v23 = vpack.c.bf16 %v949_v17, %v947_v16 }
 0x282   : > { %3890 = vmatprep.subr.bf16.mxu0 %v3889_v24  ;;  %v5601_v24 = vpop.permute.xlu0 %1063  ;;  %v5603_v33 = vpop.permute.xlu1 %1101 }
 0x284   : > { %3437 = vmatmul.mubr.msk.f32.gmra.mrb[14].mxu0 %vm544_vm0, %v673_v48  ;;  %v3907_v48 = vpack.c.bf16 %v933_v53, %v931_v52  ;;  %v959_v52 = vld [vmem:[#allocation14 + $0x1e0] sm:$0xff]  ;;  %v961_v53 = vld [vmem:[#allocation14 + $0x1f0] sm:$0xff] }
 0x285   : > { %3892 = vmatpush1.bf16.msra.mxu0 %v3891_v31  ;;  %v958_v31 = vld [vmem:[#allocation14 + $0x1d8] sm:$0xff] }
 0x286   : > { %3894 = vmatprep.subr.bf16.mxu0 %v3893_v32  ;;  %v3927_v32 = vpack.c.bf16 %v953_v27, %v951_v26  ;;  %v3929_v34 = vpack.c.bf16 %v958_v31, %v956_v30  ;;  %v5607_v40 = vpop.permute.xlu1 %1069 }
 0x289   : > { %3896 = vmatpush1.bf16.msra.mxu0 %v3895_v36  ;;  %v5605_v36 = vpop.permute.xlu0 %1099 }
 0x28a   : > { %3898 = vmatprep.subr.bf16.mxu0 %v3897_v37  ;;  %v3931_v37 = vpack.c.bf16 %v957_v20, %v955_v35  ;;  %v5611_v21 = vpop.permute.xlu1 %1105 }
 0x28d   : > { %3900 = vmatpush1.bf16.msra.mxu0 %v3899_v43  ;;  %v5609_v28 = vpop.permute.xlu0 %1067  ;;  %v684_v43 = vsub.s32 2, %v5556_v62 }
 0x28e   : > { %3902 = vmatprep.subr.bf16.mxu0 %v3901_v44  ;;  %v5616_v44 = vpop.permute.xlu1 %1073 }
 0x28f   : > { %v5621_v29 = vrot.slane %v5559_v9, %v684_v43 }
 0x291   : > { %3904 = vmatpush1.bf16.msra.mxu0 %v3903_v50  ;;  %v5613_v41 = vpop.permute.xlu0 %1103  ;;  %v543_v50 = vld [vmem:[#allocation7 + $0x8] sm:$0xff] }
 0x292   : > { %3906 = vmatprep.subr.bf16.mxu0 %v3905_v38  ;;  %v3933_v38 = vpack.c.bf16 %v962_v47, %v960_v46  ;;  %v5623_v54 = vpop.permute.xlu1 %1109  ;;  %v5630_v58 = vrot.slane %v543_v50, %v684_v43 }
 0x295   : > { %3908 = vmatpush1.bf16.msra.mxu0 %v3907_v48  ;;  %v5618_v45 = vpop.permute.xlu0 %1071  ;;  %v3935_v48 = vpack.c.bf16 %v961_v53, %v959_v52 }
 0x296   : > { %3910 = vmatprep.subr.bf16.mxu0 %v3909_v55  ;;  %v5644_v1 = vpop.permute.xlu1 %1077 }
 0x299   : > { %3912 = vmatpush1.bf16.msra.mxu0 %v3911_v60  ;;  %v5628_v57 = vpop.permute.xlu0 %1107 }
 0x29a   : > { %3914 = vmatprep.subr.bf16.mxu0 %v3913_v63 }
 0x29d   : > { %3916 = vmatpush1.bf16.msra.mxu0 %v3915_v5  ;;  %v5656_v8 = vpop.permute.xlu0 %1075 }
 0x29e   : > { %3918 = vmatprep.subr.bf16.mxu0 %v3917_v7 }
 0x2a1   : > { %3920 = vmatpush1.bf16.msra.mxu0 %v3919_v14  ;;  %v5678_v18 = vpop.permute.xlu0 %1111 }
 0x2a2   : > { %3922 = vmatprep.subr.bf16.mxu0 %v3921_v15 }
 0x2a5   : > { %3924 = vmatpush1.bf16.msra.mxu0 %v3923_v23 }
 0x2a6   : > { %3926 = vmatprep.subr.bf16.mxu0 %v3925_v25 }
 0x2a9   : > { %3928 = vmatpush1.bf16.msra.mxu0 %v3927_v32 }
 0x2aa   : > { %3930 = vmatprep.subr.bf16.mxu0 %v3929_v34 }
 0x2ad   : > { %3932 = vmatpush1.bf16.msra.mxu0 %v3931_v37 }
 0x2ae   : > { %3934 = vmatprep.subr.bf16.mxu0 %v3933_v38 }
 0x2b1   : > { %3936 = vmatpush1.bf16.msra.mxu0 %v3935_v48 }
 0x33b   : > { %v780_v39 = vpop.f32.mrb[0].mxu0 }
 0x33c   : > { %v5626_v55 = vadd.f32 %v780_v39, %v5621_v29  ;;  %v782_v56 = vpop.f32.mrb[1].mxu0 }
 0x33d   : > { %v5639_v63 = vadd.f32 %v782_v56, %v5630_v58 }
 0x33e   : > { %3438 = vmatmul.mubr.msk.f32.vlgmr.msra.gmra.mrb[0].mxu1 %vm544_vm0, %v5626_v55  ;;  %v1155_v2 = vmul.f32 %v5589_v51, %v5626_v55  ;;  %v1171_v5 = vmul.f32 %v5593_v61, %v5626_v55 }
 0x33f   : > { %v786_v9 = vpop.f32.mrb[2].mxu0  ;;  %1281 = vmatprep.mubr.f32.mxu1 %v5041_v4  ;;  %6651 = vst [vmem:[#allocation29_spill] sm:$0xff] %v5639_v63 }
 0x340   : > { %v5636_v59 = vadd.f32 %v786_v9, %v5621_v29  ;;  %v788_v60 = vpop.f32.mrb[3].mxu0 }
 0x341   : > { %v5642_v0 = vadd.f32 %v788_v60, %v5630_v58 }
 0x342   : > { %3439 = vmatmul.mubr.msk.f32.gmra.mrb[2].mxu1 %vm544_vm0, %v5636_v59  ;;  %v1156_v3 = vmul.f32 %v5591_v49, %v5636_v59  ;;  %v1172_v7 = vmul.f32 %v5587_v42, %v5636_v59  ;;  %v5671_v42 = vpop.permute.xlu1 %1113 }
 0x343   : > { %6652 = vst [vmem:[#allocation30_spill] sm:$0xff] %v5642_v0  ;;  %v5662_v11 = vpack.c.bf16 %v5642_v0, %v5639_v63  ;;  %v792_v12 = vpop.f32.mrb[4].mxu0  ;;  %1287 = vmatprep.mubr.f32.mxu1 %v5041_v4 }
 0x344   : > { %v5666_v51 = vadd.f32 %v792_v12, %v5621_v29  ;;  %v794_v49 = vpop.f32.mrb[5].mxu0  ;;  %v4369_v61 = vpack.i.bf16 %v1156_v3, %v1155_v2  ;;  %v4364_v14 = vpack.i.bf16 %v1172_v7, %v1171_v5 }
 0x345   : > { %6653 = vst [vmem:[#allocation31_spill] sm:$0xff] %v5662_v11  ;;  %v5681_v19 = vadd.f32 %v794_v49, %v5630_v58 }
 0x346   : > { %4370 = vrot.lane.b32.xlu1 %v4369_v61, %s5043_s26  ;;  %3440 = vmatmul.mubr.msk.f32.gmra.mrb[4].mxu1 %vm544_vm0, %v5666_v51  ;;  %v1173_v25 = vmul.f32 %v5597_v13, %v5666_v51  ;;  %v1157_v27 = vmul.f32 %v5601_v24, %v5666_v51  ;;  %v1082_v24 = vpop.permute.xlu1 %1081 }
 0x347   : > { %4365 = vrot.lane.b32.xlu0 %v4364_v14, %s5043_s26  ;;  %v798_v15 = vpop.f32.mrb[6].mxu0  ;;  %1293 = vmatprep.mubr.f32.mxu1 %v5041_v4  ;;  %6654 = vst [vmem:[#allocation32_spill] sm:$0xff] %v5681_v19 }
 0x348   : > { %v5676_v16 = vadd.f32 %v798_v15, %v5621_v29  ;;  %v800_v17 = vpop.f32.mrb[7].mxu0 }
 0x349   : > { %v5684_v23 = vadd.f32 %v800_v17, %v5630_v58 }
 0x34a   : > { %3441 = vmatmul.mubr.msk.f32.gmra.mrb[6].mxu1 %vm544_vm0, %v5676_v16  ;;  %v1174_v26 = vmul.f32 %v5595_v6, %v5676_v16  ;;  %v1158_v30 = vmul.f32 %v5599_v22, %v5676_v16  ;;  %v5709_v22 = vpop.permute.xlu0 %1079  ;;  %v5732_v48 = vpop.permute.xlu1 %1117 }
 0x34b   : > { %6655 = vst [vmem:[#allocation33_spill] sm:$0xff] %v5684_v23  ;;  %v5700_v32 = vpack.c.bf16 %v5684_v23, %v5681_v19  ;;  %v804_v34 = vpop.f32.mrb[8].mxu0  ;;  %1299 = vmatprep.mubr.f32.mxu1 %v5041_v4  ;;  %v871_v19 = vld [vmem:[#allocation11 + $0x20] sm:$0xff] }
 0x34c   : > { %v5704_v13 = vadd.f32 %v804_v34, %v5621_v29  ;;  %v806_v6 = vpop.f32.mrb[9].mxu0  ;;  %v4374_v35 = vpack.i.bf16 %v1174_v26, %v1173_v25  ;;  %v4379_v20 = vpack.i.bf16 %v1158_v30, %v1157_v27  ;;  %v966_v30 = vld [vmem:[#allocation16 + $0x18] sm:$0xff] }
 0x34d   : > { %6656 = vst [vmem:[#allocation34_spill] sm:$0xff] %v5700_v32  ;;  %v5717_v47 = vadd.f32 %v806_v6, %v5630_v58  ;;  %v965_v6 = vld [vmem:[#allocation16 + $0x10] sm:$0xff] }
 0x34e   : > { %3442 = vmatmul.mubr.msk.f32.gmra.mrb[8].mxu1 %vm544_vm0, %v5704_v13  ;;  %4375 = vrot.lane.b32.xlu0 %v4374_v35, %s5043_s26  ;;  %v1175_v38 = vmul.f32 %v5605_v36, %v5704_v13  ;;  %v1159_v53 = vmul.f32 %v5609_v28, %v5704_v13  ;;  %v5744_v3 = vpop.permute.xlu0 %1115  ;;  %v1086_v12 = vpop.permute.xlu1 %1085  ;;  %v1163_v35 = vmul.f32 %v5656_v8, %v5626_v55  ;;  %v968_v8 = vld [vmem:[#allocation16 + $0x28] sm:$0xff] }
 0x34f   : > { %4380 = vrot.lane.b32.xlu1 %v4379_v20, %s5043_s26  ;;  %v810_v37 = vpop.f32.mrb[10].mxu0  ;;  %1305 = vmatprep.mubr.f32.mxu1 %v5041_v4  ;;  %6657 = vst [vmem:[#allocation35_spill] sm:$0xff] %v5717_v47 }
 0x350   : > { %v5714_v43 = vadd.f32 %v810_v37, %v5621_v29  ;;  %v812_v46 = vpop.f32.mrb[11].mxu0 }
 0x351   : > { %v5720_v50 = vadd.f32 %v812_v46, %v5630_v58  ;;  %v1166_v46 = vmul.f32 %v1082_v24, %v5676_v16  ;;  %v1181_v24 = vmul.f32 %v5678_v18, %v5666_v51  ;;  %v976_v18 = vld [vmem:[#allocation16 + $0x68] sm:$0xff] }
 0x352   : > { %3443 = vmatmul.mubr.msk.f32.gmra.mrb[10].mxu1 %vm544_vm0, %v5714_v43  ;;  %v1176_v52 = vmul.f32 %v5603_v33, %v5714_v43  ;;  %v1160_v39 = vmul.f32 %v5607_v40, %v5714_v43  ;;  %v1084_v17 = vpop.permute.xlu0 %1083  ;;  %v1122_v37 = vpop.permute.xlu1 %1121 }
 0x353   : > { %6658 = vst [vmem:[#allocation36_spill] sm:$0xff] %v5720_v50  ;;  %v5738_v9 = vpack.c.bf16 %v5720_v50, %v5717_v47  ;;  %v816_v60 = vpop.f32.mrb[12].mxu0  ;;  %1311 = vmatprep.mubr.f32.mxu1 %v5041_v4 }
 0x354   : > { %v5742_v33 = vadd.f32 %v816_v60, %v5621_v29  ;;  %v818_v36 = vpop.f32.mrb[13].mxu0  ;;  %v4384_v28 = vpack.i.bf16 %v1176_v52, %v1175_v38  ;;  %v4389_v2 = vpack.i.bf16 %v1160_v39, %v1159_v53  ;;  %v1182_v52 = vmul.f32 %v5671_v42, %v5676_v16  ;;  %v970_v53 = vld [vmem:[#allocation16 + $0x38] sm:$0xff] }
 0x355   : > { %6659 = vst [vmem:[#allocation37_spill] sm:$0xff] %v5738_v9  ;;  %v5755_v49 = vadd.f32 %v818_v36, %v5630_v58  ;;  %v5795_v60 = vpack.c.bf16 %v970_v53, %v968_v8  ;;  %v969_v36 = vld [vmem:[#allocation16 + $0x30] sm:$0xff] }
 0x356   : > { %3444 = vmatmul.mubr.msk.f32.gmra.mrb[12].mxu1 %vm544_vm0, %v5742_v33  ;;  %4385 = vrot.lane.b32.xlu0 %v4384_v28, %s5043_s26  ;;  %v1177_v14 = vmul.f32 %v5613_v41, %v5742_v33  ;;  %v1164_v41 = vmul.f32 %v5644_v1, %v5636_v59  ;;  %v1179_v1 = vmul.f32 %v5628_v57, %v5626_v55  ;;  %v1120_v39 = vpop.permute.xlu0 %1119  ;;  %v967_v57 = vld [vmem:[#allocation16 + $0x20] sm:$0xff]  ;;  %v981_v53 = vld [vmem:[#allocation16 + $0x90] sm:$0xff] }
 0x357   : > { %4390 = vrot.lane.b32.xlu1 %v4389_v2, %s5043_s26  ;;  %v822_v40 = vpop.f32.mrb[14].mxu0  ;;  %1317 = vmatprep.mubr.f32.mxu1 %v5041_v4  ;;  %6660 = vst [vmem:[#allocation38_spill] sm:$0xff] %v5755_v49  ;;  %v1165_v28 = vmul.f32 %v5709_v22, %v5666_v51  ;;  %v5803_v42 = vpack.c.bf16 %v969_v36, %v967_v57 }
 0x358   : > { %v5752_v5 = vadd.f32 %v822_v40, %v5621_v29  ;;  %v824_v7 = vpop.f32.mrb[15].mxu0  ;;  %v1161_v29 = vmul.f32 %v5618_v45, %v5742_v33  ;;  %v964_v45 = vld [vmem:[#allocation16 + $0x8] sm:$0xff]  ;;  %v1168_v2 = vmul.f32 %v1086_v12, %v5714_v43  ;;  %v1184_v22 = vmul.f32 %v5732_v48, %v5714_v43  ;;  %v1090_v12 = vpop.permute.xlu1 %1089 }
 0x359   : > { %v5758_v61 = vadd.f32 %v824_v7, %v5630_v58  ;;  %v5780_v34 = vpack.c.bf16 %v966_v30, %v964_v45  ;;  %v972_v40 = vld [vmem:[#allocation16 + $0x48] sm:$0xff]  ;;  %v974_v7 = vld [vmem:[#allocation16 + $0x58] sm:$0xff]  ;;  %v975_v30 = vld [vmem:[#allocation16 + $0x60] sm:$0xff]  ;;  %v1183_v48 = vmul.f32 %v5744_v3, %v5704_v13  ;;  %v1185_v36 = vmul.f32 %v1120_v39, %v5742_v33 }
 0x35a   : > { %3445 = vmatmul.mubr.msk.f32.gmra.mrb[14].mxu1 %vm544_vm0, %v5752_v5  ;;  %v1178_v4 = vmul.f32 %v5611_v21, %v5752_v5  ;;  %v1162_v15 = vmul.f32 %v5616_v44, %v5752_v5  ;;  %v1180_v21 = vmul.f32 %v5623_v54, %v5636_v59  ;;  %v963_v44 = vld [vmem:[#allocation16] sm:$0xff]  ;;  %v4409_v54 = vpack.i.bf16 %v1164_v41, %v1163_v35  ;;  %v973_v41 = vld [vmem:[#allocation16 + $0x50] sm:$0xff]  ;;  %v982_v35 = vld [vmem:[#allocation16 + $0x98] sm:$0xff] }
 0x35b   : > { %6661 = vst [vmem:[#allocation39_spill] sm:$0xff] %v5758_v61  ;;  %v5774_v25 = vpack.c.bf16 %v5758_v61, %v5755_v49  ;;  %v5788_v20 = vpack.c.bf16 %v965_v6, %v963_v44  ;;  %4153 = vmatprep.subr.bf16.mxu1 %v5780_v34  ;;  %v977_v44 = vld [vmem:[#allocation16 + $0x70] sm:$0xff]  ;;  %v980_v6 = vld [vmem:[#allocation16 + $0x88] sm:$0xff]  ;;  %v979_v3 = vld [vmem:[#allocation16 + $0x80] sm:$0xff] }
 0x35c   : > { %v4394_v26 = vpack.i.bf16 %v1178_v4, %v1177_v14  ;;  %v4399_v27 = vpack.i.bf16 %v1162_v15, %v1161_v29  ;;  %v4404_v38 = vpack.i.bf16 %v1180_v21, %v1179_v1  ;;  %v971_v14 = vld [vmem:[#allocation16 + $0x40] sm:$0xff]  ;;  %v4419_v4 = vpack.i.bf16 %v1166_v46, %v1165_v28  ;;  %v984_v28 = vld [vmem:[#allocation16 + $0xa8] sm:$0xff]  ;;  %v990_v39 = vld [vmem:[#allocation16 + $0xd8] sm:$0xff] }
 0x35d   : > { %6662 = vst [vmem:[#allocation40_spill] sm:$0xff] %v5774_v25  ;;  %4169 = vmatpush1.bf16.msra.mxu1 %v5788_v20  ;;  %v4414_v29 = vpack.i.bf16 %v1182_v52, %v1181_v24  ;;  %v5810_v15 = vpack.c.bf16 %v974_v7, %v972_v40  ;;  %v5813_v21 = vpack.c.bf16 %v973_v41, %v971_v14  ;;  %v983_v14 = vld [vmem:[#allocation16 + $0xa0] sm:$0xff]  ;;  %v869_v49 = vld [vmem:[#allocation11 + $0x10] sm:$0xff] }
 0x35e   : > { %4395 = vrot.lane.b32.xlu0 %v4394_v26, %s5043_s26  ;;  %4400 = vrot.lane.b32.xlu1 %v4399_v27, %s5043_s26  ;;  %v978_v26 = vld [vmem:[#allocation16 + $0x78] sm:$0xff]  ;;  %v1167_v27 = vmul.f32 %v1084_v17, %v5704_v13  ;;  %v1170_v17 = vmul.f32 %v1090_v12, %v5752_v5  ;;  %v4424_v46 = vpack.i.bf16 %v1184_v22, %v1183_v48  ;;  %v991_v48 = vld [vmem:[#allocation16 + $0xe0] sm:$0xff] }
 0x35f   : > { %4154 = vmatprep.subr.bf16.mxu1 %v5795_v60  ;;  %v5815_v45 = vpack.c.bf16 %v978_v26, %v976_v18  ;;  %v5825_v52 = vpack.c.bf16 %v977_v44, %v975_v30  ;;  %v5828_v8 = vpack.c.bf16 %v982_v35, %v980_v6  ;;  %v5835_v40 = vpack.c.bf16 %v981_v53, %v979_v3  ;;  %v987_v18 = vld [vmem:[#allocation16 + $0xc0] sm:$0xff]  ;;  %v989_v26 = vld [vmem:[#allocation16 + $0xd0] sm:$0xff]  ;;  %v994_v12 = vld [vmem:[#allocation16 + $0xf8] sm:$0xff] }
 0x360   : > { %v4429_v1 = vpack.i.bf16 %v1168_v2, %v1167_v27  ;;  %v992_v27 = vld [vmem:[#allocation16 + $0xe8] sm:$0xff]  ;;  %v5849_v30 = vpack.c.bf16 %v989_v26, %v987_v18  ;;  %v993_v6 = vld [vmem:[#allocation16 + $0xf0] sm:$0xff]  ;;  %v1002_v53 = vld [vmem:[#allocation16 + $0x138] sm:$0xff] }
 0x361   : > { %4170 = vmatpush1.bf16.msra.mxu1 %v5803_v42  ;;  %v5852_v44 = vpack.c.bf16 %v994_v12, %v992_v27  ;;  %v996_v35 = vld [vmem:[#allocation16 + $0x108] sm:$0xff]  ;;  %v1010_v26 = vld [vmem:[#allocation16 + $0x178] sm:$0xff] }
 0x362   : > { %4405 = vrot.lane.b32.xlu0 %v4404_v38, %s5043_s26  ;;  %4410 = vrot.lane.b32.xlu1 %v4409_v54, %s5043_s26  ;;  %v1088_v54 = vpop.permute.xlu0 %1087  ;;  %v1186_v38 = vmul.f32 %v1122_v37, %v5752_v5  ;;  %v986_v37 = vld [vmem:[#allocation16 + $0xb8] sm:$0xff]  ;;  %v1000_v3 = vld [vmem:[#allocation16 + $0x128] sm:$0xff] }
 0x363   : > { %4155 = vmatprep.subr.bf16.mxu1 %v5810_v15  ;;  %v1169_v57 = vmul.f32 %v1088_v54, %v5742_v33  ;;  %v5838_v7 = vpack.c.bf16 %v986_v37, %v984_v28  ;;  %v5855_v54 = vpack.c.bf16 %v993_v6, %v991_v48  ;;  %v999_v28 = vld [vmem:[#allocation16 + $0x120] sm:$0xff]  ;;  %v1001_v37 = vld [vmem:[#allocation16 + $0x130] sm:$0xff]  ;;  %v1008_v18 = vld [vmem:[#allocation16 + $0x168] sm:$0xff] }
 0x364   : > { %v4434_v2 = vpack.i.bf16 %v1186_v38, %v1185_v36  ;;  %v997_v38 = vld [vmem:[#allocation16 + $0x110] sm:$0xff]  ;;  %v5864_v36 = vpack.c.bf16 %v1002_v53, %v1000_v3  ;;  %v5876_v12 = vpack.c.bf16 %v1010_v26, %v1008_v18  ;;  %v1007_v48 = vld [vmem:[#allocation16 + $0x160] sm:$0xff]  ;;  %v1020_v26 = vld [vmem:[#allocation16 + $0x1c8] sm:$0xff] }
 0x365   : > { %4171 = vmatpush1.bf16.msra.mxu1 %v5813_v21  ;;  %v4439_v24 = vpack.i.bf16 %v1170_v17, %v1169_v57  ;;  %v1009_v6 = vld [vmem:[#allocation16 + $0x170] sm:$0xff]  ;;  %v1011_v3 = vld [vmem:[#allocation16 + $0x180] sm:$0xff] }
 0x366   : > { %4415 = vrot.lane.b32.xlu0 %v4414_v29, %s5043_s26  ;;  %4420 = vrot.lane.b32.xlu1 %v4419_v4, %s5043_s26  ;;  %v985_v4 = vld [vmem:[#allocation16 + $0xb0] sm:$0xff]  ;;  %v988_v29 = vld [vmem:[#allocation16 + $0xc8] sm:$0xff] }
 0x367   : > { %4156 = vmatprep.subr.bf16.mxu1 %v5815_v45  ;;  %v5843_v22 = vpack.c.bf16 %v985_v4, %v983_v14  ;;  %v5846_v41 = vpack.c.bf16 %v990_v39, %v988_v29  ;;  %v5867_v14 = vpack.c.bf16 %v1001_v37, %v999_v28  ;;  %v1003_v29 = vld [vmem:[#allocation16 + $0x140] sm:$0xff]  ;;  %v1005_v39 = vld [vmem:[#allocation16 + $0x150] sm:$0xff]  ;;  %v1016_v37 = vld [vmem:[#allocation16 + $0x1a8] sm:$0xff] }
 0x368   : > { %v5873_v27 = vpack.c.bf16 %v1005_v39, %v1003_v29  ;;  %v1013_v53 = vld [vmem:[#allocation16 + $0x190] sm:$0xff]  ;;  %v1015_v29 = vld [vmem:[#allocation16 + $0x1a0] sm:$0xff] }
 0x369   : > { %4172 = vmatpush1.bf16.msra.mxu1 %v5825_v52  ;;  %v5885_v28 = vpack.c.bf16 %v1013_v53, %v1011_v3  ;;  %v1017_v39 = vld [vmem:[#allocation16 + $0x1b0] sm:$0xff]  ;;  %v1024_v53 = vld [vmem:[#allocation16 + $0x1e8] sm:$0xff] }
 0x36a   : > { %4425 = vrot.lane.b32.xlu0 %v4424_v46, %s5043_s26  ;;  %4430 = vrot.lane.b32.xlu1 %v4429_v1, %s5043_s26  ;;  %v998_v1 = vld [vmem:[#allocation16 + $0x118] sm:$0xff]  ;;  %v995_v46 = vld [vmem:[#allocation16 + $0x100] sm:$0xff]  ;;  %v5891_v18 = vpack.c.bf16 %v1017_v39, %v1015_v29  ;;  %v1025_v29 = vld [vmem:[#allocation16 + $0x1f0] sm:$0xff] }
 0x36b   : > { %4157 = vmatprep.subr.bf16.mxu1 %v5828_v8  ;;  %v5858_v17 = vpack.c.bf16 %v998_v1, %v996_v35  ;;  %v5861_v57 = vpack.c.bf16 %v997_v38, %v995_v46  ;;  %v1012_v35 = vld [vmem:[#allocation16 + $0x188] sm:$0xff]  ;;  %v1014_v1 = vld [vmem:[#allocation16 + $0x198] sm:$0xff]  ;;  %v5879_v46 = vpack.c.bf16 %v1009_v6, %v1007_v48 }
 0x36c   : > { %v5882_v38 = vpack.c.bf16 %v1014_v1, %v1012_v35  ;;  %v1022_v48 = vld [vmem:[#allocation16 + $0x1d8] sm:$0xff]  ;;  %v1019_v35 = vld [vmem:[#allocation16 + $0x1c0] sm:$0xff]  ;;  %v1021_v1 = vld [vmem:[#allocation16 + $0x1d0] sm:$0xff] }
 0x36d   : > { %4173 = vmatpush1.bf16.msra.mxu1 %v5835_v40  ;;  %v5895_v6 = vpack.c.bf16 %v1022_v48, %v1020_v26  ;;  %v5897_v3 = vpack.c.bf16 %v1021_v1, %v1019_v35 }
 0x36e   : > { %4435 = vrot.lane.b32.xlu0 %v4434_v2, %s5043_s26  ;;  %4440 = vrot.lane.b32.xlu1 %v4439_v24, %s5043_s26  ;;  %v1004_v24 = vld [vmem:[#allocation16 + $0x148] sm:$0xff]  ;;  %v1006_v2 = vld [vmem:[#allocation16 + $0x158] sm:$0xff] }
 0x36f   : > { %4158 = vmatprep.subr.bf16.mxu1 %v5838_v7  ;;  %v5870_v4 = vpack.c.bf16 %v1006_v2, %v1004_v24  ;;  %v1018_v24 = vld [vmem:[#allocation16 + $0x1b8] sm:$0xff]  ;;  %6663 = vst [vmem:[#allocation41_spill] sm:$0xff] %v5895_v6  ;;  %6664 = vst [vmem:[#allocation42_spill] sm:$0xff] %v5897_v3 }
 0x370   : > { %v5889_v2 = vpack.c.bf16 %v1018_v24, %v1016_v37  ;;  %v1026_v37 = vld [vmem:[#allocation16 + $0x1f8] sm:$0xff]  ;;  %v1023_v24 = vld [vmem:[#allocation16 + $0x1e0] sm:$0xff] }
 0x371   : > { %4174 = vmatpush1.bf16.msra.mxu1 %v5843_v22  ;;  %v5901_v39 = vpack.c.bf16 %v1026_v37, %v1024_v53  ;;  %v5903_v58 = vpack.c.bf16 %v1025_v29, %v1023_v24  ;;  %v868_v24 = vld [vmem:[#allocation11 + $0x8] sm:$0xff] }
 0x372   : > { %4159 = vmatprep.subr.bf16.mxu1 %v5846_v41 }
 0x373   : > { %6665 = vst [vmem:[#allocation43_spill] sm:$0xff] %v5901_v39  ;;  %6666 = vst [vmem:[#allocation44_spill] sm:$0xff] %v5903_v58 }
 0x375   : > { %4175 = vmatpush1.bf16.msra.mxu1 %v5849_v30 }
 0x376   : > { %4160 = vmatprep.subr.bf16.mxu1 %v5852_v44 }
 0x379   : > { %4176 = vmatpush1.bf16.msra.mxu1 %v5855_v54 }
 0x37a   : > { %4161 = vmatprep.subr.bf16.mxu1 %v5858_v17 }
 0x37d   : > { %4177 = vmatpush1.bf16.msra.mxu1 %v5861_v57 }
 0x37e   : > { %4162 = vmatprep.subr.bf16.mxu1 %v5864_v36 }
 0x381   : > { %4178 = vmatpush1.bf16.msra.mxu1 %v5867_v14 }
 0x382   : > { %4163 = vmatprep.subr.bf16.mxu1 %v5870_v4 }
 0x385   : > { %4179 = vmatpush1.bf16.msra.mxu1 %v5873_v27 }
 0x386   : > { %4164 = vmatprep.subr.bf16.mxu1 %v5876_v12 }
 0x389   : > { %4180 = vmatpush1.bf16.msra.mxu1 %v5879_v46 }
 0x38a   : > { %4165 = vmatprep.subr.bf16.mxu1 %v5882_v38 }
 0x38d   : > { %4181 = vmatpush1.bf16.msra.mxu1 %v5885_v28 }
 0x38e   : > { %4166 = vmatprep.subr.bf16.mxu1 %v5889_v2 }
 0x391   : > { %4182 = vmatpush1.bf16.msra.mxu1 %v5891_v18 }
 0x392   : > { %4167 = vmatprep.subr.bf16.mxu1 %v5895_v6 }
 0x395   : > { %4183 = vmatpush1.bf16.msra.mxu1 %v5897_v3 }
 0x396   : > { %4168 = vmatprep.subr.bf16.mxu1 %v5901_v39 }
 0x399   : > { %4184 = vmatpush1.bf16.msra.mxu1 %v5903_v58  ;;  %v889_v58 = vld [vmem:[#allocation13 + $0x30] sm:$0xff] }
 0x3b8   : > { %v4371_v53 = vpop.permute.xlu1 %4370 }
 0x3b9   : > { %v4366_v26 = vpop.permute.xlu0 %4365  ;;  %v4373_v29 = vunpack.i.h.bf16 %v4371_v53  ;;  %v4372_v31 = vunpack.i.l.bf16 %v4371_v53 }
 0x3ba   : > { %v4368_v48 = vunpack.i.h.bf16 %v4366_v26  ;;  %v4367_v35 = vunpack.i.l.bf16 %v4366_v26 }
 0x3bc   : > { %v3937_v56 = vpack.c.bf16 %v4368_v48, %v4367_v35  ;;  %v870_v48 = vld [vmem:[#allocation11 + $0x18] sm:$0xff]  ;;  %v3940_v35 = vpack.c.bf16 %v4373_v29, %v4372_v31  ;;  %v888_v31 = vld [vmem:[#allocation13 + $0x28] sm:$0xff] }
 0x3be   : > { %3939 = vmatprep.subr.msk.bf16.mxu0 %vm5909_vm1, %v3937_v56 }
 0x3c0   : > { %v4376_v37 = vpop.permute.xlu0 %4375 }
 0x3c1   : > { %v4378_v25 = vunpack.i.h.bf16 %v4376_v37  ;;  %v4377_v26 = vunpack.i.l.bf16 %v4376_v37  ;;  %v4381_v61 = vpop.permute.xlu1 %4380 }
 0x3c2   : > { %v4383_v29 = vunpack.i.h.bf16 %v4381_v61 }
 0x3c3   : > { %v3943_v47 = vpack.c.bf16 %v4378_v25, %v4377_v26  ;;  %v887_v25 = vld [vmem:[#allocation13 + $0x20] sm:$0xff] }
 0x3c8   : > { %v4386_v50 = vpop.permute.xlu0 %4385 }
 0x3c9   : > { %v4387_v23 = vunpack.i.l.bf16 %v4386_v50 }
 0x411   : > { %v5915_v62 = vpop.f32.mrb[0].mxu1 }
 0x412   : > { %6669 = vst [vmem:[#allocation45_spill] sm:$0xff] %v5915_v62  ;;  %v5917_v9 = vpop.f32.mrb[1].mxu1  ;;  %v1324_v11 = vmul.f32 %v5915_v62, %v867_v10  ;;  %v872_v10 = vld [vmem:[#allocation11 + $0x28] sm:$0xff] }
 0x413   : > { %v1325_v32 = vmul.f32 %v5917_v9, %v868_v24 }
 0x415   : > { %v5921_v56 = vpop.f32.mrb[2].mxu1  ;;  %1404 = vmatprep.mubr.f32.mxu0 %v1325_v32  ;;  %v4382_v32 = vunpack.i.l.bf16 %v4381_v61  ;;  %v4391_v61 = vpop.permute.xlu1 %4390 }
 0x416   : > { %6670 = vst [vmem:[#allocation46_spill] sm:$0xff] %v5921_v56  ;;  %v5923_v53 = vpop.f32.mrb[3].mxu1  ;;  %1405 = vmatmul.mubr.f32.vlgmr.msra.gmra.mrb[16].mxu0 %v1324_v11  ;;  %v1326_v24 = vmul.f32 %v5921_v56, %v869_v49  ;;  %v4388_v11 = vunpack.i.h.bf16 %v4386_v50  ;;  %v874_v49 = vld [vmem:[#allocation11 + $0x38] sm:$0xff]  ;;  %v4396_v50 = vpop.permute.xlu0 %4395 }
 0x417   : > { %6671 = vst [vmem:[#allocation47_spill] sm:$0xff] %v5923_v53  ;;  %v1327_v37 = vmul.f32 %v5923_v53, %v870_v48  ;;  %3942 = vmatpush3.bf16.xpose.msk.msra.mxu0 %vm5909_vm1, %v3940_v35  ;;  %v890_v56 = vld [vmem:[#allocation13 + $0x38] sm:$0xff]  ;;  %v3946_v62 = vpack.c.bf16 %v4383_v29, %v4382_v32  ;;  %v4393_v29 = vunpack.i.h.bf16 %v4391_v61  ;;  %v875_v32 = vld [vmem:[#allocation11 + $0x40] sm:$0xff] }
 0x418   : > { %3945 = vmatprep.subr.msk.bf16.mxu0 %vm5909_vm1, %v3943_v47  ;;  %v873_v47 = vld [vmem:[#allocation11 + $0x30] sm:$0xff]  ;;  %v3949_v3 = vpack.c.bf16 %v4388_v11, %v4387_v23  ;;  %v891_v23 = vld [vmem:[#allocation13 + $0x40] sm:$0xff]  ;;  %v878_v11 = vld [vmem:[#allocation11 + $0x58] sm:$0xff] }
 0x419   : > { %v1289_v26 = vpop.f32.mrb[4].mxu1  ;;  %1410 = vmatprep.mubr.f32.mxu0 %v1327_v37 }
 0x41a   : > { %v1291_v63 = vpop.f32.mrb[5].mxu1  ;;  %1411 = vmatmul.mubr.f32.gmra.mrb[18].mxu0 %v1326_v24  ;;  %v1328_v35 = vmul.f32 %v1289_v26, %v871_v19  ;;  %v1730_v53 = vmul.f32 %v1289_v26, %v887_v25  ;;  %v4397_v26 = vunpack.i.l.bf16 %v4396_v50 }
 0x41b   : > { %v1329_v48 = vmul.f32 %v1291_v63, %v872_v10  ;;  %v1731_v0 = vmul.f32 %v1291_v63, %v888_v31  ;;  %v876_v10 = vld [vmem:[#allocation11 + $0x48] sm:$0xff] }
 0x41c   : > { %v892_v31 = vld [vmem:[#allocation13 + $0x48] sm:$0xff] }
 0x41d   : > { %v1295_v39 = vpop.f32.mrb[6].mxu1  ;;  %1416 = vmatprep.mubr.f32.mxu0 %v1329_v48  ;;  %1818 = vmatprep.mubr.f32.mxu1 %v1731_v0  ;;  %v4392_v0 = vunpack.i.l.bf16 %v4391_v61  ;;  %v4401_v61 = vpop.permute.xlu1 %4400 }
 0x41e   : > { %v1297_v6 = vpop.f32.mrb[7].mxu1  ;;  %1417 = vmatmul.mubr.f32.gmra.mrb[20].mxu0 %v1328_v35  ;;  %1819 = vmatmul.mubr.f32.vlgmr.msra.gmra.mrb[16].mxu1 %v1730_v53  ;;  %v1330_v63 = vmul.f32 %v1295_v39, %v873_v47  ;;  %v1732_v19 = vmul.f32 %v1295_v39, %v889_v58  ;;  %v4398_v53 = vunpack.i.h.bf16 %v4396_v50  ;;  %v877_v35 = vld [vmem:[#allocation11 + $0x50] sm:$0xff]  ;;  %v4406_v50 = vpop.permute.xlu0 %4405 }
 0x41f   : > { %v1331_v37 = vmul.f32 %v1297_v6, %v874_v49  ;;  %v1733_v24 = vmul.f32 %v1297_v6, %v890_v56  ;;  %3948 = vmatpush3.bf16.xpose.msk.msra.mxu0 %vm5909_vm1, %v3946_v62  ;;  %v3952_v48 = vpack.c.bf16 %v4393_v29, %v4392_v0  ;;  %v893_v49 = vld [vmem:[#allocation13 + $0x50] sm:$0xff]  ;;  %v880_v29 = vld [vmem:[#allocation11 + $0x68] sm:$0xff] }
 0x420   : > { %3951 = vmatprep.subr.msk.bf16.mxu0 %vm5909_vm1, %v3949_v3  ;;  %v894_v3 = vld [vmem:[#allocation13 + $0x58] sm:$0xff]  ;;  %v896_v0 = vld [vmem:[#allocation13 + $0x68] sm:$0xff] }
 0x421   : > { %v1301_v25 = vpop.f32.mrb[8].mxu1  ;;  %1422 = vmatprep.mubr.f32.mxu0 %v1331_v37  ;;  %1824 = vmatprep.mubr.f32.mxu1 %v1733_v24  ;;  %v3955_v37 = vpack.c.bf16 %v4398_v53, %v4397_v26  ;;  %v895_v53 = vld [vmem:[#allocation13 + $0x60] sm:$0xff] }
 0x422   : > { %v1303_v6 = vpop.f32.mrb[9].mxu1  ;;  %1423 = vmatmul.mubr.f32.gmra.mrb[22].mxu0 %v1330_v63  ;;  %1825 = vmatmul.mubr.f32.gmra.mrb[18].mxu1 %v1732_v19  ;;  %v1332_v58 = vmul.f32 %v1301_v25, %v875_v32  ;;  %v1734_v39 = vmul.f32 %v1301_v25, %v891_v23  ;;  %v4403_v32 = vunpack.i.h.bf16 %v4401_v61  ;;  %v4402_v23 = vunpack.i.l.bf16 %v4401_v61  ;;  %v879_v25 = vld [vmem:[#allocation11 + $0x60] sm:$0xff] }
 0x423   : > { %v1333_v62 = vmul.f32 %v1303_v6, %v876_v10  ;;  %v1735_v56 = vmul.f32 %v1303_v6, %v892_v31  ;;  %v4408_v6 = vunpack.i.h.bf16 %v4406_v50 }
 0x425   : > { %v1307_v47 = vpop.f32.mrb[10].mxu1  ;;  %1428 = vmatprep.mubr.f32.mxu0 %v1333_v62  ;;  %1830 = vmatprep.mubr.f32.mxu1 %v1735_v56  ;;  %v4407_v62 = vunpack.i.l.bf16 %v4406_v50  ;;  %v4416_v50 = vpop.permute.xlu0 %4415 }
 0x426   : > { %v1309_v24 = vpop.f32.mrb[11].mxu1  ;;  %1429 = vmatmul.mubr.f32.gmra.mrb[24].mxu0 %v1332_v58  ;;  %1831 = vmatmul.mubr.f32.gmra.mrb[20].mxu1 %v1734_v39  ;;  %v1334_v10 = vmul.f32 %v1307_v47, %v877_v35  ;;  %v1736_v31 = vmul.f32 %v1307_v47, %v893_v49  ;;  %v898_v35 = vld [vmem:[#allocation13 + $0x78] sm:$0xff]  ;;  %v3958_v49 = vpack.c.bf16 %v4403_v32, %v4402_v23  ;;  %v881_v47 = vld [vmem:[#allocation11 + $0x70] sm:$0xff] }
 0x427   : > { %v1335_v63 = vmul.f32 %v1309_v24, %v878_v11  ;;  %v1737_v19 = vmul.f32 %v1309_v24, %v894_v3  ;;  %3954 = vmatpush3.bf16.xpose.msk.msra.mxu0 %vm5909_vm1, %v3952_v48  ;;  %v882_v48 = vld [vmem:[#allocation11 + $0x78] sm:$0xff]  ;;  %v4411_v24 = vpop.permute.xlu1 %4410 }
 0x428   : > { %3957 = vmatprep.subr.msk.bf16.mxu0 %vm5909_vm1, %v3955_v37  ;;  %v897_v37 = vld [vmem:[#allocation13 + $0x70] sm:$0xff]  ;;  %v4413_v32 = vunpack.i.h.bf16 %v4411_v24  ;;  %v4412_v23 = vunpack.i.l.bf16 %v4411_v24 }
 0x429   : > { %v1313_v26 = vpop.f32.mrb[12].mxu1  ;;  %1434 = vmatprep.mubr.f32.mxu0 %v1335_v63  ;;  %1836 = vmatprep.mubr.f32.mxu1 %v1737_v19  ;;  %v3961_v63 = vpack.c.bf16 %v4408_v6, %v4407_v62 }
 0x42a   : > { %v1315_v56 = vpop.f32.mrb[13].mxu1  ;;  %1435 = vmatmul.mubr.f32.gmra.mrb[26].mxu0 %v1334_v10  ;;  %1837 = vmatmul.mubr.f32.gmra.mrb[22].mxu1 %v1736_v31  ;;  %v1336_v11 = vmul.f32 %v1313_v26, %v879_v25  ;;  %v1738_v3 = vmul.f32 %v1313_v26, %v895_v53  ;;  %v4418_v25 = vunpack.i.h.bf16 %v4416_v50  ;;  %v4417_v53 = vunpack.i.l.bf16 %v4416_v50 }
 0x42b   : > { %v1337_v58 = vmul.f32 %v1315_v56, %v880_v29  ;;  %v1739_v39 = vmul.f32 %v1315_v56, %v896_v0  ;;  %v3964_v26 = vpack.c.bf16 %v4413_v32, %v4412_v23  ;;  %v4421_v6 = vpop.permute.xlu1 %4420  ;;  %v4426_v56 = vpop.permute.xlu0 %4425 }
 0x42c   : > { %v3967_v62 = vpack.c.bf16 %v4418_v25, %v4417_v53 }
 0x42d   : > { %v1319_v61 = vpop.f32.mrb[14].mxu1  ;;  %1440 = vmatprep.mubr.f32.mxu0 %v1337_v58  ;;  %1842 = vmatprep.mubr.f32.mxu1 %v1739_v39  ;;  %v4423_v58 = vunpack.i.h.bf16 %v4421_v6  ;;  %v4422_v39 = vunpack.i.l.bf16 %v4421_v6 }
 0x42e   : > { %v1321_v19 = vpop.f32.mrb[15].mxu1  ;;  %1441 = vmatmul.mubr.f32.gmra.mrb[28].mxu0 %v1336_v11  ;;  %1843 = vmatmul.mubr.f32.gmra.mrb[24].mxu1 %v1738_v3  ;;  %v1338_v29 = vmul.f32 %v1319_v61, %v881_v47  ;;  %v1740_v0 = vmul.f32 %v1319_v61, %v897_v37  ;;  %v4428_v11 = vunpack.i.h.bf16 %v4426_v56  ;;  %v4427_v3 = vunpack.i.l.bf16 %v4426_v56 }
 0x42f   : > { %v1339_v10 = vmul.f32 %v1321_v19, %v882_v48  ;;  %v1741_v31 = vmul.f32 %v1321_v19, %v898_v35  ;;  %3960 = vmatpush3.bf16.xpose.msk.msra.mxu0 %vm5909_vm1, %v3958_v49  ;;  %v3970_v48 = vpack.c.bf16 %v4423_v58, %v4422_v39  ;;  %v4431_v35 = vpop.permute.xlu1 %4430  ;;  %v4436_v47 = vpop.permute.xlu0 %4435 }
 0x430   : > { %3963 = vmatprep.subr.msk.bf16.mxu0 %vm5909_vm1, %v3961_v63  ;;  %v3973_v49 = vpack.c.bf16 %v4428_v11, %v4427_v3  ;;  %v4433_v37 = vunpack.i.h.bf16 %v4431_v35  ;;  %v4432_v61 = vunpack.i.l.bf16 %v4431_v35  ;;  %v4438_v24 = vunpack.i.h.bf16 %v4436_v47 }
 0x431   : > { %1446 = vmatprep.mubr.f32.mxu0 %v1339_v10  ;;  %1848 = vmatprep.mubr.f32.mxu1 %v1741_v31  ;;  %v4437_v63 = vunpack.i.l.bf16 %v4436_v47 }
 0x432   : > { %1447 = vmatmul.mubr.f32.gmra.mrb[30].mxu0 %v1338_v29  ;;  %1849 = vmatmul.mubr.f32.gmra.mrb[26].mxu1 %v1740_v0  ;;  %v3976_v19 = vpack.c.bf16 %v4433_v37, %v4432_v61 }
 0x433   : > { %3565 = vmatprep.mubr.msk.f32.mxu0 %vm544_vm0, %v5626_v55  ;;  %v4441_v50 = vpop.permute.xlu1 %4440  ;;  %v3979_v10 = vpack.c.bf16 %v4438_v24, %v4437_v63 }
 0x434   : > { %v4443_v31 = vunpack.i.h.bf16 %v4441_v50  ;;  %v4442_v29 = vunpack.i.l.bf16 %v4441_v50 }
 0x436   : > { %v3982_v0 = vpack.c.bf16 %v4443_v31, %v4442_v29 }
 0x437   : > { %3966 = vmatpush3.bf16.xpose.msk.msra.mxu0 %vm5909_vm1, %v3964_v26 }
 0x438   : > { %3969 = vmatprep.subr.msk.bf16.mxu0 %vm5909_vm1, %v3967_v62 }
 0x43f   : > { %3972 = vmatpush3.bf16.xpose.msk.msra.mxu0 %vm5909_vm1, %v3970_v48 }
 0x440   : > { %3975 = vmatprep.subr.msk.bf16.mxu0 %vm5909_vm1, %v3973_v49 }
 0x447   : > { %3978 = vmatpush3.bf16.xpose.msk.msra.mxu0 %vm5909_vm1, %v3976_v19 }
 0x448   : > { %3981 = vmatprep.subr.msk.bf16.mxu0 %vm5909_vm1, %v3979_v10 }
 0x44f   : > { %3984 = vmatpush3.bf16.xpose.msk.msra.mxu0 %vm5909_vm1, %v3982_v0 }
 0x450   : > { %3986 = vmatprep.subr.bf16.mxu0 %v5780_v34  ;;  %v884_v34 = vld [vmem:[#allocation13 + $0x8] sm:$0xff] }
 0x456   : > { %3566 = vmatmul.mubr.msk.f32.vlgmr.msra.gmra.mrb[16].mxu0 %vm544_vm0, %v5626_v55 }
 0x457   : > { %3567 = vmatprep.mubr.msk.f32.mxu0 %vm544_vm0, %v5636_v59  ;;  %3988 = vmatpush1.bf16.msra.mxu0 %v5788_v20  ;;  %v1727_v20 = vmul.f32 %v5917_v9, %v884_v34  ;;  %v6672_v9 = vld [vmem:[#allocation41_spill] sm:$0xff] }
 0x458   : > { %3990 = vmatprep.subr.bf16.mxu0 %v5795_v60  ;;  %v6673_v60 = vld [vmem:[#allocation42_spill] sm:$0xff] }
 0x45a   : > { %3568 = vmatmul.mubr.msk.f32.gmra.mrb[18].mxu0 %vm544_vm0, %v5636_v59 }
 0x45b   : > { %3569 = vmatprep.mubr.msk.f32.mxu0 %vm544_vm0, %v5666_v51  ;;  %3992 = vmatpush1.bf16.msra.mxu0 %v5803_v42  ;;  %v6674_v42 = vld [vmem:[#allocation43_spill] sm:$0xff] }
 0x45c   : > { %3994 = vmatprep.subr.bf16.mxu0 %v5810_v15  ;;  %v883_v15 = vld [vmem:[#allocation13] sm:$0xff] }
 0x45e   : > { %3570 = vmatmul.mubr.msk.f32.gmra.mrb[20].mxu0 %vm544_vm0, %v5666_v51 }
 0x45f   : > { %3571 = vmatprep.mubr.msk.f32.mxu0 %vm544_vm0, %v5676_v16  ;;  %3996 = vmatpush1.bf16.msra.mxu0 %v5813_v21  ;;  %v886_v21 = vld [vmem:[#allocation13 + $0x18] sm:$0xff] }
 0x460   : > { %3998 = vmatprep.subr.bf16.mxu0 %v5815_v45  ;;  %v6675_v45 = vld [vmem:[#allocation44_spill] sm:$0xff] }
 0x462   : > { %3572 = vmatmul.mubr.msk.f32.gmra.mrb[22].mxu0 %vm544_vm0, %v5676_v16 }
 0x463   : > { %3573 = vmatprep.mubr.msk.f32.mxu0 %vm544_vm0, %v5704_v13  ;;  %4000 = vmatpush1.bf16.msra.mxu0 %v5825_v52  ;;  %v6676_v52 = vld [vmem:[#allocation45_spill] sm:$0xff] }
 0x464   : > { %4002 = vmatprep.subr.bf16.mxu0 %v5828_v8  ;;  %v1726_v8 = vmul.f32 %v6676_v52, %v883_v15  ;;  %v4454_v52 = vpack.i.bf16 %v5714_v43, %v5704_v13 }
 0x466   : > { %3574 = vmatmul.mubr.msk.f32.gmra.mrb[24].mxu0 %vm544_vm0, %v5704_v13 }
 0x467   : > { %3575 = vmatprep.mubr.msk.f32.mxu0 %vm544_vm0, %v5714_v43  ;;  %4004 = vmatpush1.bf16.msra.mxu0 %v5835_v40  ;;  %v885_v40 = vld [vmem:[#allocation13 + $0x10] sm:$0xff] }
 0x468   : > { %4006 = vmatprep.subr.bf16.mxu0 %v5838_v7  ;;  %v6677_v7 = vld [vmem:[#allocation47_spill] sm:$0xff] }
 0x46a   : > { %3576 = vmatmul.mubr.msk.f32.gmra.mrb[26].mxu0 %vm544_vm0, %v5714_v43 }
 0x46b   : > { %3577 = vmatprep.mubr.msk.f32.mxu0 %vm544_vm0, %v5742_v33  ;;  %4008 = vmatpush1.bf16.msra.mxu0 %v5843_v22  ;;  %v1729_v22 = vmul.f32 %v6677_v7, %v886_v21 }
 0x46c   : > { %4010 = vmatprep.subr.bf16.mxu0 %v5846_v41  ;;  %v6678_v41 = vld [vmem:[#allocation46_spill] sm:$0xff] }
 0x46e   : > { %3578 = vmatmul.mubr.msk.f32.gmra.mrb[28].mxu0 %vm544_vm0, %v5742_v33 }
 0x46f   : > { %3579 = vmatprep.mubr.msk.f32.mxu0 %vm544_vm0, %v5752_v5  ;;  %4012 = vmatpush1.bf16.msra.mxu0 %v5849_v30  ;;  %v1728_v30 = vmul.f32 %v6678_v41, %v885_v40  ;;  %v4444_v40 = vpack.i.bf16 %v5636_v59, %v5626_v55 }
 0x470   : > { %4014 = vmatprep.subr.bf16.mxu0 %v5852_v44 }
 0x472   : > { %3580 = vmatmul.mubr.msk.f32.gmra.mrb[30].mxu0 %vm544_vm0, %v5752_v5 }
 0x473   : > { %4016 = vmatpush1.bf16.msra.mxu0 %v5855_v54  ;;  %1806 = vmatprep.mubr.f32.mxu0 %v1727_v20 }
 0x474   : > { %4018 = vmatprep.subr.bf16.mxu0 %v5858_v17 }
 0x477   : > { %4020 = vmatpush1.bf16.msra.mxu0 %v5861_v57 }
 0x478   : > { %4022 = vmatprep.subr.bf16.mxu0 %v5864_v36 }
 0x47b   : > { %4024 = vmatpush1.bf16.msra.mxu0 %v5867_v14 }
 0x47c   : > { %4026 = vmatprep.subr.bf16.mxu0 %v5870_v4 }
 0x47f   : > { %4028 = vmatpush1.bf16.msra.mxu0 %v5873_v27 }
 0x480   : > { %4030 = vmatprep.subr.bf16.mxu0 %v5876_v12 }
 0x483   : > { %4032 = vmatpush1.bf16.msra.mxu0 %v5879_v46 }
 0x484   : > { %4034 = vmatprep.subr.bf16.mxu0 %v5882_v38 }
 0x487   : > { %4036 = vmatpush1.bf16.msra.mxu0 %v5885_v28 }
 0x488   : > { %4038 = vmatprep.subr.bf16.mxu0 %v5889_v2 }
 0x48b   : > { %4040 = vmatpush1.bf16.msra.mxu0 %v5891_v18 }
 0x48c   : > { %4042 = vmatprep.subr.bf16.mxu0 %v6672_v9 }
 0x48f   : > { %4044 = vmatpush1.bf16.msra.mxu0 %v6673_v60 }
 0x490   : > { %4046 = vmatprep.subr.bf16.mxu0 %v6674_v42 }
 0x493   : > { %4048 = vmatpush1.bf16.msra.mxu0 %v6675_v45  ;;  %v4449_v45 = vpack.i.bf16 %v5676_v16, %v5666_v51 }
 0x496   : > { %1807 = vmatmul.mubr.f32.vlgmr.msra.gmra.mrb[16].mxu0 %v1726_v8  ;;  %v4459_v8 = vpack.i.bf16 %v5752_v5, %v5742_v33 }
 0x497   : > { %1812 = vmatprep.mubr.f32.mxu0 %v1729_v22 }
 0x49a   : > { %1813 = vmatmul.mubr.f32.gmra.mrb[18].mxu0 %v1728_v30 }
 0x4f1   : > { %v1820_v44 = vpop.f32.mrb[16].mxu1 }
 0x4f2   : > { %v1822_v54 = vpop.f32.mrb[17].mxu1 }
 0x4f5   : > { %v1826_v17 = vpop.f32.mrb[18].mxu1 }
 0x4f6   : > { %v1828_v57 = vpop.f32.mrb[19].mxu1 }
 0x4f9   : > { %v1832_v36 = vpop.f32.mrb[20].mxu1 }
 0x4fa   : > { %v1834_v14 = vpop.f32.mrb[21].mxu1 }
 0x4fd   : > { %v1838_v4 = vpop.f32.mrb[22].mxu1 }
 0x4fe   : > { %v1840_v27 = vpop.f32.mrb[23].mxu1 }
 0x501   : > { %v1844_v12 = vpop.f32.mrb[24].mxu1 }
 0x502   : > { %v1846_v46 = vpop.f32.mrb[25].mxu1 }
 0x505   : > { %v1850_v38 = vpop.f32.mrb[26].mxu1 }
 0x506   : > { %v1852_v28 = vpop.f32.mrb[27].mxu1 }
 0x531   : > { %v1691_v2 = vpop.f32.mrb[20].mxu0 }
 0x532   : > { %v6025_v18 = vadd.f32 %v1820_v44, %v1691_v2  ;;  %v1693_v1 = vpop.f32.mrb[21].mxu0 }
 0x533   : > { %v6027_v32 = vadd.f32 %v1822_v54, %v1693_v1 }
 0x535   : > { %v1697_v23 = vpop.f32.mrb[22].mxu0  ;;  %v1877_v20 = vmax.f32 %v6025_v18, %v6027_v32 }
 0x536   : > { %v6029_v25 = vadd.f32 %v1826_v17, %v1697_v23  ;;  %v1699_v53 = vpop.f32.mrb[23].mxu0 }
 0x537   : > { %v6031_v26 = vadd.f32 %v1828_v57, %v1699_v53 }
 0x539   : > { %v1703_v6 = vpop.f32.mrb[24].mxu0  ;;  %v1880_v9 = vmax.f32 %v6029_v25, %v6031_v26 }
 0x53a   : > { %v6033_v62 = vadd.f32 %v1832_v36, %v1703_v6  ;;  %v1705_v56 = vpop.f32.mrb[25].mxu0 }
 0x53b   : > { %v6035_v58 = vadd.f32 %v1834_v14, %v1705_v56 }
 0x53d   : > { %v1709_v39 = vpop.f32.mrb[26].mxu0  ;;  %v1883_v42 = vmax.f32 %v6033_v62, %v6035_v58 }
 0x53e   : > { %v6037_v11 = vadd.f32 %v1838_v4, %v1709_v39  ;;  %v1711_v3 = vpop.f32.mrb[27].mxu0 }
 0x53f   : > { %v6039_v48 = vadd.f32 %v1840_v27, %v1711_v3 }
 0x541   : > { %v1715_v35 = vpop.f32.mrb[28].mxu0  ;;  %v1886_v60 = vmax.f32 %v6037_v11, %v6039_v48 }
 0x542   : > { %v6041_v49 = vadd.f32 %v1844_v12, %v1715_v35  ;;  %v1717_v47 = vpop.f32.mrb[29].mxu0 }
 0x543   : > { %v6043_v37 = vadd.f32 %v1846_v46, %v1717_v47 }
 0x545   : > { %v1721_v61 = vpop.f32.mrb[30].mxu0  ;;  %v1889_v21 = vmax.f32 %v6041_v49, %v6043_v37 }
 0x546   : > { %v6045_v24 = vadd.f32 %v1850_v38, %v1721_v61  ;;  %v1723_v63 = vpop.f32.mrb[31].mxu0 }
 0x547   : > { %v6047_v19 = vadd.f32 %v1852_v28, %v1723_v63 }
 0x549   : > { %v1892_v15 = vmax.f32 %v6045_v24, %v6047_v19 }
 0x569   : > { %v1808_v50 = vpop.f32.mrb[16].mxu0 }
 0x56a   : > { %v6049_v10 = vpop.f32.mrb[17].mxu0 }
 0x56b   : > { %v1871_v31 = vmax.f32 %v1808_v50, %v6049_v10 }
 0x56d   : > { %1872 = vmax.xlane.f32.xlu0 %v1871_v31  ;;  %v1814_v29 = vpop.f32.mrb[18].mxu0 }
 0x56e   : > { %v6052_v0 = vpop.f32.mrb[19].mxu0 }
 0x56f   : > { %v1874_v34 = vmax.f32 %v1814_v29, %v6052_v0 }
 0x571   : > { %1878 = vmax.xlane.f32.xlu0 %v1877_v20  ;;  %1875 = vmax.xlane.f32.xlu1 %v1874_v34 }
 0x575   : > { %1881 = vmax.xlane.f32.xlu0 %v1880_v9  ;;  %1887 = vmax.xlane.f32.xlu1 %v1886_v60 }
 0x579   : > { %1884 = vmax.xlane.f32.xlu0 %v1883_v42  ;;  %1893 = vmax.xlane.f32.xlu1 %v1892_v15 }
 0x57d   : > { %1890 = vmax.xlane.f32.xlu0 %v1889_v21 }
 0x58a   : > { %4450 = vrot.lane.b32.xlu1 %v4449_v45, %s5044_s21 }
 0x58e   : > { %4455 = vrot.lane.b32.xlu1 %v4454_v52, %s5044_s21 }
 0x592   : > { %4460 = vrot.lane.b32.xlu1 %v4459_v8, %s5044_s21 }
 0x593   : > { %4445 = vrot.lane.b32.xlu0 %v4444_v40, %s5044_s21 }
 0x596   : > { %4470 = vrot.lane.b32.xlu1 %v4449_v45, %s5042_s12 }
 0x597   : > { %4465 = vrot.lane.b32.xlu0 %v4444_v40, %s5042_s12 }
 0x59a   : > { %4480 = vrot.lane.b32.xlu1 %v4459_v8, %s5042_s12 }
 0x59b   : > { %4475 = vrot.lane.b32.xlu0 %v4454_v52, %s5042_s12  ;;  %s533_s12 = scalar_lea.vmem [#allocation19], %s3419_s13  ;;  %s3532_s13 = sshll.u32 %s5129_s23, 10 }
 0x59c   : > { %s6527_s24 = scalar_lea.hbm %s6697_s25, %s3532_s13  ;;  %s3231_s23 = scalar_lea.sflag [#allocation4], %s5434_s15 }
 0x5fa   : > { %v1873_v51 = vpop.xlane.xlu0 %1872 }
 0x5fb   : > { %v1895_v16 = vsub.f32 %v1808_v50, %v1873_v51  ;;  %v1896_v35 = vsub.f32 %v6049_v10, %v1873_v51 }
 0x5fd   : > { %v1911_v13 = vmul.f32 1.442695, %v1895_v16  ;;  %v1913_v31 = vmul.f32 1.442695, %v1896_v35 }
 0x5fe   : > { %v6083_v43 = vpop.xlane.xlu0 %1878  ;;  %v6085_v33 = vpop.xlane.xlu1 %1875 }
 0x5ff   : > { %4520 = vpow2.f32 %v1911_v13  ;;  %v1899_v55 = vsub.f32 %v6025_v18, %v6083_v43  ;;  %v1897_v59 = vsub.f32 %v1814_v29, %v6085_v33  ;;  %v1898_v50 = vsub.f32 %v6052_v0, %v6085_v33  ;;  %v6679_v13 = vld [vmem:[#allocation30_spill] sm:$0xff] }
 0x600   : > { %v1900_v29 = vsub.f32 %v6027_v32, %v6083_v43  ;;  %v6680_v43 = vld [vmem:[#allocation29_spill] sm:$0xff] }
 0x601   : > { %v1919_v5 = vmul.f32 1.442695, %v1899_v55  ;;  %v1915_v7 = vmul.f32 1.442695, %v1897_v59  ;;  %v1917_v0 = vmul.f32 1.442695, %v1898_v50  ;;  %v6681_v33 = vpack.i.bf16 %v6679_v13, %v6680_v43 }
 0x602   : > { %v6090_v22 = vpop.xlane.xlu0 %1881  ;;  %v6092_v41 = vpop.xlane.xlu1 %1887  ;;  %v1921_v32 = vmul.f32 1.442695, %v1900_v29 }
 0x603   : > { %4522 = vpow2.f32 %v1919_v5  ;;  %v1901_v30 = vsub.f32 %v6029_v25, %v6090_v22  ;;  %v1905_v54 = vsub.f32 %v6037_v11, %v6092_v41  ;;  %v1902_v15 = vsub.f32 %v6031_v26, %v6090_v22  ;;  %v6682_v22 = vld [vmem:[#allocation33_spill] sm:$0xff] }
 0x604   : > { %4524 = vpow2.f32 %v1915_v7  ;;  %v1906_v51 = vsub.f32 %v6039_v48, %v6092_v41 }
 0x605   : > { %v1923_v44 = vmul.f32 1.442695, %v1901_v30  ;;  %v1931_v4 = vmul.f32 1.442695, %v1905_v54  ;;  %v1925_v26 = vmul.f32 1.442695, %v1902_v15 }
 0x606   : > { %v6098_v17 = vpop.xlane.xlu0 %1884  ;;  %v6100_v57 = vpop.xlane.xlu1 %1893  ;;  %v6683_v30 = vld [vmem:[#allocation32_spill] sm:$0xff]  ;;  %v1933_v48 = vmul.f32 1.442695, %v1906_v51 }
 0x607   : > { %4526 = vpow2.f32 %v1923_v44  ;;  %v1903_v36 = vsub.f32 %v6033_v62, %v6098_v17  ;;  %v1909_v12 = vsub.f32 %v6045_v24, %v6100_v57  ;;  %v1904_v45 = vsub.f32 %v6035_v58, %v6098_v17  ;;  %v6685_v17 = vld [vmem:[#allocation36_spill] sm:$0xff] }
 0x608   : > { %v6684_v44 = vpack.i.bf16 %v6682_v22, %v6683_v30  ;;  %v1910_v41 = vsub.f32 %v6047_v19, %v6100_v57  ;;  %v6689_v19 = vld [vmem:[#allocation38_spill] sm:$0xff] }
 0x609   : > { %v6104_v14 = vpop.eup %4520  ;;  %v1927_v27 = vmul.f32 1.442695, %v1903_v36  ;;  %v1939_v18 = vmul.f32 1.442695, %v1909_v12  ;;  %v1929_v58 = vmul.f32 1.442695, %v1904_v45 }
 0x60a   : > { %2137 = vrot.lane.b32.xlu0 %v6104_v14, %s5044_s21  ;;  %3697 = vmatprep.mubr.msk.f32.mxu1 %vm1943_vm2, %v6104_v14  ;;  %v6112_v46 = vpop.xlane.xlu0 %1890  ;;  %v4451_v38 = vpop.permute.xlu1 %4450  ;;  %v6686_v36 = vld [vmem:[#allocation35_spill] sm:$0xff]  ;;  %v1944_v50 = vsel %vm1943_vm2, %v6104_v14, 0.0 }
 0x60b   : > { %4528 = vpow2.f32 %v1927_v27  ;;  %v1907_v28 = vsub.f32 %v6041_v49, %v6112_v46  ;;  %v4453_v23 = vunpack.i.h.bf16 %v4451_v38  ;;  %v4452_v62 = vunpack.i.l.bf16 %v4451_v38 }
 0x60c   : > { %4530 = vpow2.f32 %v1931_v4  ;;  %v1908_v55 = vsub.f32 %v6043_v37, %v6112_v46  ;;  %v6687_v37 = vpack.i.bf16 %v6685_v17, %v6686_v36 }
 0x60d   : > { %v6116_v2 = vpop.eup %4522  ;;  %v1935_v1 = vmul.f32 1.442695, %v1907_v28  ;;  %v4053_v49 = vpack.c.bf16 %v4453_v23, %v4452_v62  ;;  %v6688_v28 = vld [vmem:[#allocation39_spill] sm:$0xff] }
 0x60e   : > { %2141 = vrot.lane.b32.xlu0 %v6116_v2, %s5044_s21  ;;  %v4446_v25 = vpop.permute.xlu0 %4445  ;;  %v4456_v53 = vpop.permute.xlu1 %4455  ;;  %v1937_v4 = vmul.f32 1.442695, %v1908_v55  ;;  %v6690_v57 = vpack.i.bf16 %v6688_v28, %v6689_v19 }
 0x60f   : > { %v6120_v6 = vpop.eup %4524  ;;  %4532 = vpow2.f32 %v1935_v1  ;;  %v4448_v56 = vunpack.i.h.bf16 %v4446_v25  ;;  %v4447_v39 = vunpack.i.l.bf16 %v4446_v25  ;;  %v4458_v47 = vunpack.i.h.bf16 %v4456_v53 }
 0x610   : > { %2139 = vrot.lane.b32.xlu1 %v6120_v6, %s5044_s21  ;;  %4534 = vpow2.f32 %v1939_v18  ;;  %v4457_v61 = vunpack.i.l.bf16 %v4456_v53  ;;  %v1941_v18 = vmul.f32 1.442695, %v1910_v41 }
 0x611   : > { %v6124_v11 = vpop.eup %4526  ;;  %v4049_v3 = vpack.c.bf16 %v4448_v56, %v4447_v39  ;;  %4536 = vpow2.f32 %v1913_v31 }
 0x612   : > { %v4461_v24 = vpop.permute.xlu1 %4460  ;;  %v4057_v34 = vpack.c.bf16 %v4458_v47, %v4457_v61  ;;  %v4466_v60 = vpop.permute.xlu0 %4465  ;;  %4538 = vpow2.f32 %v1917_v0  ;;  %v6691_v61 = vld [vmem:[#allocation31_spill] sm:$0xff]  ;;  %v1953_v29 = vsel %vm1943_vm2, %v6124_v11, 0.0 }
 0x613   : > { %4050 = vmatprep.subr.bf16.mxu1 %v4049_v3  ;;  %v4463_v20 = vunpack.i.h.bf16 %v4461_v24  ;;  %v4462_v9 = vunpack.i.l.bf16 %v4461_v24  ;;  %v4468_v52 = vunpack.i.h.bf16 %v4466_v60  ;;  %v4467_v8 = vunpack.i.l.bf16 %v4466_v60 }
 0x614   : > { %2143 = vrot.lane.b32.xlu1 %v6124_v11, %s5044_s21  ;;  %4052 = vmatpush3.bf16.msra.mxu1 %v4049_v3  ;;  %4540 = vpow2.f32 %v1921_v32 }
 0x615   : > { %v6129_v63 = vpop.eup %4528  ;;  %4054 = vmatprep.subr.bf16.mxu1 %v4053_v49  ;;  %v4061_v40 = vpack.c.bf16 %v4463_v20, %v4462_v9  ;;  %v4065_v59 = vpack.c.bf16 %v4468_v52, %v4467_v8  ;;  %4542 = vpow2.f32 %v1925_v26 }
 0x616   : > { %2145 = vrot.lane.b32.xlu0 %v6129_v63, %s5044_s21  ;;  %v6137_v10 = vpop.eup %4530  ;;  %v4471_v16 = vpop.permute.xlu1 %4470  ;;  %4544 = vpow2.f32 %v1929_v58 }
 0x617   : > { %v4473_v5 = vunpack.i.h.bf16 %v4471_v16  ;;  %v4472_v7 = vunpack.i.l.bf16 %v4471_v16  ;;  %v4476_v54 = vpop.permute.xlu0 %4475  ;;  %4546 = vpow2.f32 %v1933_v48  ;;  %v1959_v9 = vsel %vm1943_vm2, %v6137_v10, 0.0  ;;  %v6694_v16 = vld [vmem:[#allocation40_spill] sm:$0xff] }
 0x618   : > { %2147 = vrot.lane.b32.xlu1 %v6137_v10, %s5044_s21  ;;  %4056 = vmatpush3.bf16.msra.mxu1 %v4053_v49  ;;  %v4478_v12 = vunpack.i.h.bf16 %v4476_v54  ;;  %v4477_v46 = vunpack.i.l.bf16 %v4476_v54  ;;  %4548 = vpow2.f32 %v1937_v4 }
 0x619   : > { %v6141_v42 = vpop.eup %4532  ;;  %4058 = vmatprep.subr.bf16.mxu1 %v4057_v34  ;;  %v4069_v38 = vpack.c.bf16 %v4473_v5, %v4472_v7  ;;  %4550 = vpow2.f32 %v1941_v18 }
 0x61a   : > { %2149 = vrot.lane.b32.xlu0 %v6141_v42, %s5044_s21  ;;  %v6147_v21 = vpop.eup %4534  ;;  %v4481_v1 = vpop.permute.xlu1 %4480  ;;  %v4073_v25 = vpack.c.bf16 %v4478_v12, %v4477_v46 }
 0x61b   : > { %v6173_v27 = vpop.eup %4536  ;;  %v4483_v53 = vunpack.i.h.bf16 %v4481_v1  ;;  %v4482_v62 = vunpack.i.l.bf16 %v4481_v1 }
 0x61c   : > { %2151 = vrot.lane.b32.xlu1 %v6147_v21, %s5044_s21  ;;  %4060 = vmatpush3.bf16.msra.mxu1 %v4057_v34  ;;  %v6183_v23 = vpop.eup %4538  ;;  %v2354_v31 = vsel %vm1943_vm2, %v6173_v27, 0.0  ;;  %v1950_v34 = vsel %vm1943_vm2, %v6116_v2, 0.0 }
 0x61d   : > { %4062 = vmatprep.subr.bf16.mxu1 %v4061_v40  ;;  %v4077_v3 = vpack.c.bf16 %v4483_v53, %v4482_v62  ;;  %v2357_v0 = vsel %vm1943_vm2, %v6183_v23, 0.0 }
 0x61e   : > { %4485 = vrot.lane.b32.xlu0 %v6681_v33, %s5043_s26  ;;  %v6191_v56 = vpop.eup %4540 }
 0x61f   : > { %v6195_v39 = vpop.eup %4542  ;;  %v2360_v14 = vsel %vm1943_vm2, %v6191_v56, 0.0 }
 0x620   : > { %4490 = vrot.lane.b32.xlu1 %v6684_v44, %s5043_s26  ;;  %4064 = vmatpush3.bf16.msra.mxu1 %v4061_v40  ;;  %v6203_v35 = vpop.eup %4544  ;;  %v2363_v20 = vsel %vm1943_vm2, %v6195_v39, 0.0  ;;  %v6693_v40 = vld [vmem:[#allocation37_spill] sm:$0xff] }
 0x621   : > { %4066 = vmatprep.subr.bf16.mxu1 %v4065_v59  ;;  %v6207_v49 = vpop.eup %4546  ;;  %v2366_v60 = vsel %vm1943_vm2, %v6203_v35, 0.0 }
 0x622   : > { %4495 = vrot.lane.b32.xlu0 %v6687_v37, %s5043_s26  ;;  %v6213_v47 = vpop.eup %4548 }
 0x623   : > { %3698 = vmatmul.mubr.msk.f32.vlgmr.msra.gmra.mrb[28].mxu1 %vm1943_vm2, %v6120_v6  ;;  %v6218_v24 = vpop.eup %4550 }
 0x624   : > { %4500 = vrot.lane.b32.xlu1 %v6690_v57, %s5043_s26  ;;  %3700 = vmatprep.mubr.msk.f32.mxu1 %vm1943_vm2, %v6116_v2  ;;  %v2369_v2 = vsel %vm1943_vm2, %v6207_v49, 0.0  ;;  %s3244_s26 = sshll.u32 %s533_s12, 4  ;;  %s6529_s26 = int_to_ptr.vmem [resolvable:$true] %s3244_s26 }
 0x625   : > { %4068 = vmatpush3.bf16.msra.mxu1 %v4065_v59  ;;  %s4939_s30 = scalar_lea.vmem %s6529_s26, 1024  ;;  %p4946_p6 = scmp.lt.s32.totalorder %s6529_s26, %s4944_s2 }
 0x626   : > { %4070 = vmatprep.subr.bf16.mxu1 %v4069_v38  ;;  %2531 = vrot.lane.b32.xlu0 %v6173_v27, %s5044_s21  ;;  %p4940_p11 = scmp.ne.s32.totalorder %s6529_s26, %s4939_s30  ;;  %p4947_p9 = scmp.lt.s32.totalorder %s4945_s28, %s4939_s30 }
 0x627   : > { %3701 = vmatmul.mubr.msk.f32.gmra.mrb[30].mxu1 %vm1943_vm2, %v6124_v11  ;;  %v1956_v11 = vsel %vm1943_vm2, %v6129_v63, 0.0 }
 0x628   : > { %2533 = vrot.lane.b32.xlu1 %v6183_v23, %s5044_s21  ;;  %3703 = vmatprep.mubr.msk.f32.mxu1 %vm1943_vm2, %v6129_v63  ;;  %v1947_v63 = vsel %vm1943_vm2, %v6120_v6, 0.0  ;;  %v6692_v6 = vld [vmem:[#allocation34_spill] sm:$0xff]  ;;  %p4941_p13 = pnand %p4940_p11, %p6698_p12  ;;  %p4948_p4 = por %p4947_p9, %p4946_p6 }
 0x629   : > { %4072 = vmatpush3.bf16.msra.mxu1 %v4069_v38 }
 0x62a   : > { %4074 = vmatprep.subr.bf16.mxu1 %v4073_v25  ;;  %2535 = vrot.lane.b32.xlu0 %v6191_v56, %s5044_s21  ;;  %p4942_p8 = pneg %p4941_p13 }
 0x62b   : > { %3704 = vmatmul.mubr.msk.f32.gmra.mrb[32].mxu1 %vm1943_vm2, %v6137_v10  ;;  %v1962_v10 = vsel %vm1943_vm2, %v6141_v42, 0.0 }
 0x62c   : > { %2537 = vrot.lane.b32.xlu1 %v6195_v39, %s5044_s21  ;;  %3706 = vmatprep.mubr.msk.f32.mxu1 %vm1943_vm2, %v6141_v42  ;;  %p4949_p3 = pnand %p4948_p4, %p4942_p8 }
 0x62d   : > { %4076 = vmatpush3.bf16.msra.mxu1 %v4073_v25 }
 0x62e   : > { %4078 = vmatprep.subr.bf16.mxu1 %v4077_v3  ;;  %2539 = vrot.lane.b32.xlu0 %v6203_v35, %s5044_s21 }
 0x62f   : > { %3707 = vmatmul.mubr.msk.f32.gmra.mrb[34].mxu1 %vm1943_vm2, %v6147_v21 }
 0x630   : > { %2541 = vrot.lane.b32.xlu1 %v6207_v49, %s5044_s21 }
 0x631   : > { %4080 = vmatpush3.bf16.msra.mxu1 %v4077_v3  ;;  %v1965_v3 = vsel %vm1943_vm2, %v6147_v21, 0.0  ;;  %v2372_v21 = vsel %vm1943_vm2, %v6213_v47, 0.0 }
 0x632   : > { %4082 = vmatprep.subr.bf16.mxu1 %v6691_v61  ;;  %2543 = vrot.lane.b32.xlu0 %v6213_v47, %s5044_s21 }
 0x634   : > { %2545 = vrot.lane.b32.xlu1 %v6218_v24, %s5044_s21 }
 0x651   : > { %1945 = vadd.xlane.f32.xlu0 %v1944_v50 }
 0x655   : > { %2355 = vadd.xlane.f32.xlu0 %v2354_v31 }
 0x658   : > { %1954 = vadd.xlane.f32.xlu1 %v1953_v29  ;;  %v2375_v29 = vsel %vm1943_vm2, %v6218_v24, 0.0 }
 0x659   : > { %1951 = vadd.xlane.f32.xlu0 %v1950_v34 }
 0x65c   : > { %2364 = vadd.xlane.f32.xlu1 %v2363_v20 }
 0x65d   : > { %2361 = vadd.xlane.f32.xlu0 %v2360_v14 }
 0x660   : > { %1960 = vadd.xlane.f32.xlu1 %v1959_v9 }
 0x661   : > { %1957 = vadd.xlane.f32.xlu0 %v1956_v11 }
 0x664   : > { %2370 = vadd.xlane.f32.xlu1 %v2369_v2 }
 0x665   : > { %2367 = vadd.xlane.f32.xlu0 %v2366_v60 }
 0x668   : > { %2358 = vadd.xlane.f32.xlu1 %v2357_v0 }
 0x669   : > { %1963 = vadd.xlane.f32.xlu0 %v1962_v10 }
 0x66d   : > { %1948 = vadd.xlane.f32.xlu0 %v1947_v63 }
 0x67c   : > { %v6248_v15 = vpop.permute.xlu0 %2137 }
 0x67d   : > { %3725 = vmatprep.mubr.msk.f32.mxu1 %vm1943_vm2, %v6248_v15  ;;  %v2161_v62 = vsel %vm1943_vm2, %v6248_v15, 0.0 }
 0x680   : > { %v2142_v32 = vpop.permute.xlu0 %2141 }
 0x681   : > { %v2167_v45 = vsel %vm1943_vm2, %v2142_v32, 0.0 }
 0x682   : > { %v6253_v52 = vpop.permute.xlu1 %2139  ;;  %2168 = vadd.xlane.f32.xlu1 %v2167_v45 }
 0x683   : > { %3726 = vmatmul.mubr.msk.f32.vlgmr.msra.gmra.mrb[36].mxu1 %vm1943_vm2, %v6253_v52 }
 0x684   : > { %4084 = vmatpush3.bf16.msra.mxu1 %v6691_v61  ;;  %3728 = vmatprep.mubr.msk.f32.mxu1 %vm1943_vm2, %v2142_v32 }
 0x685   : > { %4086 = vmatprep.subr.bf16.mxu1 %v6692_v6 }
 0x686   : > { %v2144_v42 = vpop.permute.xlu1 %2143 }
 0x687   : > { %3729 = vmatmul.mubr.msk.f32.gmra.mrb[38].mxu1 %vm1943_vm2, %v2144_v42  ;;  %v2170_v19 = vsel %vm1943_vm2, %v2144_v42, 0.0 }
 0x688   : > { %4088 = vmatpush3.bf16.msra.mxu1 %v6692_v6  ;;  %v2146_v8 = vpop.permute.xlu0 %2145 }
 0x689   : > { %4090 = vmatprep.subr.bf16.mxu1 %v6693_v40  ;;  %3731 = vmatprep.mubr.msk.f32.mxu1 %vm1943_vm2, %v2146_v8  ;;  %v2173_v57 = vsel %vm1943_vm2, %v2146_v8, 0.0 }
 0x68a   : > { %v2148_v26 = vpop.permute.xlu1 %2147 }
 0x68b   : > { %3732 = vmatmul.mubr.msk.f32.gmra.mrb[40].mxu1 %vm1943_vm2, %v2148_v26  ;;  %v2176_v18 = vsel %vm1943_vm2, %v2148_v26, 0.0 }
 0x68c   : > { %4092 = vmatpush3.bf16.msra.mxu1 %v6693_v40  ;;  %v2150_v51 = vpop.permute.xlu0 %2149 }
 0x68d   : > { %4094 = vmatprep.subr.bf16.mxu1 %v6694_v16  ;;  %3734 = vmatprep.mubr.msk.f32.mxu1 %vm1943_vm2, %v2150_v51 }
 0x68e   : > { %v6268_v13 = vpop.permute.xlu1 %2151 }
 0x68f   : > { %3735 = vmatmul.mubr.msk.f32.gmra.mrb[42].mxu1 %vm1943_vm2, %v6268_v13  ;;  %v2182_v50 = vsel %vm1943_vm2, %v6268_v13, 0.0 }
 0x690   : > { %4096 = vmatpush3.bf16.msra.mxu1 %v6694_v16  ;;  %3753 = vmatprep.mubr.msk.f32.mxu1 %vm1943_vm2, %v6173_v27  ;;  %v4486_v43 = vpop.permute.xlu0 %4485 }
 0x691   : > { %v4488_v33 = vunpack.i.h.bf16 %v4486_v43  ;;  %v4487_v58 = vunpack.i.l.bf16 %v4486_v43 }
 0x692   : > { %v4491_v55 = vpop.permute.xlu1 %4490 }
 0x693   : > { %v4097_v59 = vpack.c.bf16 %v4488_v33, %v4487_v58  ;;  %v4493_v5 = vunpack.i.h.bf16 %v4491_v55  ;;  %v4492_v7 = vunpack.i.l.bf16 %v4491_v55  ;;  %3754 = vmatmul.mubr.msk.f32.vlgmr.msra.gmra.mrb[44].mxu1 %vm1943_vm2, %v6183_v23  ;;  %v2179_v23 = vsel %vm1943_vm2, %v2150_v51, 0.0 }
 0x694   : > { %3756 = vmatprep.mubr.msk.f32.mxu1 %vm1943_vm2, %v6191_v56  ;;  %v4496_v22 = vpop.permute.xlu0 %4495 }
 0x695   : > { %v4101_v30 = vpack.c.bf16 %v4493_v5, %v4492_v7  ;;  %v4498_v44 = vunpack.i.h.bf16 %v4496_v22  ;;  %v4497_v48 = vunpack.i.l.bf16 %v4496_v22  ;;  %4098 = vmatprep.subr.bf16.mxu1 %v4097_v59 }
 0x696   : > { %v4501_v41 = vpop.permute.xlu1 %4500  ;;  %4100 = vmatpush3.bf16.msra.mxu1 %v4097_v59 }
 0x697   : > { %3757 = vmatmul.mubr.msk.f32.gmra.mrb[46].mxu1 %vm1943_vm2, %v6195_v39  ;;  %4102 = vmatprep.subr.bf16.mxu1 %v4101_v30  ;;  %v4105_v17 = vpack.c.bf16 %v4498_v44, %v4497_v48  ;;  %v4503_v36 = vunpack.i.h.bf16 %v4501_v41  ;;  %v4502_v37 = vunpack.i.l.bf16 %v4501_v41  ;;  %v2164_v39 = vsel %vm1943_vm2, %v6253_v52, 0.0 }
 0x698   : > { %3759 = vmatprep.mubr.msk.f32.mxu1 %vm1943_vm2, %v6203_v35  ;;  %v2532_v54 = vpop.permute.xlu0 %2531 }
 0x699   : > { %v4109_v12 = vpack.c.bf16 %v4503_v36, %v4502_v37  ;;  %v2555_v25 = vsel %vm1943_vm2, %v2532_v54, 0.0 }
 0x69a   : > { %v2534_v4 = vpop.permute.xlu1 %2533  ;;  %4104 = vmatpush3.bf16.msra.mxu1 %v4101_v30 }
 0x69b   : > { %3760 = vmatmul.mubr.msk.f32.gmra.mrb[48].mxu1 %vm1943_vm2, %v6207_v49  ;;  %4106 = vmatprep.subr.bf16.mxu1 %v4105_v17  ;;  %v2558_v61 = vsel %vm1943_vm2, %v2534_v4, 0.0 }
 0x69c   : > { %3762 = vmatprep.mubr.msk.f32.mxu1 %vm1943_vm2, %v6213_v47  ;;  %v2536_v27 = vpop.permute.xlu0 %2535 }
 0x69d   : > { %v2561_v46 = vsel %vm1943_vm2, %v2536_v27, 0.0 }
 0x69e   : > { %v2538_v38 = vpop.permute.xlu1 %2537  ;;  %2562 = vadd.xlane.f32.xlu0 %v2561_v46  ;;  %4108 = vmatpush3.bf16.msra.mxu1 %v4105_v17 }
 0x69f   : > { %v2564_v28 = vsel %vm1943_vm2, %v2538_v38, 0.0  ;;  %3763 = vmatmul.mubr.msk.f32.gmra.mrb[50].mxu1 %vm1943_vm2, %v6218_v24  ;;  %4110 = vmatprep.subr.bf16.mxu1 %v4109_v12 }
 0x6a0   : > { %2565 = vadd.xlane.f32.xlu1 %v2564_v28  ;;  %3781 = vmatprep.mubr.msk.f32.mxu1 %vm1943_vm2, %v2532_v54  ;;  %v2540_v1 = vpop.permute.xlu0 %2539 }
 0x6a1   : > { %v2567_v49 = vsel %vm1943_vm2, %v2540_v1, 0.0 }
 0x6a2   : > { %2171 = vadd.xlane.f32.xlu0 %v2170_v19  ;;  %4112 = vmatpush3.bf16.msra.mxu1 %v4109_v12  ;;  %v2542_v53 = vpop.permute.xlu1 %2541 }
 0x6a3   : > { %v2570_v31 = vsel %vm1943_vm2, %v2542_v53, 0.0 }
 0x6a4   : > { %2174 = vadd.xlane.f32.xlu1 %v2173_v57  ;;  %v2544_v56 = vpop.permute.xlu0 %2543 }
 0x6a5   : > { %3782 = vmatmul.mubr.msk.f32.vlgmr.msra.gmra.mrb[52].mxu1 %vm1943_vm2, %v2534_v4  ;;  %v2573_v34 = vsel %vm1943_vm2, %v2544_v56, 0.0 }
 0x6a6   : > { %2177 = vadd.xlane.f32.xlu0 %v2176_v18  ;;  %3784 = vmatprep.mubr.msk.f32.mxu1 %vm1943_vm2, %v2536_v27  ;;  %v2546_v35 = vpop.permute.xlu1 %2545 }
 0x6a7   : > { %v2576_v20 = vsel %vm1943_vm2, %v2546_v35, 0.0 }
 0x6a8   : > { %2180 = vadd.xlane.f32.xlu1 %v2179_v23 }
 0x6a9   : > { %3785 = vmatmul.mubr.msk.f32.gmra.mrb[54].mxu1 %vm1943_vm2, %v2538_v38 }
 0x6aa   : > { %2556 = vadd.xlane.f32.xlu0 %v2555_v25  ;;  %3787 = vmatprep.mubr.msk.f32.mxu1 %vm1943_vm2, %v2540_v1 }
 0x6ac   : > { %2162 = vadd.xlane.f32.xlu1 %v2161_v62 }
 0x6ad   : > { %3788 = vmatmul.mubr.msk.f32.gmra.mrb[56].mxu1 %vm1943_vm2, %v2542_v53 }
 0x6ae   : > { %2165 = vadd.xlane.f32.xlu0 %v2164_v39  ;;  %3790 = vmatprep.mubr.msk.f32.mxu1 %vm1943_vm2, %v2544_v56 }
 0x6b0   : > { %1966 = vadd.xlane.f32.xlu1 %v1965_v3 }
 0x6b1   : > { %3791 = vmatmul.mubr.msk.f32.gmra.mrb[58].mxu1 %vm1943_vm2, %v2546_v35 }
 0x6b2   : > { %2568 = vadd.xlane.f32.xlu0 %v2567_v49 }
 0x6b4   : > { %2559 = vadd.xlane.f32.xlu1 %v2558_v61 }
 0x6b6   : > { %2183 = vadd.xlane.f32.xlu0 %v2182_v50 }
 0x6b8   : > { %2571 = vadd.xlane.f32.xlu1 %v2570_v31 }
 0x6ba   : > { %2373 = vadd.xlane.f32.xlu0 %v2372_v21 }
 0x6bc   : > { %2376 = vadd.xlane.f32.xlu1 %v2375_v29 }
 0x6be   : > { %2574 = vadd.xlane.f32.xlu0 %v2573_v34 }
 0x6c0   : > { %2577 = vadd.xlane.f32.xlu1 %v2576_v20 }
 0x6de   : > { %v1946_v24 = vpop.xlane.xlu0 %1945 }
 0x6e2   : > { %v6333_v63 = vpop.xlane.xlu0 %2355 }
 0x6e5   : > { %v1955_v45 = vpop.xlane.xlu1 %1954 }
 0x6e6   : > { %v1952_v15 = vpop.xlane.xlu0 %1951 }
 0x6e9   : > { %v6337_v6 = vpop.xlane.xlu1 %2364 }
 0x6ea   : > { %v6335_v32 = vpop.xlane.xlu0 %2361 }
 0x6ed   : > { %v1961_v8 = vpop.xlane.xlu1 %1960 }
 0x6ee   : > { %v1958_v52 = vpop.xlane.xlu0 %1957 }
 0x6f1   : > { %v6341_v26 = vpop.xlane.xlu1 %2370 }
 0x6f2   : > { %v6339_v42 = vpop.xlane.xlu0 %2367 }
 0x6f5   : > { %v2359_v16 = vpop.xlane.xlu1 %2358 }
 0x6f6   : > { %v3699_v14 = vpop.f32.mrb[28].mxu1  ;;  %v1964_v40 = vpop.xlane.xlu0 %1963 }
 0x6f7   : > { %v2090_v9 = vpop.f32.mrb[29].mxu1 }
 0x6fa   : > { %v6321_v11 = vpop.f32.mrb[30].mxu1  ;;  %v1949_v51 = vpop.xlane.xlu0 %1948 }
 0x6fb   : > { %v6323_v2 = vpop.f32.mrb[31].mxu1  ;;  %4552 = vrcp.f32 %v1949_v51 }
 0x6fc   : > { %4554 = vrcp.f32 %v1946_v24 }
 0x6fe   : > { %v6325_v60 = vpop.f32.mrb[32].mxu1 }
 0x6ff   : > { %v6327_v47 = vpop.f32.mrb[33].mxu1 }
 0x702   : > { %v6329_v0 = vpop.f32.mrb[34].mxu1 }
 0x703   : > { %v6331_v10 = vpop.f32.mrb[35].mxu1 }
 0x705   : > { %v4553_v41 = vpop.eup %4552 }
 0x706   : > { %v4555_v54 = vpop.eup %4554  ;;  %v2130_v27 = vmul.f32 %v4553_v41, %v3699_v14 }
 0x707   : > { %v2129_v28 = vmul.f32 %v4555_v54, %v2090_v9 }
 0x70f   : > { %v2169_v43 = vpop.xlane.xlu1 %2168 }
 0x72b   : > { %v6343_v13 = vpop.xlane.xlu0 %2562 }
 0x72d   : > { %v6345_v58 = vpop.xlane.xlu1 %2565 }
 0x72f   : > { %v2172_v33 = vpop.xlane.xlu0 %2171 }
 0x731   : > { %v2175_v59 = vpop.xlane.xlu1 %2174 }
 0x733   : > { %v2178_v55 = vpop.xlane.xlu0 %2177 }
 0x735   : > { %v2181_v7 = vpop.xlane.xlu1 %2180 }
 0x737   : > { %v6347_v5 = vpop.xlane.xlu0 %2556 }
 0x739   : > { %v2163_v30 = vpop.xlane.xlu1 %2162 }
 0x73b   : > { %v2166_v22 = vpop.xlane.xlu0 %2165 }
 0x73c   : > { %4556 = vrcp.f32 %v2166_v22 }
 0x73d   : > { %4558 = vrcp.f32 %v2163_v30  ;;  %v1967_v48 = vpop.xlane.xlu1 %1966 }
 0x73e   : > { %4560 = vrcp.f32 %v1955_v45 }
 0x73f   : > { %4562 = vrcp.f32 %v1952_v15  ;;  %v6349_v44 = vpop.xlane.xlu0 %2568 }
 0x740   : > { %4564 = vrcp.f32 %v2172_v33 }
 0x741   : > { %4566 = vrcp.f32 %v2169_v43  ;;  %v6351_v18 = vpop.xlane.xlu1 %2559 }
 0x742   : > { %4568 = vrcp.f32 %v1961_v8 }
 0x743   : > { %4570 = vrcp.f32 %v1958_v52  ;;  %v2184_v17 = vpop.xlane.xlu0 %2183 }
 0x744   : > { %4572 = vrcp.f32 %v2178_v55 }
 0x745   : > { %4574 = vrcp.f32 %v2175_v59  ;;  %v2572_v9 = vpop.xlane.xlu1 %2571 }
 0x746   : > { %v4557_v36 = vpop.eup %4556  ;;  %4576 = vrcp.f32 %v1967_v48 }
 0x747   : > { %v4559_v4 = vpop.eup %4558  ;;  %4578 = vrcp.f32 %v1964_v40 }
 0x748   : > { %v4561_v38 = vpop.eup %4560  ;;  %4580 = vrcp.f32 %v2184_v17 }
 0x749   : > { %v4563_v57 = vpop.eup %4562  ;;  %4582 = vrcp.f32 %v2181_v7  ;;  %v2132_v56 = vmul.f32 %v4561_v38, %v6321_v11 }
 0x74a   : > { %v4565_v23 = vpop.eup %4564  ;;  %4584 = vrcp.f32 %v2359_v16  ;;  %v2131_v49 = vmul.f32 %v4563_v57, %v6323_v2 }
 0x74b   : > { %v4567_v62 = vpop.eup %4566  ;;  %4586 = vrcp.f32 %v6333_v63 }
 0x74c   : > { %v4569_v35 = vpop.eup %4568  ;;  %4588 = vrcp.f32 %v6337_v6 }
 0x74d   : > { %v4571_v50 = vpop.eup %4570  ;;  %v2134_v14 = vmul.f32 %v4569_v35, %v6325_v60  ;;  %4590 = vrcp.f32 %v6335_v32  ;;  %v2374_v32 = vpop.xlane.xlu0 %2373 }
 0x74e   : > { %v4573_v21 = vpop.eup %4572  ;;  %v2133_v45 = vmul.f32 %v4571_v50, %v6327_v47  ;;  %4592 = vrcp.f32 %v6341_v26  ;;  %v2377_v47 = vpop.xlane.xlu1 %2376  ;;  %v6695_v50 = vld [vmem:[#allocation28_spill] sm:$0xff] }
 0x74f   : > { %v4575_v20 = vpop.eup %4574  ;;  %4594 = vrcp.f32 %v6339_v42 }
 0x750   : > { %v4577_v15 = vpop.eup %4576  ;;  %4596 = vrcp.f32 %v2377_v47 }
 0x751   : > { %v4579_v52 = vpop.eup %4578  ;;  %v2136_v43 = vmul.f32 %v4577_v15, %v6329_v0  ;;  %4598 = vrcp.f32 %v2374_v32  ;;  %v4651_v32 = vld [vmem:[%s5440_s27 + $0x18] sm:$0xff] }
 0x752   : > { %v4581_v8 = vpop.eup %4580  ;;  %v2135_v55 = vmul.f32 %v4579_v52, %v6331_v10  ;;  %4600 = vrcp.f32 %v6351_v18  ;;  %v4649_v52 = vld [vmem:[%s5440_s27 + $0x8] sm:$0xff] }
 0x753   : > { %v4583_v16 = vpop.eup %4582  ;;  %4602 = vrcp.f32 %v6347_v5  ;;  %v2578_v5 = vpop.xlane.xlu1 %2577 }
 0x754   : > { %v4585_v7 = vpop.eup %4584  ;;  %4604 = vrcp.f32 %v6345_v58  ;;  %v2575_v58 = vpop.xlane.xlu0 %2574 }
 0x755   : > { %v4587_v48 = vpop.eup %4586  ;;  %4606 = vrcp.f32 %v6343_v13 }
 0x756   : > { %v3727_v37 = vpop.f32.mrb[36].mxu1  ;;  %4608 = vrcp.f32 %v2572_v9  ;;  %v6374_v9 = vld [vmem:[#allocation7] sm:$0xff] }
 0x757   : > { %v2339_v12 = vmul.f32 %v4557_v36, %v3727_v37  ;;  %v2299_v46 = vpop.f32.mrb[37].mxu1  ;;  %v4589_v36 = vpop.eup %4588  ;;  %4610 = vrcp.f32 %v6349_v44 }
 0x758   : > { %v2338_v19 = vmul.f32 %v4559_v4, %v2299_v46  ;;  %v4591_v10 = vpop.eup %4590  ;;  %4612 = vrcp.f32 %v2578_v5 }
 0x759   : > { %v2347_v1 = vadd.f32 %v2339_v12, %v2130_v27  ;;  %v4593_v46 = vpop.eup %4592  ;;  %4614 = vrcp.f32 %v2575_v58 }
 0x75a   : > { %v2346_v25 = vadd.f32 %v2338_v19, %v2129_v28  ;;  %v3730_v53 = vpop.f32.mrb[38].mxu1  ;;  %v4595_v19 = vpop.eup %4594 }
 0x75b   : > { %v2341_v39 = vmul.f32 %v4565_v23, %v3730_v53  ;;  %v2309_v3 = vpop.f32.mrb[39].mxu1 }
 0x75c   : > { %v2340_v61 = vmul.f32 %v4567_v62, %v2309_v3  ;;  %v4597_v62 = vpop.eup %4596 }
 0x75d   : > { %v2349_v31 = vadd.f32 %v2341_v39, %v2132_v56  ;;  %v4599_v39 = vpop.eup %4598 }
 0x75e   : > { %v2348_v29 = vadd.f32 %v2340_v61, %v2131_v49  ;;  %v3733_v34 = vpop.f32.mrb[40].mxu1 }
 0x75f   : > { %v2343_v24 = vmul.f32 %v4573_v21, %v3733_v34  ;;  %v2319_v11 = vpop.f32.mrb[41].mxu1  ;;  %v4601_v21 = vpop.eup %4600 }
 0x760   : > { %v2342_v2 = vmul.f32 %v4575_v20, %v2319_v11  ;;  %v4603_v34 = vpop.eup %4602 }
 0x761   : > { %v2351_v63 = vadd.f32 %v2343_v24, %v2134_v14  ;;  %v4605_v44 = vpop.eup %4604 }
 0x762   : > { %v2350_v40 = vadd.f32 %v2342_v2, %v2133_v45  ;;  %v3736_v51 = vpop.f32.mrb[42].mxu1  ;;  %v4607_v2 = vpop.eup %4606 }
 0x763   : > { %v2345_v60 = vmul.f32 %v4581_v8, %v3736_v51  ;;  %v2329_v33 = vpop.f32.mrb[43].mxu1  ;;  %v4650_v51 = vld [vmem:[%s5440_s27] sm:$0xff] }
 0x764   : > { %v2344_v6 = vmul.f32 %v4583_v16, %v2329_v33 }
 0x765   : > { %v2353_v59 = vadd.f32 %v2345_v60, %v2136_v43 }
 0x766   : > { %v2352_v22 = vadd.f32 %v2344_v6, %v2135_v55  ;;  %v3755_v30 = vpop.f32.mrb[44].mxu1  ;;  %v4609_v55 = vpop.eup %4608 }
 0x767   : > { %v2516_v41 = vmul.f32 %v4585_v7, %v3755_v30  ;;  %v2476_v54 = vpop.f32.mrb[45].mxu1  ;;  %v4611_v7 = vpop.eup %4610 }
 0x768   : > { %v2515_v0 = vmul.f32 %v4587_v48, %v2476_v54  ;;  %v4652_v54 = vld [vmem:[%s5440_s27 + $0x10] sm:$0xff] }
 0x769   : > { %v2524_v17 = vadd.f32 %v2516_v41, %v2347_v1 }
 0x76a   : > { %v2523_v26 = vadd.f32 %v2515_v0, %v2346_v25  ;;  %v3758_v37 = vpop.f32.mrb[46].mxu1 }
 0x76b   : > { %v2518_v4 = vmul.f32 %v4589_v36, %v3758_v37  ;;  %v2486_v27 = vpop.f32.mrb[47].mxu1 }
 0x76c   : > { %v2517_v42 = vmul.f32 %v4591_v10, %v2486_v27  ;;  %v4613_v10 = vpop.eup %4612 }
 0x76d   : > { %v2526_v12 = vadd.f32 %v2518_v4, %v2349_v31  ;;  %v2766_v31 = vsub.s32 3, %v6695_v50 }
 0x76e   : > { %v2525_v38 = vadd.f32 %v2517_v42, %v2348_v29  ;;  %v3761_v28 = vpop.f32.mrb[48].mxu1 }
 0x76f   : > { %v2520_v57 = vmul.f32 %v4593_v46, %v3761_v28  ;;  %v2496_v23 = vpop.f32.mrb[49].mxu1  ;;  %v2767_v11 = vrot.slane %v6374_v9, %v2766_v31  ;;  %v4653_v46 = vld [vmem:[%s5440_s27 + $0x28] sm:$0xff]  ;;  %v4656_v31 = vld [vmem:[%s5440_s27 + $0x30] sm:$0xff] }
 0x770   : > { %v2519_v53 = vmul.f32 %v4595_v19, %v2496_v23  ;;  %v4654_v23 = vld [vmem:[%s5440_s27 + $0x20] sm:$0xff] }
 0x771   : > { %v2528_v1 = vadd.f32 %v2520_v57, %v2351_v63 }
 0x772   : > { %v2527_v25 = vadd.f32 %v2519_v53, %v2350_v40  ;;  %v3764_v56 = vpop.f32.mrb[50].mxu1 }
 0x773   : > { %v2522_v3 = vmul.f32 %v4597_v62, %v3764_v56  ;;  %v2506_v35 = vpop.f32.mrb[51].mxu1 }
 0x774   : > { %v2521_v18 = vmul.f32 %v4599_v39, %v2506_v35  ;;  %v4655_v35 = vld [vmem:[%s5440_s27 + $0x38] sm:$0xff] }
 0x775   : > { %v6368_v49 = vadd.f32 %v2522_v3, %v2353_v59 }
 0x776   : > { %v6370_v61 = vadd.f32 %v2521_v18, %v2352_v22 }
 0x778   : > { %v3783_v29 = vpop.f32.mrb[52].mxu1 }
 0x779   : > { %v2741_v20 = vmul.f32 %v4601_v21, %v3783_v29  ;;  %v2701_v13 = vpop.f32.mrb[53].mxu1 }
 0x77a   : > { %v2740_v14 = vmul.f32 %v4603_v34, %v2701_v13 }
 0x77b   : > { %v2749_v24 = vadd.f32 %v2741_v20, %v2524_v17 }
 0x77c   : > { %v2748_v15 = vadd.f32 %v2740_v14, %v2523_v26  ;;  %v3786_v45 = vpop.f32.mrb[54].mxu1 }
 0x77d   : > { %v2757_v63 = vadd.f32 %v4649_v52, %v2749_v24  ;;  %v2743_v8 = vmul.f32 %v4605_v44, %v3786_v45  ;;  %v2711_v40 = vpop.f32.mrb[55].mxu1 }
 0x77e   : > { %v2756_v16 = vadd.f32 %v4650_v51, %v2748_v15  ;;  %v2742_v43 = vmul.f32 %v4607_v2, %v2711_v40 }
 0x77f   : > { %v2751_v60 = vadd.f32 %v2743_v8, %v2526_v12  ;;  %v6379_v33 = vadd.f32 %v2767_v11, %v2757_v63  ;;  %v4615_v12 = vpop.eup %4614 }
 0x780   : > { %v2750_v6 = vadd.f32 %v2742_v43, %v2525_v38  ;;  %v3789_v47 = vpop.f32.mrb[56].mxu1  ;;  %v6381_v59 = vadd.f32 %v2767_v11, %v2756_v16 }
 0x781   : > { %v2759_v22 = vadd.f32 %v4651_v32, %v2751_v60  ;;  %v2745_v30 = vmul.f32 %v4609_v55, %v3789_v47  ;;  %v2721_v48 = vpop.f32.mrb[57].mxu1  ;;  %v2779_v41 = vsel %vm544_vm0, %v6379_v33, 0.0 }
 0x782   : > { %v2758_v0 = vadd.f32 %v4652_v54, %v2750_v6  ;;  %v2744_v17 = vmul.f32 %v4611_v7, %v2721_v48  ;;  %2780 = vadd.xlane.f32.xlu1 %v2779_v41  ;;  %v2776_v36 = vsel %vm544_vm0, %v6381_v59, 0.0 }
 0x783   : > { %v2753_v26 = vadd.f32 %v2745_v30, %v2528_v1  ;;  %2777 = vadd.xlane.f32.xlu0 %v2776_v36  ;;  %v6389_v37 = vadd.f32 %v2767_v11, %v2759_v22 }
 0x784   : > { %v2752_v4 = vadd.f32 %v2744_v17, %v2527_v25  ;;  %v3792_v27 = vpop.f32.mrb[58].mxu1  ;;  %v6391_v42 = vadd.f32 %v2767_v11, %v2758_v0 }
 0x785   : > { %v2761_v38 = vadd.f32 %v4653_v46, %v2753_v26  ;;  %v2747_v28 = vmul.f32 %v4613_v10, %v3792_v27  ;;  %v2731_v19 = vpop.f32.mrb[59].mxu1  ;;  %v2785_v57 = vsel %vm544_vm0, %v6389_v37, 0.0 }
 0x786   : > { %v2760_v53 = vadd.f32 %v4654_v23, %v2752_v4  ;;  %v2746_v1 = vmul.f32 %v4615_v12, %v2731_v19  ;;  %2786 = vadd.xlane.f32.xlu1 %v2785_v57  ;;  %v2782_v62 = vsel %vm544_vm0, %v6391_v42, 0.0  ;;  %v2904_v23 = vld [vmem:[%s6696_s29] sm:$0xff] }
 0x787   : > { %v2755_v25 = vadd.f32 %v2747_v28, %v6368_v49  ;;  %2783 = vadd.xlane.f32.xlu0 %v2782_v62  ;;  %v6400_v56 = vadd.f32 %v2767_v11, %v2761_v38  ;;  %v2906_v62 = vld [vmem:[%s6696_s29 + $0x10] sm:$0xff] }
 0x788   : > { %v2754_v39 = vadd.f32 %v2746_v1, %v6370_v61  ;;  %v6403_v3 = vadd.f32 %v2767_v11, %v2760_v53  ;;  %v2905_v53 = vld [vmem:[%s6696_s29 + $0x8] sm:$0xff] }
 0x789   : > { %v2763_v18 = vadd.f32 %v4655_v35, %v2755_v25  ;;  %v2791_v5 = vsel %vm544_vm0, %v6400_v56, 0.0  ;;  %v4113_v1 = vpack.c.bf16 %v2905_v53, %v2904_v23  ;;  %v2907_v25 = vld [vmem:[%s6696_s29 + $0x18] sm:$0xff]  ;;  %v3081_v35 = vld [vmem:[#allocation17] sm:$0xff] }
 0x78a   : > { %v2762_v21 = vadd.f32 %v4656_v31, %v2754_v39  ;;  %2792 = vadd.xlane.f32.xlu1 %v2791_v5  ;;  %v2788_v58 = vsel %vm544_vm0, %v6403_v3, 0.0  ;;  %v4117_v39 = vpack.c.bf16 %v2907_v25, %v2906_v62 }
 0x78b   : > { %2789 = vadd.xlane.f32.xlu0 %v2788_v58  ;;  %v6411_v49 = vadd.f32 %v2767_v11, %v2763_v18  ;;  %4114 = vmatprep.subr.bf16.mxu1 %v4113_v1  ;;  %v3082_v18 = vld [vmem:[#allocation17 + $0x8] sm:$0xff] }
 0x78c   : > { %v6413_v29 = vadd.f32 %v2767_v11, %v2762_v21  ;;  %4116 = vmatpush3.bf16.msra.mxu1 %v4113_v1  ;;  %v6479_v5 = vpack.c.bf16 %v3082_v18, %v3081_v35 }
 0x78d   : > { %v2797_v61 = vsel %vm544_vm0, %v6411_v49, 0.0  ;;  %4118 = vmatprep.subr.bf16.mxu1 %v4117_v39 }
 0x78e   : > { %2798 = vadd.xlane.f32.xlu1 %v2797_v61  ;;  %v2794_v34 = vsel %vm544_vm0, %v6413_v29, 0.0 }
 0x78f   : > { %2795 = vadd.xlane.f32.xlu0 %v2794_v34 }
 0x790   : > { %4120 = vmatpush3.bf16.msra.mxu1 %v4117_v39 }
 0x791   : > { %4122 = vmatprep.subr.bf16.mxu1 %v6479_v5 }
 0x80f   : > { %v2781_v20 = vpop.xlane.xlu1 %2780 }
 0x810   : > { %v2801_v13 = vmul.f32 0.03125, %v2781_v20  ;;  %v2778_v14 = vpop.xlane.xlu0 %2777 }
 0x811   : > { %v2800_v24 = vmul.f32 0.03125, %v2778_v14 }
 0x812   : > { %v6420_v44 = vsub.f32 %v6379_v33, %v2801_v13 }
 0x813   : > { %v6423_v15 = vsub.f32 %v6381_v59, %v2800_v24  ;;  %v2787_v11 = vpop.xlane.xlu1 %2786 }
 0x814   : > { %v2803_v45 = vmul.f32 0.03125, %v2787_v11  ;;  %v2784_v2 = vpop.xlane.xlu0 %2783  ;;  %v2817_v52 = vmul.f32 %v6420_v44, %v6420_v44 }
 0x815   : > { %v2802_v63 = vmul.f32 0.03125, %v2784_v2  ;;  %v2816_v8 = vmul.f32 %v6423_v15, %v6423_v15 }
 0x816   : > { %v6430_v40 = vsub.f32 %v6389_v37, %v2803_v45  ;;  %v2827_v51 = vsel %vm544_vm0, %v2817_v52, 0.0 }
 0x817   : > { %v6434_v16 = vsub.f32 %v6391_v42, %v2802_v63  ;;  %v2793_v43 = vpop.xlane.xlu1 %2792  ;;  %2828 = vadd.xlane.f32.xlu1 %v2827_v51  ;;  %v2824_v60 = vsel %vm544_vm0, %v2816_v8, 0.0  ;;  %v2882_v51 = vsub.s32 4, %v6695_v50 }
 0x818   : > { %v2805_v55 = vmul.f32 0.03125, %v2793_v43  ;;  %v2790_v6 = vpop.xlane.xlu0 %2789  ;;  %2825 = vadd.xlane.f32.xlu0 %v2824_v60  ;;  %v2819_v47 = vmul.f32 %v6430_v40, %v6430_v40 }
 0x819   : > { %v2804_v7 = vmul.f32 0.03125, %v2790_v6  ;;  %v2818_v32 = vmul.f32 %v6434_v16, %v6434_v16 }
 0x81a   : > { %v6442_v22 = vsub.f32 %v6400_v56, %v2805_v55  ;;  %v2833_v30 = vsel %vm544_vm0, %v2819_v47, 0.0  ;;  %v2894_v47 = vsub.s32 5, %v6695_v50 }
 0x81b   : > { %v6446_v48 = vsub.f32 %v6403_v3, %v2804_v7  ;;  %2834 = vadd.xlane.f32.xlu1 %v2833_v30  ;;  %v2799_v41 = vpop.xlane.xlu1 %2798  ;;  %v2830_v54 = vsel %vm544_vm0, %v2818_v32, 0.0  ;;  %v2883_v30 = vrot.slane %v6374_v9, %v2882_v51 }
 0x81c   : > { %v2807_v0 = vmul.f32 0.03125, %v2799_v41  ;;  %2831 = vadd.xlane.f32.xlu0 %v2830_v54  ;;  %v2796_v17 = vpop.xlane.xlu0 %2795  ;;  %v2821_v36 = vmul.f32 %v6442_v22, %v6442_v22 }
 0x81d   : > { %v2806_v26 = vmul.f32 0.03125, %v2796_v17  ;;  %v2820_v10 = vmul.f32 %v6446_v48, %v6446_v48 }
 0x81e   : > { %v6454_v4 = vsub.f32 %v6411_v49, %v2807_v0  ;;  %v2839_v27 = vsel %vm544_vm0, %v2821_v36, 0.0 }
 0x81f   : > { %v6458_v12 = vsub.f32 %v6413_v29, %v2806_v26  ;;  %2840 = vadd.xlane.f32.xlu1 %v2839_v27  ;;  %v2836_v46 = vsel %vm544_vm0, %v2820_v10, 0.0  ;;  %v2895_v10 = vrot.slane %v6374_v9, %v2894_v47 }
 0x820   : > { %2837 = vadd.xlane.f32.xlu0 %v2836_v46  ;;  %v2823_v38 = vmul.f32 %v6454_v4, %v6454_v4 }
 0x821   : > { %v2822_v28 = vmul.f32 %v6458_v12, %v6458_v12 }
 0x822   : > { %v2845_v19 = vsel %vm544_vm0, %v2823_v38, 0.0 }
 0x823   : > { %2846 = vadd.xlane.f32.xlu1 %v2845_v19  ;;  %v2842_v57 = vsel %vm544_vm0, %v2822_v28, 0.0  ;;  %v3083_v19 = vld [vmem:[#allocation17 + $0x10] sm:$0xff] }
 0x824   : > { %2843 = vadd.xlane.f32.xlu0 %v2842_v57  ;;  %v3084_v57 = vld [vmem:[#allocation17 + $0x18] sm:$0xff] }
 0x825   : > { %v4125_v39 = vpack.c.bf16 %v3084_v57, %v3083_v19 }
 0x8a4   : > { %v2829_v31 = vpop.xlane.xlu1 %2828 }
 0x8a5   : > { %v2849_v21 = vmul.f32 0.03125, %v2829_v31  ;;  %v2826_v58 = vpop.xlane.xlu0 %2825  ;;  %v3086_v31 = vld [vmem:[#allocation17 + $0x28] sm:$0xff] }
 0x8a6   : > { %v2848_v61 = vmul.f32 0.03125, %v2826_v58 }
 0x8a7   : > { %v2857_v34 = vadd.f32 1e-06, %v2849_v21 }
 0x8a8   : > { %v2856_v20 = vadd.f32 1e-06, %v2848_v61  ;;  %v2835_v13 = vpop.xlane.xlu1 %2834 }
 0x8a9   : > { %4616 = vrsqrt.f32 %v2857_v34  ;;  %v2851_v14 = vmul.f32 0.03125, %v2835_v13  ;;  %v2832_v24 = vpop.xlane.xlu0 %2831 }
 0x8aa   : > { %4618 = vrsqrt.f32 %v2856_v20  ;;  %v2850_v11 = vmul.f32 0.03125, %v2832_v24 }
 0x8ab   : > { %v2859_v45 = vadd.f32 1e-06, %v2851_v14 }
 0x8ac   : > { %v2858_v2 = vadd.f32 1e-06, %v2850_v11  ;;  %v2841_v52 = vpop.xlane.xlu1 %2840 }
 0x8ad   : > { %4620 = vrsqrt.f32 %v2859_v45  ;;  %v2853_v63 = vmul.f32 0.03125, %v2841_v52  ;;  %v2838_v8 = vpop.xlane.xlu0 %2837 }
 0x8ae   : > { %4622 = vrsqrt.f32 %v2858_v2  ;;  %v2852_v43 = vmul.f32 0.03125, %v2838_v8  ;;  %v3088_v8 = vld [vmem:[#allocation17 + $0x38] sm:$0xff] }
 0x8af   : > { %v2861_v60 = vadd.f32 1e-06, %v2853_v63 }
 0x8b0   : > { %v2860_v55 = vadd.f32 1e-06, %v2852_v43  ;;  %v2847_v6 = vpop.xlane.xlu1 %2846  ;;  %v3090_v43 = vld [vmem:[#allocation17 + $0x48] sm:$0xff] }
 0x8b1   : > { %4624 = vrsqrt.f32 %v2861_v60  ;;  %v2855_v7 = vmul.f32 0.03125, %v2847_v6  ;;  %v2844_v32 = vpop.xlane.xlu0 %2843  ;;  %v3092_v6 = vld [vmem:[#allocation17 + $0x58] sm:$0xff] }
 0x8b2   : > { %4626 = vrsqrt.f32 %v2860_v55  ;;  %v2854_v41 = vmul.f32 0.03125, %v2844_v32  ;;  %v3091_v55 = vld [vmem:[#allocation17 + $0x50] sm:$0xff]  ;;  %v3094_v32 = vld [vmem:[#allocation17 + $0x68] sm:$0xff] }
 0x8b3   : > { %v4617_v54 = vpop.eup %4616  ;;  %v2863_v0 = vadd.f32 1e-06, %v2855_v7  ;;  %v4141_v47 = vpack.c.bf16 %v3092_v6, %v3091_v55  ;;  %v3093_v7 = vld [vmem:[#allocation17 + $0x60] sm:$0xff] }
 0x8b4   : > { %v4619_v17 = vpop.eup %4618  ;;  %v2873_v36 = vmul.f32 %v4617_v54, %v6420_v44  ;;  %v2862_v26 = vadd.f32 1e-06, %v2854_v41  ;;  %v3095_v41 = vld [vmem:[#allocation17 + $0x70] sm:$0xff]  ;;  %v3096_v54 = vld [vmem:[#allocation17 + $0x78] sm:$0xff] }
 0x8b5   : > { %4628 = vrsqrt.f32 %v2863_v0  ;;  %v2872_v27 = vmul.f32 %v4619_v17, %v6423_v15  ;;  %v3085_v15 = vld [vmem:[#allocation17 + $0x20] sm:$0xff]  ;;  %v4149_v0 = vpack.c.bf16 %v3096_v54, %v3095_v41  ;;  %v2910_v17 = vsub.s32 6, %v6695_v50 }
 0x8b6   : > { %v2885_v46 = vmul.f32 %v2883_v30, %v2873_v36  ;;  %4630 = vrsqrt.f32 %v2862_v26  ;;  %v4129_v20 = vpack.c.bf16 %v3086_v31, %v3085_v15 }
 0x8b7   : > { %v4621_v38 = vpop.eup %4620  ;;  %v2884_v28 = vmul.f32 %v2883_v30, %v2872_v27  ;;  %v2911_v36 = vrot.slane %v6374_v9, %v2910_v17 }
 0x8b8   : > { %v4623_v23 = vpop.eup %4622  ;;  %v2875_v53 = vmul.f32 %v4621_v38, %v6430_v40  ;;  %v2897_v25 = vadd.f32 %v2895_v10, %v2885_v46 }
 0x8b9   : > { %v2896_v1 = vadd.f32 %v2895_v10, %v2884_v28  ;;  %v2874_v62 = vmul.f32 %v4623_v23, %v6434_v16 }
 0x8ba   : > { %v2887_v44 = vmul.f32 %v2883_v30, %v2875_v53 }
 0x8bb   : > { %v4625_v35 = vpop.eup %4624  ;;  %3801 = vmatprep.mubr.msk.f32.mxu1 %vm544_vm0, %v2896_v1  ;;  %v2886_v18 = vmul.f32 %v2883_v30, %v2874_v62 }
 0x8bc   : > { %v4627_v21 = vpop.eup %4626  ;;  %3802 = vmatmul.mubr.msk.f32.vlgmr.msra.gmra.mrb[60].mxu1 %vm544_vm0, %v2897_v25  ;;  %v2877_v58 = vmul.f32 %v4625_v35, %v6442_v22  ;;  %v2899_v16 = vadd.f32 %v2895_v10, %v2887_v44 }
 0x8bd   : > { %v2898_v61 = vadd.f32 %v2895_v10, %v2886_v18  ;;  %v2876_v40 = vmul.f32 %v4627_v21, %v6446_v48  ;;  %4124 = vmatpush3.bf16.msra.mxu1 %v6479_v5 }
 0x8be   : > { %v2889_v34 = vmul.f32 %v2883_v30, %v2877_v58  ;;  %4126 = vmatprep.subr.bf16.mxu1 %v4125_v39 }
 0x8bf   : > { %v4629_v13 = vpop.eup %4628  ;;  %3804 = vmatprep.mubr.msk.f32.mxu1 %vm544_vm0, %v2898_v61  ;;  %v2888_v14 = vmul.f32 %v2883_v30, %v2876_v40 }
 0x8c0   : > { %v4631_v24 = vpop.eup %4630  ;;  %3805 = vmatmul.mubr.msk.f32.gmra.mrb[62].mxu1 %vm544_vm0, %v2899_v16  ;;  %v2879_v11 = vmul.f32 %v4629_v13, %v6454_v4  ;;  %v2901_v48 = vadd.f32 %v2895_v10, %v2889_v34  ;;  %v3087_v4 = vld [vmem:[#allocation17 + $0x30] sm:$0xff] }
 0x8c1   : > { %v2900_v45 = vadd.f32 %v2895_v10, %v2888_v14  ;;  %v2878_v22 = vmul.f32 %v4631_v24, %v6458_v12  ;;  %4128 = vmatpush3.bf16.msra.mxu1 %v4125_v39  ;;  %v4133_v51 = vpack.c.bf16 %v3088_v8, %v3087_v4  ;;  %v3089_v12 = vld [vmem:[#allocation17 + $0x40] sm:$0xff] }
 0x8c2   : > { %v2891_v2 = vmul.f32 %v2883_v30, %v2879_v11  ;;  %4130 = vmatprep.subr.bf16.mxu1 %v4129_v20  ;;  %v4137_v60 = vpack.c.bf16 %v3090_v43, %v3089_v12 }
 0x8c3   : > { %3807 = vmatprep.mubr.msk.f32.mxu1 %vm544_vm0, %v2900_v45  ;;  %v2890_v5 = vmul.f32 %v2883_v30, %v2878_v22  ;;  %v4145_v30 = vpack.c.bf16 %v3094_v32, %v3093_v7 }
 0x8c4   : > { %3808 = vmatmul.mubr.msk.f32.gmra.mrb[64].mxu1 %vm544_vm0, %v2901_v48  ;;  %v2903_v63 = vadd.f32 %v2895_v10, %v2891_v2 }
 0x8c5   : > { %v2902_v52 = vadd.f32 %v2895_v10, %v2890_v5  ;;  %4132 = vmatpush3.bf16.msra.mxu1 %v4129_v20 }
 0x8c6   : > { %4134 = vmatprep.subr.bf16.mxu1 %v4133_v51 }
 0x8c7   : > { %3810 = vmatprep.mubr.msk.f32.mxu1 %vm544_vm0, %v2902_v52 }
 0x8c8   : > { %3811 = vmatmul.mubr.msk.f32.gmra.mrb[66].mxu1 %vm544_vm0, %v2903_v63 }
 0x8c9   : > { %4136 = vmatpush3.bf16.msra.mxu1 %v4133_v51 }
 0x8ca   : > { %4138 = vmatprep.subr.bf16.mxu1 %v4137_v60 }
 0x8cd   : > { %4140 = vmatpush3.bf16.msra.mxu1 %v4137_v60 }
 0x8ce   : > { %4142 = vmatprep.subr.bf16.mxu1 %v4141_v47 }
 0x8d1   : > { %4144 = vmatpush3.bf16.msra.mxu1 %v4141_v47 }
 0x8d2   : > { %4146 = vmatprep.subr.bf16.mxu1 %v4145_v30 }
 0x8d5   : > { %4148 = vmatpush3.bf16.msra.mxu1 %v4145_v30 }
 0x8d6   : > { %4150 = vmatprep.subr.bf16.mxu1 %v4149_v0 }
 0x8d9   : > { %4152 = vmatpush3.bf16.msra.mxu1 %v4149_v0 }
 0x98f   : > { %v3803_v26 = vpop.f32.mrb[60].mxu1 }
 0x990   : > { %v3008_v10 = vadd.f32 %v3803_v26, %v2911_v36  ;;  %v3002_v27 = vpop.f32.mrb[61].mxu1 }
 0x991   : > { %v3003_v46 = vadd.f32 %v3002_v27, %v2911_v36  ;;  %v3212_v27 = vsub.s32 7, %v6695_v50 }
 0x992   : > { %v3050_v38 = vmul.f32 0.70710677, %v3008_v10  ;;  %v3042_v11 = vmul.f32 0.5, %v3008_v10 }
 0x993   : > { %v3049_v28 = vmul.f32 0.70710677, %v3003_v46  ;;  %v3806_v19 = vpop.f32.mrb[62].mxu1  ;;  %v3041_v14 = vmul.f32 0.5, %v3003_v46  ;;  %v3213_v46 = vrot.slane %v6374_v9, %v3212_v27 }
 0x994   : > { %4632 = verf.f32 %v3050_v38  ;;  %v3018_v57 = vadd.f32 %v3806_v19, %v2911_v36  ;;  %v3012_v23 = vpop.f32.mrb[63].mxu1 }
 0x995   : > { %4634 = verf.f32 %v3049_v28  ;;  %v3013_v53 = vadd.f32 %v3012_v23, %v2911_v36 }
 0x996   : > { %v3052_v1 = vmul.f32 0.70710677, %v3018_v57  ;;  %v3044_v4 = vmul.f32 0.5, %v3018_v57 }
 0x997   : > { %v3051_v62 = vmul.f32 0.70710677, %v3013_v53  ;;  %v3809_v25 = vpop.f32.mrb[64].mxu1  ;;  %v3043_v52 = vmul.f32 0.5, %v3013_v53 }
 0x998   : > { %4636 = verf.f32 %v3052_v1  ;;  %v3028_v44 = vadd.f32 %v3809_v25, %v2911_v36  ;;  %v3022_v39 = vpop.f32.mrb[65].mxu1 }
 0x999   : > { %4638 = verf.f32 %v3051_v62  ;;  %v3023_v35 = vadd.f32 %v3022_v39, %v2911_v36 }
 0x99a   : > { %v3054_v18 = vmul.f32 0.70710677, %v3028_v44  ;;  %v3046_v47 = vmul.f32 0.5, %v3028_v44 }
 0x99b   : > { %v3053_v15 = vmul.f32 0.70710677, %v3023_v35  ;;  %v3812_v31 = vpop.f32.mrb[66].mxu1  ;;  %v3045_v55 = vmul.f32 0.5, %v3023_v35 }
 0x99c   : > { %4640 = verf.f32 %v3054_v18  ;;  %v3038_v21 = vadd.f32 %v3812_v31, %v2911_v36  ;;  %v3032_v58 = vpop.f32.mrb[67].mxu1 }
 0x99d   : > { %4642 = verf.f32 %v3053_v15  ;;  %v3033_v61 = vadd.f32 %v3032_v58, %v2911_v36 }
 0x99e   : > { %v4633_v40 = vpop.eup %4632  ;;  %v3056_v16 = vmul.f32 0.70710677, %v3038_v21  ;;  %v3048_v36 = vmul.f32 0.5, %v3038_v21 }
 0x99f   : > { %v4635_v34 = vpop.eup %4634  ;;  %v3066_v20 = vadd.f32 1.0, %v4633_v40  ;;  %v3055_v13 = vmul.f32 0.70710677, %v3033_v61  ;;  %v3047_v0 = vmul.f32 0.5, %v3033_v61 }
 0x9a0   : > { %v3065_v24 = vadd.f32 1.0, %v4635_v34  ;;  %4644 = verf.f32 %v3056_v16 }
 0x9a1   : > { %4646 = verf.f32 %v3055_v13  ;;  %v3074_v2 = vmul.f32 %v3066_v20, %v3042_v11 }
 0x9a2   : > { %v4637_v45 = vpop.eup %4636  ;;  %v3073_v22 = vmul.f32 %v3065_v24, %v3041_v14 }
 0x9a3   : > { %v4639_v48 = vpop.eup %4638  ;;  %v3068_v5 = vadd.f32 1.0, %v4637_v45 }
 0x9a4   : > { %v3067_v63 = vadd.f32 1.0, %v4639_v48  ;;  %3845 = vmatprep.mubr.f32.mxu1 %v3073_v22 }
 0x9a5   : > { %3846 = vmatmul.mubr.f32.vlgmr.msra.gmra.mrb[68].mxu1 %v3074_v2  ;;  %v3076_v60 = vmul.f32 %v3068_v5, %v3044_v4 }
 0x9a6   : > { %v4641_v8 = vpop.eup %4640  ;;  %v3075_v51 = vmul.f32 %v3067_v63, %v3043_v52 }
 0x9a7   : > { %v4643_v12 = vpop.eup %4642  ;;  %v3070_v43 = vadd.f32 1.0, %v4641_v8 }
 0x9a8   : > { %v3069_v6 = vadd.f32 1.0, %v4643_v12  ;;  %3848 = vmatprep.mubr.f32.mxu1 %v3075_v51 }
 0x9a9   : > { %3849 = vmatmul.mubr.f32.gmra.mrb[70].mxu1 %v3076_v60  ;;  %v3078_v54 = vmul.f32 %v3070_v43, %v3046_v47 }
 0x9aa   : > { %v4645_v7 = vpop.eup %4644  ;;  %v3077_v32 = vmul.f32 %v3069_v6, %v3045_v55 }
 0x9ab   : > { %v4647_v30 = vpop.eup %4646  ;;  %v3072_v41 = vadd.f32 1.0, %v4645_v7 }
 0x9ac   : > { %v3071_v17 = vadd.f32 1.0, %v4647_v30  ;;  %3851 = vmatprep.mubr.f32.mxu1 %v3077_v32 }
 0x9ad   : > { %3852 = vmatmul.mubr.f32.gmra.mrb[72].mxu1 %v3078_v54  ;;  %v3080_v10 = vmul.f32 %v3072_v41, %v3048_v36 }
 0x9ae   : > { %v3079_v26 = vmul.f32 %v3071_v17, %v3047_v0 }
 0x9b0   : > { %3854 = vmatprep.mubr.f32.mxu1 %v3079_v26 }
 0x9b1   : > { %3855 = vmatmul.mubr.f32.gmra.mrb[74].mxu1 %v3080_v10 }
 0xa78   : > { %v3847_v38 = vpop.f32.mrb[68].mxu1 }
 0xa79   : > { %v3203_v28 = vadd.f32 %v3847_v38, %v6379_v33  ;;  %v3163_v19 = vpop.f32.mrb[69].mxu1 }
 0xa7a   : > { %v3202_v57 = vadd.f32 %v3163_v19, %v6381_v59 }
 0xa7b   : > { %v3215_v23 = vadd.f32 %v3213_v46, %v3203_v28 }
 0xa7c   : > { %v3214_v53 = vadd.f32 %v3213_v46, %v3202_v57  ;;  %v3850_v1 = vpop.f32.mrb[70].mxu1 }
 0xa7d   : > { %3223 = vst.msk [vmem:[%s533_s12 + $0x8] sm:$0xff] %vm544_vm0, %v3215_v23  ;;  %v3205_v62 = vadd.f32 %v3850_v1, %v6389_v37  ;;  %v3173_v25 = vpop.f32.mrb[71].mxu1 }
 0xa7e   : > { %3222 = vst.msk [vmem:[%s533_s12] sm:$0xff] %vm544_vm0, %v3214_v53  ;;  %v3204_v50 = vadd.f32 %v3173_v25, %v6391_v42 }
 0xa7f   : > { %v3217_v9 = vadd.f32 %v3213_v46, %v3205_v62 }
 0xa80   : > { %v3216_v33 = vadd.f32 %v3213_v46, %v3204_v50  ;;  %v3853_v44 = vpop.f32.mrb[72].mxu1 }
 0xa81   : > { %3225 = vst.msk [vmem:[%s533_s12 + $0x18] sm:$0xff] %vm544_vm0, %v3217_v9  ;;  %v3207_v59 = vadd.f32 %v3853_v44, %v6400_v56  ;;  %v3183_v39 = vpop.f32.mrb[73].mxu1 }
 0xa82   : > { %3224 = vst.msk [vmem:[%s533_s12 + $0x10] sm:$0xff] %vm544_vm0, %v3216_v33  ;;  %v3206_v35 = vadd.f32 %v3183_v39, %v6403_v3 }
 0xa83   : > { %v3219_v18 = vadd.f32 %v3213_v46, %v3207_v59 }
 0xa84   : > { %v3218_v37 = vadd.f32 %v3213_v46, %v3206_v35  ;;  %v3856_v15 = vpop.f32.mrb[74].mxu1 }
 0xa85   : > { %3227 = vst.msk [vmem:[%s533_s12 + $0x28] sm:$0xff] %vm544_vm0, %v3219_v18  ;;  %v3209_v42 = vadd.f32 %v3856_v15, %v6411_v49  ;;  %v3193_v31 = vpop.f32.mrb[75].mxu1 }
 0xa86   : > { %3226 = vst.msk [vmem:[%s533_s12 + $0x20] sm:$0xff] %vm544_vm0, %v3218_v37  ;;  %v3208_v56 = vadd.f32 %v3193_v31, %v6413_v29 }
 0xa87   : > { %v3221_v21 = vadd.f32 %v3213_v46, %v3209_v42 }
 0xa88   : > { %v3220_v3 = vadd.f32 %v3213_v46, %v3208_v56 }
 0xa89   : > { %3229 = vst.msk [vmem:[%s533_s12 + $0x38] sm:$0xff] %vm544_vm0, %v3221_v21 }
 0xa8a   : > { %3228 = vst.msk [vmem:[%s533_s12 + $0x30] sm:$0xff] %vm544_vm0, %v3220_v3 }
 0xa8b   : > { %4952 = shalt.err (!%p4949_p3)
}
 0xa8c   : > { %s4953_s27 = scalar_lea.hbm %s6527_s24, 1024  ;;  %s4957_s21 = scalar_lea.hbm %s6697_s25, 2048 }
 0xa8d   : > { %p4954_p0 = scmp.ne.s32.totalorder %s6527_s24, %s4953_s27  ;;  %p4958_p7 = scmp.lt.u32.totalorder %s6527_s24, %s6697_s25 }
 0xa8e   : > { %p4959_p10 = scmp.lt.u32.totalorder %s4957_s21, %s4953_s27  ;;  %p4961_p11 = scmp.lt.u32.totalorder %s4953_s27, %s6527_s24 }
 0xa8f   : > { %p4955_p5 = pnand %p4954_p0, %p6698_p12 }
 0xa90   : > { %p4960_p1 = por %p4959_p10, %p4958_p7 }
 0xa91   : > { %p4956_p2 = pneg %p4955_p5 }
 0xa92   : > { %p4962_p13 = por %p4961_p11, %p4960_p1 }
 0xa94   : > { %p4963_p8 = pnand %p4962_p13, %p4956_p2 }
 0xa96   : > { %4966 = shalt.err (!%p4963_p8)
}
 0xa97   : > { %s5046_s30 = smov 128   ;;  %s5047_s2 = smov 8  }
 0xa98   : > { %4255 = dma.vmem_to_hbm [thread:$0]  (%p6698_p12), %s6529_s26, 1024, %s6527_s24, %s3231_s23, %s5046_s30, %s5046_s30, %s5047_s2  }
 0xa99 PF: > { %s3259_s28 = sand.u32 1, %s5013_s17   ;;  %p6699_p6 = scmp.ne.s32.totalorder %s6636_s22, 0 }
 0xa9a   : > { %p6700_p9 = scmp.ge.s32.totalorder %s5025_s20, 2  ;;  %s3260_s27 = scalar_lea.sflag [#allocation4], %s3259_s28 }
 0xa9c   : > { %p4290_p4 = pnand %p6700_p9, %p6699_p6 }
 0xa9e   : > { %5008 = dma.done.wait (!%p4290_p4), %s3260_s27, 1024  }
 0xa9f   : > { %5010 = vsyncadd (!%p4290_p4), %s3260_s27, 4294966272  ;;  %p29_p3 = scmp.ge.s32.totalorder %s5358_s16, 4   ;;  %s6701_s17 = smov %s5017_s18 }
 0xaa0   : > { %s6702_s18 = smov %s5021_s19  ;;  %s6703_s19 = smov %s5370_s9 }
 0xaa1   : > { %s6704_s20 = smov %s5358_s16  ;;  %31 = sbr.rel (!%p29_p3) target bundleno = 15 (0xf), region = 145 }
 0xaa8   :  { %3265 = vsyncpa [#allocation3], 1 }
 0xaa9   :  { %3267 = vsyncpa [#allocation3 + $0x1], 1 }
 0xaaa   :  { %3268 = vsyncpa [#allocation6], 1 }
 0xaab   :  { %3269 = vsyncpa [#allocation9], 1 }
 0xaac   :  { %3270 = vsyncpa [#allocation12], 1 }
 0xaad   :  { %3271 = vsyncpa [#allocation15], 1 }
 0xaae   :  { %3272 = vsyncpa [#allocation18], 1 }
 0xaaf   :  { %3273 = vsyncpa [#allocation4], 1 }
 0xab0   :  { %3275 = vsyncpa [#allocation4 + $0x1], 1 }

</bundles_post_ra>
